<compile_context>
chip_gen: v6e
topology: v6e:2x2x1
jax: 0.10.0
libtpu: 0.0.40
codegen_flags: <defaults>
</compile_context>

<pallas_src>
import functools

import jax
import jax.numpy as jnp
from jax.experimental import pallas as pl
from jax.experimental.pallas import tpu as pltpu

# ---- dims from the reference config -------------------------------------------------
DIM_INPUT = 128          # cfg.transformer.dim_input
DIM_HEAD = 16            # cfg.transformer.dim_head
NUM_HEADS = 8            # cfg.transformer.num_heads   (dim = 16*8 = 128)
STATE_DIM = 80 * 80      # cfg.transformer.state_dim
ACTION_DIM = 2           # cfg.transformer.action_dim
REWARD_DIM = 1           # cfg.transformer.reward_dim
NUM_OUTPUTS = 2          # num_outputs passed to DTModel (Pong: 2 actions)
MAX_TIMESTEP = 20000     # nn.Embedding(20000, dim_input)
WINDOW_SIZE = 3 * 129    # cfg.window_size is absent from the provided dict; 3*seq_len keeps
                         # the exact-window mask inert (pure causal) for any in-range length
LN_EPS = 1e-5            # PyTorch LayerNorm default

HEAD_N = NUM_OUTPUTS + 1 + STATE_DIM        # fused prediction-head width (2 + 1 + 6400)


def _round_up(v, m):
    return ((v + m - 1) // m) * m


HEAD_NP = _round_up(HEAD_N, 512)            # lane/grid-padded fused head width


# ============================== generic Pallas matmul =================================
def _matmul_kernel(*refs, relu, has_bcol, has_brow):
    x_ref, w_ref = refs[0], refs[1]
    idx = 2
    bcol_ref = None
    brow_ref = None
    if has_bcol:
        bcol_ref = refs[idx]
        idx += 1
    if has_brow:
        brow_ref = refs[idx]
        idx += 1
    o_ref = refs[idx]

    acc = jnp.dot(x_ref[...], w_ref[...], preferred_element_type=jnp.float32)
    if has_bcol:
        acc = acc + bcol_ref[...]
    if has_brow:
        acc = acc + brow_ref[...]
    if relu:
        acc = jnp.maximum(acc, 0.0)
    o_ref[...] = acc.astype(o_ref.dtype)


def matmul_pallas(x, w, b_col=None, b_row=None, relu=False, tm=None, tn=None,
                  out_dtype=jnp.float32):
    """out = x @ w (+ b_col per column)(+ b_row per row)(+ relu).

    x:(M,K), w:(K,N).  Operands are cast to bf16 at the boundary, accumulation is f32.
    M is padded only to a multiple of 8; N is tiled lane-dense (tn) only when large.
    """
    M, K = x.shape
    K2, N = w.shape
    assert K == K2

    if x.dtype != jnp.bfloat16:
        x = x.astype(jnp.bfloat16)
    if w.dtype != jnp.bfloat16:
        w = w.astype(jnp.bfloat16)

    # ---- tile sizes (no 128-row padding for tiny M; lane-dense N blocks) -------------
    if tm is None:
        tm = 512
    tm = _round_up(min(tm, _round_up(M, 8)), 8)
    Mp = _round_up(M, tm)

    if tn is None:
        tn = N if N <= 4096 else 512
    if tn >= N:
        tn, Np = N, N                      # single full-N block (exempt from 128 rule)
    else:
        tn = _round_up(tn, 128)
        Np = _round_up(N, tn)

    if Mp != M:
        x = jnp.pad(x, ((0, Mp - M), (0, 0)))
    if Np != N:
        w = jnp.pad(w, ((0, 0), (0, Np - N)))

    in_specs = [pl.BlockSpec((tm, K), lambda i, j: (i, 0)),
                pl.BlockSpec((K, tn), lambda i, j: (0, j))]
    args = [x, w]
    if b_col is not None:
        bc = jnp.asarray(b_col, jnp.float32).reshape(1, N)
        if Np != N:
            bc = jnp.pad(bc, ((0, 0), (0, Np - N)))
        in_specs.append(pl.BlockSpec((1, tn), lambda i, j: (0, j)))
        args.append(bc)
    if b_row is not None:
        br = jnp.asarray(b_row, jnp.float32).reshape(M, 1)
        if Mp != M:
            br = jnp.pad(br, ((0, Mp - M), (0, 0)))
        in_specs.append(pl.BlockSpec((tm, 1), lambda i, j: (i, 0)))
        args.append(br)

    kern = functools.partial(_matmul_kernel, relu=relu,
                             has_bcol=b_col is not None, has_brow=b_row is not None)

    flops = 2 * Mp * K * Np
    bytes_accessed = int(x.size * 2 + w.size * 2
                         + Mp * Np * jnp.dtype(out_dtype).itemsize)

    out = pl.pallas_call(
        kern,
        out_shape=jax.ShapeDtypeStruct((Mp, Np), out_dtype),
        grid=(Mp // tm, Np // tn),
        in_specs=in_specs,
        out_specs=pl.BlockSpec((tm, tn), lambda i, j: (i, j)),
        compiler_params=pltpu.CompilerParams(
            dimension_semantics=("parallel", "parallel"),
            vmem_limit_bytes=32 * 1024 * 1024),
        cost_estimate=pl.CostEstimate(flops=flops, transcendentals=0,
                                      bytes_accessed=bytes_accessed),
    )(*args)

    if Mp != M or Np != N:
        out = out[:M, :N]
    return out


# ============================== conv = channels-first im2col + lane-dense matmul ======
def im2col_cfirst(x, kh, kw, stride, pad):
    """x: (C, N, H, W) -> patches (C*kh*kw, N*OH*OW).

    Row (K) order is (C, KH, KW) so w.reshape(OC, IC*KH*KW) matches F.conv2d exactly.
    Column (M) order is (N, OH, OW), so the matmul output reshapes straight back to the
    channels-first activation layout needed by the next conv (no transposes).
    """
    C, N, H, W = x.shape
    OH = (H + 2 * pad - kh) // stride + 1
    OW = (W + 2 * pad - kw) // stride + 1
    xp = jnp.pad(x, ((0, 0), (0, 0), (pad, pad), (pad, pad)))
    slices = []
    for i in range(kh):
        for j in range(kw):
            slices.append(xp[:, :, i:i + stride * OH:stride, j:j + stride * OW:stride])
    patches = jnp.stack(slices, axis=1)                  # (C, kh*kw, N, OH, OW)
    return patches.reshape(C * kh * kw, N * OH * OW), OH, OW


# ============================== transformer block kernel ==============================
def _transformer_block_kernel(x_ref, ln1g_ref, ln1b_ref, wqkv_ref,
                              ln2g_ref, ln2b_ref, w1_ref, b1_ref, w2_ref, b2_ref,
                              out_ref, attnw_ref, acc_ref, *, num_heads, dim_head, window):
    x = x_ref[...]                                       # (S, D) f32
    S = x.shape[0]
    dim = num_heads * dim_head

    def layer_norm(v, g, b):
        mu = jnp.mean(v, axis=-1, keepdims=True)
        var = jnp.mean((v - mu) ** 2, axis=-1, keepdims=True)
        return (v - mu) * jax.lax.rsqrt(var + LN_EPS) * g + b

    # pre-LN + fused q/kv projection (no bias); bf16 operands, f32 accumulation
    xn = layer_norm(x, ln1g_ref[...], ln1b_ref[...])
    xnb = xn.astype(jnp.bfloat16)
    qkv = jnp.dot(xnb, wqkv_ref[...], preferred_element_type=jnp.float32)  # (S, 3*dim)
    q = qkv[:, :dim]                                     # (S, H*Dh)   128-aligned slice
    kv = qkv[:, dim:]                                    # (S, 2*H*Dh) 128-aligned slice

    # causal + exact-window mask (i == j == S, as in MyLocalAttention.masked_fill)
    rows = jax.lax.broadcasted_iota(jnp.int32, (S, S), 0)
    cols = jax.lax.broadcasted_iota(jnp.int32, (S, S), 1)
    mask = (rows < cols) | (rows > cols + window)
    neg_big = -1e30                                      # finite (NaN-safe) mask value
    scale = dim_head ** (-0.5)

    attn_sum = jnp.zeros((S, S), jnp.float32)
    for h in range(num_heads):
        qh = q[:, h * dim_head:(h + 1) * dim_head] * scale
        # kv is laid out 'n (h d2)' with d2 = 2*dim_head; chunk(2,-1) => k first half, v second
        kh = kv[:, h * 2 * dim_head: h * 2 * dim_head + dim_head]
        vh = kv[:, h * 2 * dim_head + dim_head: (h + 1) * 2 * dim_head]
        sim = jnp.dot(qh, kh.T, preferred_element_type=jnp.float32)
        sim = jnp.where(mask, neg_big, sim)
        m = jnp.max(sim, axis=-1, keepdims=True)
        e = jnp.exp(sim - m)
        attn = e / jnp.sum(e, axis=-1, keepdims=True)
        attn_sum = attn_sum + attn
        # write head output straight into the (S, H*Dh) accumulator (no concatenate)
        acc_ref[:, h * dim_head:(h + 1) * dim_head] = jnp.dot(
            attn, vh, preferred_element_type=jnp.float32)

    attnw_ref[...] = attn_sum * (1.0 / num_heads)        # attn.mean(dim=heads)

    h_res = acc_ref[...] + x                             # 'b h n d -> b n (h d)' + residual
    hn = layer_norm(h_res, ln2g_ref[...], ln2b_ref[...])
    f = jnp.dot(hn.astype(jnp.bfloat16), w1_ref[...],
                preferred_element_type=jnp.float32) + b1_ref[...]
    f = jnp.maximum(f, 0.0)
    f = jnp.dot(f.astype(jnp.bfloat16), w2_ref[...],
                preferred_element_type=jnp.float32) + b2_ref[...]
    out_ref[...] = f + h_res                             # residual


def transformer_block_pallas(x, p):
    S, D = x.shape
    kern = functools.partial(_transformer_block_kernel,
                             num_heads=NUM_HEADS, dim_head=DIM_HEAD, window=WINDOW_SIZE)
    out, attn_w = pl.pallas_call(
        kern,
        out_shape=(jax.ShapeDtypeStruct((S, D), jnp.float32),
                   jax.ShapeDtypeStruct((S, S), jnp.float32)),
        scratch_shapes=[pltpu.VMEM((S, D), jnp.float32)],
        compiler_params=pltpu.CompilerParams(vmem_limit_bytes=32 * 1024 * 1024),
    )(x, p["ln1_g"], p["ln1_b"], p["wqkv"],
      p["ln2_g"], p["ln2_b"], p["ff1_w"], p["ff1_b"], p["ff2_w"], p["ff2_b"])
    return out, attn_w


# ============================== parameters ============================================
def init_params(key):
    ks = jax.random.split(key, 16)

    def nrm(k, shape, scale):
        return scale * jax.random.normal(k, shape, jnp.float32)

    dim = DIM_HEAD * NUM_HEADS
    conv1_w = nrm(ks[0], (16, 1, 8, 8), 0.1)             # OIHW
    conv2_w = nrm(ks[1], (32, 16, 4, 4), 0.05)           # OIHW

    # fused prediction heads: [action(2) | reward(1) | state(6400)], lane-padded to HEAD_NP
    pa_w = nrm(ks[10], (DIM_INPUT, NUM_OUTPUTS), 0.02)
    pr_w = nrm(ks[11], (DIM_INPUT, 1), 0.02)
    ps_w = nrm(ks[12], (DIM_INPUT, STATE_DIM), 0.02)
    head_w = jnp.concatenate([pa_w, pr_w, ps_w], axis=1)              # (128, HEAD_N)
    head_w = jnp.pad(head_w, ((0, 0), (0, HEAD_NP - HEAD_N)))

    # fused q/kv projection: columns [0:dim] = to_q, [dim:3*dim] = to_kv ('n (h d2)')
    wq = nrm(ks[6], (dim, dim), 0.05)
    wkv = nrm(ks[7], (dim, 2 * dim), 0.05)
    wqkv = jnp.concatenate([wq, wkv], axis=1).astype(jnp.bfloat16)    # (128, 384)

    p = {
        # feature (= embed_state): conv1(1->16,k8,s4,p2) relu, conv2(16->32,k4,s2,p1) relu,
        # flatten, linear(3200 -> 128).  Conv weights stored pre-reshaped (OC, IC*KH*KW), bf16.
        "conv1_wm": conv1_w.reshape(16, 1 * 8 * 8).astype(jnp.bfloat16),
        "conv1_b": jnp.zeros((16,), jnp.float32),
        "conv2_wm": conv2_w.reshape(32, 16 * 4 * 4).astype(jnp.bfloat16),
        "conv2_b": jnp.zeros((32,), jnp.float32),
        "feat_w": nrm(ks[2], (32 * 10 * 10, DIM_INPUT), 0.02).astype(jnp.bfloat16),  # (K,N)
        "feat_b": jnp.zeros((DIM_INPUT,), jnp.float32),
        "embed_action": nrm(ks[3], (ACTION_DIM, DIM_INPUT), 0.02),
        "embed_reward_w": nrm(ks[4], (REWARD_DIM, DIM_INPUT), 0.02),
        "embed_reward_b": jnp.zeros((DIM_INPUT,), jnp.float32),
        "embed_timestep": nrm(ks[5], (MAX_TIMESTEP, DIM_INPUT), 0.02),
        "block0": {
            "ln1_g": jnp.ones((1, dim), jnp.float32),
            "ln1_b": jnp.zeros((1, dim), jnp.float32),
            "wqkv": wqkv,
            "ln2_g": jnp.ones((1, dim), jnp.float32),
            "ln2_b": jnp.zeros((1, dim), jnp.float32),
            "ff1_w": nrm(ks[8], (dim, 4 * dim), 0.05).astype(jnp.bfloat16),
            "ff1_b": jnp.zeros((1, 4 * dim), jnp.float32),
            "ff2_w": nrm(ks[9], (4 * dim, dim), 0.05).astype(jnp.bfloat16),
            "ff2_b": jnp.zeros((1, dim), jnp.float32),
        },
        "head_w": head_w.astype(jnp.bfloat16),            # (128, HEAD_NP)
        "head_b": jnp.zeros((HEAD_NP,), jnp.float32),
    }
    return p


# ============================== DTModel forward (train path) =========================
def dt_forward(params, rewards, states, actions, timesteps, lookback=0):
    B, L = actions.shape
    assert B == 1  # the PyTorch 'train' path does h.squeeze(0)

    # ---- reward embedding: K=1 outer product -> plain VPU broadcast (no kernel) ------
    r = rewards.reshape(L, REWARD_DIM).astype(jnp.float32)
    reward_emb = r * params["embed_reward_w"] + params["embed_reward_b"]        # (L,128)

    # ---- state embedding: conv1 -> conv2 -> linear (channels-first, lane-dense) ------
    x_cf = states.reshape(L, 1, 80, 80).transpose(1, 0, 2, 3).astype(jnp.bfloat16)  # (1,L,80,80)
    p1, OH1, OW1 = im2col_cfirst(x_cf, 8, 8, 4, 2)                 # (64, L*400), bf16
    c1 = matmul_pallas(params["conv1_wm"], p1, b_row=params["conv1_b"],
                       relu=True, out_dtype=jnp.bfloat16)          # (16, L*400)
    c1 = c1.reshape(16, L, OH1, OW1)                               # channels-first, no transpose
    p2, OH2, OW2 = im2col_cfirst(c1, 4, 4, 2, 1)                   # (256, L*100), bf16
    c2 = matmul_pallas(params["conv2_wm"], p2, b_row=params["conv2_b"],
                       relu=True, out_dtype=jnp.bfloat16)          # (32, L*100)
    feat_in = c2.reshape(32, L, OH2 * OW2).transpose(1, 0, 2).reshape(L, 32 * OH2 * OW2)
    state_emb = matmul_pallas(feat_in, params["feat_w"], b_col=params["feat_b"])  # (L,128)

    # ---- action / timestep embeddings (XLA gathers) -----------------------------------
    action_emb = jnp.take(params["embed_action"], actions.reshape(-1), axis=0)
    time_emb = jnp.take(params["embed_timestep"], timesteps.reshape(-1), axis=0)

    reward_emb = reward_emb + time_emb
    state_emb = state_emb + time_emb
    action_emb = action_emb + time_emb

    # stack([r, s, a], dim=2) then 'b n m d -> b (n m) d'  (b == 1)
    stacked = jnp.stack([reward_emb, state_emb, action_emb], axis=1).reshape(3 * L, DIM_INPUT)

    h, attn_w = transformer_block_pallas(stacked, params["block0"])
    attn_weights = [attn_w[None]]                     # (1, 3L, 3L) == attn.mean(dim=heads)

    # ---- fused prediction heads (single lane-dense, N-tiled matmul) --------------------
    h = h[3 * lookback:]
    h1 = h[1::3]                                      # rows for predict_action
    h2 = h[2::3]                                      # rows for predict_reward / predict_state
    nh = h1.shape[0]
    xin = jnp.concatenate([h1, h2], axis=0)           # (2*nh, 128)
    fused = matmul_pallas(xin, params["head_w"], b_col=params["head_b"], tn=512)
    next_actions = fused[:nh, 0:NUM_OUTPUTS]
    next_rewards = fused[nh:, NUM_OUTPUTS:NUM_OUTPUTS + 1]
    next_states = fused[nh:, NUM_OUTPUTS + 1:NUM_OUTPUTS + 1 + STATE_DIM]
    return next_states, next_actions, next_rewards, attn_weights


# ============================== demo ==================================================
if __name__ == "__main__":
    key = jax.random.PRNGKey(0)
    pkey, rkey, skey, akey = jax.random.split(key, 4)
    params = init_params(pkey)

    B, L = 1, 6
    rewards = jax.random.normal(rkey, (B, L, REWARD_DIM), jnp.float32)
    states = jax.random.normal(skey, (B, L, 1, 80, 80), jnp.float32)
    actions = jax.random.randint(akey, (B, L), 0, ACTION_DIM)
    timesteps = jnp.arange(L, dtype=jnp.int32)[None, :]

    fwd = jax.jit(dt_forward, static_argnames=("lookback",))
    next_states, next_actions, next_rewards, attn_weights = fwd(
        params, rewards, states, actions, timesteps, lookback=0)
    jax.block_until_ready((next_states, next_actions, next_rewards, attn_weights[0]))

    assert next_states.shape == (L, STATE_DIM)
    assert next_actions.shape == (L, NUM_OUTPUTS)
    assert next_rewards.shape == (L, 1)
    assert attn_weights[0].shape == (1, 3 * L, 3 * L)
    print("KERNEL_OK")
</pallas_src>

<mosaic_0001>
module attributes {stable_mosaic.version = 11 : i64} {
  func.func @_matmul_kernel(%arg0: i32, %arg1: i32, %arg2: memref<16x64xbf16, #tpu.memory_space<vmem>>, %arg3: memref<64x2400xbf16, #tpu.memory_space<vmem>>, %arg4: memref<16x1xf32, #tpu.memory_space<vmem>>, %arg5: memref<16x2400xbf16, #tpu.memory_space<vmem>>) attributes {dimension_semantics = [#tpu.dimension_semantics<parallel>, #tpu.dimension_semantics<parallel>], iteration_bounds = array<i64: 1, 1>, scalar_prefetch = 0 : i64, scratch_operands = 0 : i64, tpu.core_type = #tpu.core_type<tc>, window_params = [{transform_indices = @transform_0, window_bounds = array<i64: 16, 64>}, {transform_indices = @transform_1, window_bounds = array<i64: 64, 2400>}, {transform_indices = @transform_2, window_bounds = array<i64: 16, 1>}, {transform_indices = @transform_3, window_bounds = array<i64: 16, 2400>}]} {
    %c0 = arith.constant 0 : index
    %c0_0 = arith.constant 0 : index
    %0 = vector.load %arg2[%c0, %c0_0] : memref<16x64xbf16, #tpu.memory_space<vmem>>, vector<16x64xbf16>
    %c0_1 = arith.constant 0 : index
    %c0_2 = arith.constant 0 : index
    %1 = vector.load %arg3[%c0_1, %c0_2] : memref<64x2400xbf16, #tpu.memory_space<vmem>>, vector<64x2400xbf16>
    %cst = arith.constant dense<0.000000e+00> : vector<16x2400xf32>
    %2 = tpu.matmul %0, %1, %cst {dimension_numbers = #tpu.dot_dimension_numbers<[1], [0], [0], [1], [0, 0, 1, 1], [], []>} : vector<16x64xbf16>, vector<64x2400xbf16>, vector<16x2400xf32> -> vector<16x2400xf32>
    %c0_3 = arith.constant 0 : index
    %c0_4 = arith.constant 0 : index
    %3 = vector.load %arg4[%c0_3, %c0_4] : memref<16x1xf32, #tpu.memory_space<vmem>>, vector<16x1xf32>
    %4 = vector.broadcast %3 : vector<16x1xf32> to vector<16x2400xf32>
    %5 = arith.addf %2, %4 : vector<16x2400xf32>
    %cst_5 = arith.constant 0.000000e+00 : f32
    %6 = vector.broadcast %cst_5 : f32 to vector<16x2400xf32>
    %7 = arith.maximumf %5, %6 : vector<16x2400xf32>
    %8 = arith.truncf %7 : vector<16x2400xf32> to vector<16x2400xbf16>
    %c0_6 = arith.constant 0 : index
    %c0_7 = arith.constant 0 : index
    %9 = vector.load %arg5[%c0_6, %c0_7] : memref<16x2400xbf16, #tpu.memory_space<vmem>>, vector<16x2400xbf16>
    tpu.vector_store %arg5[%c0_6, %c0_7], %8 {strides = array<i32>} : memref<16x2400xbf16, #tpu.memory_space<vmem>>, vector<16x2400xbf16>,
    return
  }
  func.func @transform_0(%arg0: i32, %arg1: i32) -> (i32, i32) {
    %c0_i32 = arith.constant 0 : i32
    %c0_i32_0 = arith.constant 0 : i32
    return %arg0, %c0_i32 : i32, i32
  }
  func.func @transform_1(%arg0: i32, %arg1: i32) -> (i32, i32) {
    %c0_i32 = arith.constant 0 : i32
    %c0_i32_0 = arith.constant 0 : i32
    return %c0_i32, %arg1 : i32, i32
  }
  func.func @transform_2(%arg0: i32, %arg1: i32) -> (i32, i32) {
    %c0_i32 = arith.constant 0 : i32
    %c0_i32_0 = arith.constant 0 : i32
    return %arg0, %c0_i32 : i32, i32
  }
  func.func @transform_3(%arg0: i32, %arg1: i32) -> (i32, i32) {
    %c0_i32 = arith.constant 0 : i32
    return %arg0, %arg1 : i32, i32
  }
}

module attributes {stable_mosaic.version = 11 : i64} {
  func.func @_matmul_kernel(%arg0: i32, %arg1: i32, %arg2: memref<32x256xbf16, #tpu.memory_space<vmem>>, %arg3: memref<256x600xbf16, #tpu.memory_space<vmem>>, %arg4: memref<32x1xf32, #tpu.memory_space<vmem>>, %arg5: memref<32x600xbf16, #tpu.memory_space<vmem>>) attributes {dimension_semantics = [#tpu.dimension_semantics<parallel>, #tpu.dimension_semantics<parallel>], iteration_bounds = array<i64: 1, 1>, scalar_prefetch = 0 : i64, scratch_operands = 0 : i64, tpu.core_type = #tpu.core_type<tc>, window_params = [{transform_indices = @transform_0, window_bounds = array<i64: 32, 256>}, {transform_indices = @transform_1, window_bounds = array<i64: 256, 600>}, {transform_indices = @transform_2, window_bounds = array<i64: 32, 1>}, {transform_indices = @transform_3, window_bounds = array<i64: 32, 600>}]} {
    %c0 = arith.constant 0 : index
    %c0_0 = arith.constant 0 : index
    %0 = vector.load %arg2[%c0, %c0_0] : memref<32x256xbf16, #tpu.memory_space<vmem>>, vector<32x256xbf16>
    %c0_1 = arith.constant 0 : index
    %c0_2 = arith.constant 0 : index
    %1 = vector.load %arg3[%c0_1, %c0_2] : memref<256x600xbf16, #tpu.memory_space<vmem>>, vector<256x600xbf16>
    %cst = arith.constant dense<0.000000e+00> : vector<32x600xf32>
    %2 = tpu.matmul %0, %1, %cst {dimension_numbers = #tpu.dot_dimension_numbers<[1], [0], [0], [1], [0, 0, 1, 1], [], []>} : vector<32x256xbf16>, vector<256x600xbf16>, vector<32x600xf32> -> vector<32x600xf32>
    %c0_3 = arith.constant 0 : index
    %c0_4 = arith.constant 0 : index
    %3 = vector.load %arg4[%c0_3, %c0_4] : memref<32x1xf32, #tpu.memory_space<vmem>>, vector<32x1xf32>
    %4 = vector.broadcast %3 : vector<32x1xf32> to vector<32x600xf32>
    %5 = arith.addf %2, %4 : vector<32x600xf32>
    %cst_5 = arith.constant 0.000000e+00 : f32
    %6 = vector.broadcast %cst_5 : f32 to vector<32x600xf32>
    %7 = arith.maximumf %5, %6 : vector<32x600xf32>
    %8 = arith.truncf %7 : vector<32x600xf32> to vector<32x600xbf16>
    %c0_6 = arith.constant 0 : index
    %c0_7 = arith.constant 0 : index
    %9 = vector.load %arg5[%c0_6, %c0_7] : memref<32x600xbf16, #tpu.memory_space<vmem>>, vector<32x600xbf16>
    tpu.vector_store %arg5[%c0_6, %c0_7], %8 {strides = array<i32>} : memref<32x600xbf16, #tpu.memory_space<vmem>>, vector<32x600xbf16>,
    return
  }
  func.func @transform_0(%arg0: i32, %arg1: i32) -> (i32, i32) {
    %c0_i32 = arith.constant 0 : i32
    %c0_i32_0 = arith.constant 0 : i32
    return %arg0, %c0_i32 : i32, i32
  }
  func.func @transform_1(%arg0: i32, %arg1: i32) -> (i32, i32) {
    %c0_i32 = arith.constant 0 : i32
    %c0_i32_0 = arith.constant 0 : i32
    return %c0_i32, %arg1 : i32, i32
  }
  func.func @transform_2(%arg0: i32, %arg1: i32) -> (i32, i32) {
    %c0_i32 = arith.constant 0 : i32
    %c0_i32_0 = arith.constant 0 : i32
    return %arg0, %c0_i32 : i32, i32
  }
  func.func @transform_3(%arg0: i32, %arg1: i32) -> (i32, i32) {
    %c0_i32 = arith.constant 0 : i32
    return %arg0, %arg1 : i32, i32
  }
}

module attributes {stable_mosaic.version = 11 : i64} {
  func.func @_matmul_kernel(%arg0: i32, %arg1: i32, %arg2: memref<8x3200xbf16, #tpu.memory_space<vmem>>, %arg3: memref<3200x128xbf16, #tpu.memory_space<vmem>>, %arg4: memref<1x128xf32, #tpu.memory_space<vmem>>, %arg5: memref<8x128xf32, #tpu.memory_space<vmem>>) attributes {dimension_semantics = [#tpu.dimension_semantics<parallel>, #tpu.dimension_semantics<parallel>], iteration_bounds = array<i64: 1, 1>, scalar_prefetch = 0 : i64, scratch_operands = 0 : i64, tpu.core_type = #tpu.core_type<tc>, window_params = [{transform_indices = @transform_0, window_bounds = array<i64: 8, 3200>}, {transform_indices = @transform_1, window_bounds = array<i64: 3200, 128>}, {transform_indices = @transform_2, window_bounds = array<i64: 1, 128>}, {transform_indices = @transform_3, window_bounds = array<i64: 8, 128>}]} {
    %c0 = arith.constant 0 : index
    %c0_0 = arith.constant 0 : index
    %0 = vector.load %arg2[%c0, %c0_0] : memref<8x3200xbf16, #tpu.memory_space<vmem>>, vector<8x3200xbf16>
    %c0_1 = arith.constant 0 : index
    %c0_2 = arith.constant 0 : index
    %1 = vector.load %arg3[%c0_1, %c0_2] : memref<3200x128xbf16, #tpu.memory_space<vmem>>, vector<3200x128xbf16>
    %cst = arith.constant dense<0.000000e+00> : vector<8x128xf32>
    %2 = tpu.matmul %0, %1, %cst {dimension_numbers = #tpu.dot_dimension_numbers<[1], [0], [0], [1], [0, 0, 1, 1], [], []>} : vector<8x3200xbf16>, vector<3200x128xbf16>, vector<8x128xf32> -> vector<8x128xf32>
    %c0_3 = arith.constant 0 : index
    %c0_4 = arith.constant 0 : index
    %3 = vector.load %arg4[%c0_3, %c0_4] : memref<1x128xf32, #tpu.memory_space<vmem>>, vector<1x128xf32>
    %4 = vector.broadcast %3 : vector<1x128xf32> to vector<8x128xf32>
    %5 = arith.addf %2, %4 : vector<8x128xf32>
    %c0_5 = arith.constant 0 : index
    %c0_6 = arith.constant 0 : index
    %6 = vector.load %arg5[%c0_5, %c0_6] : memref<8x128xf32, #tpu.memory_space<vmem>>, vector<8x128xf32>
    tpu.vector_store %arg5[%c0_5, %c0_6], %5 {strides = array<i32>} : memref<8x128xf32, #tpu.memory_space<vmem>>, vector<8x128xf32>,
    return
  }
  func.func @transform_0(%arg0: i32, %arg1: i32) -> (i32, i32) {
    %c0_i32 = arith.constant 0 : i32
    %c0_i32_0 = arith.constant 0 : i32
    return %arg0, %c0_i32 : i32, i32
  }
  func.func @transform_1(%arg0: i32, %arg1: i32) -> (i32, i32) {
    %c0_i32 = arith.constant 0 : i32
    %c0_i32_0 = arith.constant 0 : i32
    return %c0_i32, %arg1 : i32, i32
  }
  func.func @transform_2(%arg0: i32, %arg1: i32) -> (i32, i32) {
    %c0_i32 = arith.constant 0 : i32
    %c0_i32_0 = arith.constant 0 : i32
    return %c0_i32, %arg1 : i32, i32
  }
  func.func @transform_3(%arg0: i32, %arg1: i32) -> (i32, i32) {
    %c0_i32 = arith.constant 0 : i32
    return %arg0, %arg1 : i32, i32
  }
}

module attributes {stable_mosaic.version = 11 : i64} {
  func.func @_transformer_block_kernel(%arg0: memref<18x128xf32, #tpu.memory_space<vmem>>, %arg1: memref<1x128xf32, #tpu.memory_space<vmem>>, %arg2: memref<1x128xf32, #tpu.memory_space<vmem>>, %arg3: memref<128x384xbf16, #tpu.memory_space<vmem>>, %arg4: memref<1x128xf32, #tpu.memory_space<vmem>>, %arg5: memref<1x128xf32, #tpu.memory_space<vmem>>, %arg6: memref<128x512xbf16, #tpu.memory_space<vmem>>, %arg7: memref<1x512xf32, #tpu.memory_space<vmem>>, %arg8: memref<512x128xbf16, #tpu.memory_space<vmem>>, %arg9: memref<1x128xf32, #tpu.memory_space<vmem>>, %arg10: memref<18x128xf32, #tpu.memory_space<vmem>>, %arg11: memref<18x18xf32, #tpu.memory_space<vmem>>, %arg12: memref<18x128xf32, #tpu.memory_space<vmem>>) attributes {dimension_semantics = [], scalar_prefetch = 0 : i64, scratch_operands = 1 : i64, tpu.core_type = #tpu.core_type<tc>} {
    %c0 = arith.constant 0 : index
    %c0_0 = arith.constant 0 : index
    %0 = vector.load %arg0[%c0, %c0_0] : memref<18x128xf32, #tpu.memory_space<vmem>>, vector<18x128xf32>
    %c0_1 = arith.constant 0 : index
    %c0_2 = arith.constant 0 : index
    %1 = vector.load %arg1[%c0_1, %c0_2] : memref<1x128xf32, #tpu.memory_space<vmem>>, vector<1x128xf32>
    %c0_3 = arith.constant 0 : index
    %c0_4 = arith.constant 0 : index
    %2 = vector.load %arg2[%c0_3, %c0_4] : memref<1x128xf32, #tpu.memory_space<vmem>>, vector<1x128xf32>
    %cst = arith.constant dense<0.000000e+00> : vector<18xf32>
    %3 = vector.multi_reduction <add>, %0, %cst [1] : vector<18x128xf32> to vector<18xf32>
    %4 = vector.shape_cast %3 : vector<18xf32> to vector<18x1xf32>
    %cst_5 = arith.constant 1.280000e+02 : f32
    %5 = vector.broadcast %cst_5 : f32 to vector<18x1xf32>
    %6 = arith.divf %4, %5 : vector<18x1xf32>
    %7 = vector.broadcast %6 : vector<18x1xf32> to vector<18x128xf32>
    %8 = arith.subf %0, %7 : vector<18x128xf32>
    %9 = arith.mulf %8, %8 : vector<18x128xf32>
    %cst_6 = arith.constant dense<0.000000e+00> : vector<18xf32>
    %10 = vector.multi_reduction <add>, %9, %cst_6 [1] : vector<18x128xf32> to vector<18xf32>
    %11 = vector.shape_cast %10 : vector<18xf32> to vector<18x1xf32>
    %cst_7 = arith.constant 1.280000e+02 : f32
    %12 = vector.broadcast %cst_7 : f32 to vector<18x1xf32>
    %13 = arith.divf %11, %12 : vector<18x1xf32>
    %14 = vector.broadcast %6 : vector<18x1xf32> to vector<18x128xf32>
    %15 = arith.subf %0, %14 : vector<18x128xf32>
    %cst_8 = arith.constant 9.99999974E-6 : f32
    %16 = vector.broadcast %cst_8 : f32 to vector<18x1xf32>
    %17 = arith.addf %13, %16 : vector<18x1xf32>
    %18 = math.rsqrt %17 : vector<18x1xf32>
    %19 = vector.broadcast %18 : vector<18x1xf32> to vector<18x128xf32>
    %20 = arith.mulf %15, %19 : vector<18x128xf32>
    %21 = vector.broadcast %1 : vector<1x128xf32> to vector<18x128xf32>
    %22 = arith.mulf %20, %21 : vector<18x128xf32>
    %23 = vector.broadcast %2 : vector<1x128xf32> to vector<18x128xf32>
    %24 = arith.addf %22, %23 : vector<18x128xf32>
    %25 = arith.truncf %24 : vector<18x128xf32> to vector<18x128xbf16>
    %c0_9 = arith.constant 0 : index
    %c0_10 = arith.constant 0 : index
    %26 = vector.load %arg3[%c0_9, %c0_10] : memref<128x384xbf16, #tpu.memory_space<vmem>>, vector<128x384xbf16>
    %cst_11 = arith.constant dense<0.000000e+00> : vector<18x384xf32>
    %27 = tpu.matmul %25, %26, %cst_11 {dimension_numbers = #tpu.dot_dimension_numbers<[1], [0], [0], [1], [0, 0, 1, 1], [], []>} : vector<18x128xbf16>, vector<128x384xbf16>, vector<18x384xf32> -> vector<18x384xf32>
    %28 = vector.extract_strided_slice %27 {offsets = [0, 0], sizes = [18, 128], strides = [1, 1]} : vector<18x384xf32> to vector<18x128xf32>
    %29 = vector.extract_strided_slice %27 {offsets = [0, 128], sizes = [18, 256], strides = [1, 1]} : vector<18x384xf32> to vector<18x256xf32>
    %30 = tpu.iota {dimensions = array<i32: 0>} : vector<18x18xi32>
    %31 = tpu.iota {dimensions = array<i32: 1>} : vector<18x18xi32>
    %32 = arith.cmpi slt, %30, %31 : vector<18x18xi32>
    %c387_i32 = arith.constant 387 : i32
    %33 = vector.broadcast %c387_i32 : i32 to vector<18x18xi32>
    %34 = arith.addi %31, %33 : vector<18x18xi32>
    %35 = arith.cmpi sgt, %30, %34 : vector<18x18xi32>
    %36 = arith.ori %32, %35 : vector<18x18xi1>
    %cst_12 = arith.constant 0.000000e+00 : f32
    %37 = vector.broadcast %cst_12 : f32 to vector<18x18xf32>
    %38 = vector.extract_strided_slice %28 {offsets = [0, 0], sizes = [18, 16], strides = [1, 1]} : vector<18x128xf32> to vector<18x16xf32>
    %cst_13 = arith.constant 2.500000e-01 : f32
    %39 = vector.broadcast %cst_13 : f32 to vector<18x16xf32>
    %40 = arith.mulf %38, %39 : vector<18x16xf32>
    %41 = vector.extract_strided_slice %29 {offsets = [0, 0], sizes = [18, 16], strides = [1, 1]} : vector<18x256xf32> to vector<18x16xf32>
    %42 = vector.extract_strided_slice %29 {offsets = [0, 16], sizes = [18, 16], strides = [1, 1]} : vector<18x256xf32> to vector<18x16xf32>
    %43 = tpu.transpose %41, [1, 0] : vector<18x16xf32> -> vector<16x18xf32>
    %cst_14 = arith.constant dense<0.000000e+00> : vector<18x18xf32>
    %44 = tpu.matmul %40, %43, %cst_14 {dimension_numbers = #tpu.dot_dimension_numbers<[1], [0], [0], [1], [0, 0, 1, 1], [], []>} : vector<18x16xf32>, vector<16x18xf32>, vector<18x18xf32> -> vector<18x18xf32>
    %cst_15 = arith.constant -1.000000e+30 : f32
    %45 = vector.broadcast %cst_15 : f32 to vector<18x18xf32>
    %46 = arith.select %36, %45, %44 : vector<18x18xi1>, vector<18x18xf32>
    %cst_16 = arith.constant dense<0xFF800000> : vector<18xf32>
    %47 = vector.multi_reduction <maximumf>, %46, %cst_16 [1] : vector<18x18xf32> to vector<18xf32>
    %48 = vector.shape_cast %47 : vector<18xf32> to vector<18x1xf32>
    %49 = vector.broadcast %48 : vector<18x1xf32> to vector<18x18xf32>
    %50 = arith.subf %46, %49 : vector<18x18xf32>
    %51 = math.exp %50 : vector<18x18xf32>
    %cst_17 = arith.constant dense<0.000000e+00> : vector<18xf32>
    %52 = vector.multi_reduction <add>, %51, %cst_17 [1] : vector<18x18xf32> to vector<18xf32>
    %53 = vector.shape_cast %52 : vector<18xf32> to vector<18x1xf32>
    %54 = vector.broadcast %53 : vector<18x1xf32> to vector<18x18xf32>
    %55 = arith.divf %51, %54 : vector<18x18xf32>
    %56 = arith.addf %37, %55 : vector<18x18xf32>
    %cst_18 = arith.constant dense<0.000000e+00> : vector<18x16xf32>
    %57 = tpu.matmul %55, %42, %cst_18 {dimension_numbers = #tpu.dot_dimension_numbers<[1], [0], [0], [1], [0, 0, 1, 1], [], []>} : vector<18x18xf32>, vector<18x16xf32>, vector<18x16xf32> -> vector<18x16xf32>
    %c0_19 = arith.constant 0 : index
    %c0_20 = arith.constant 0 : index
    %58 = vector.load %arg12[%c0_19, %c0_20] : memref<18x128xf32, #tpu.memory_space<vmem>>, vector<18x16xf32>
    tpu.vector_store %arg12[%c0_19, %c0_20], %57 {strides = array<i32>} : memref<18x128xf32, #tpu.memory_space<vmem>>, vector<18x16xf32>,
    %59 = vector.extract_strided_slice %28 {offsets = [0, 16], sizes = [18, 16], strides = [1, 1]} : vector<18x128xf32> to vector<18x16xf32>
    %cst_21 = arith.constant 2.500000e-01 : f32
    %60 = vector.broadcast %cst_21 : f32 to vector<18x16xf32>
    %61 = arith.mulf %59, %60 : vector<18x16xf32>
    %62 = vector.extract_strided_slice %29 {offsets = [0, 32], sizes = [18, 16], strides = [1, 1]} : vector<18x256xf32> to vector<18x16xf32>
    %63 = vector.extract_strided_slice %29 {offsets = [0, 48], sizes = [18, 16], strides = [1, 1]} : vector<18x256xf32> to vector<18x16xf32>
    %64 = tpu.transpose %62, [1, 0] : vector<18x16xf32> -> vector<16x18xf32>
    %cst_22 = arith.constant dense<0.000000e+00> : vector<18x18xf32>
    %65 = tpu.matmul %61, %64, %cst_22 {dimension_numbers = #tpu.dot_dimension_numbers<[1], [0], [0], [1], [0, 0, 1, 1], [], []>} : vector<18x16xf32>, vector<16x18xf32>, vector<18x18xf32> -> vector<18x18xf32>
    %cst_23 = arith.constant -1.000000e+30 : f32
    %66 = vector.broadcast %cst_23 : f32 to vector<18x18xf32>
    %67 = arith.select %36, %66, %65 : vector<18x18xi1>, vector<18x18xf32>
    %cst_24 = arith.constant dense<0xFF800000> : vector<18xf32>
    %68 = vector.multi_reduction <maximumf>, %67, %cst_24 [1] : vector<18x18xf32> to vector<18xf32>
    %69 = vector.shape_cast %68 : vector<18xf32> to vector<18x1xf32>
    %70 = vector.broadcast %69 : vector<18x1xf32> to vector<18x18xf32>
    %71 = arith.subf %67, %70 : vector<18x18xf32>
    %72 = math.exp %71 : vector<18x18xf32>
    %cst_25 = arith.constant dense<0.000000e+00> : vector<18xf32>
    %73 = vector.multi_reduction <add>, %72, %cst_25 [1] : vector<18x18xf32> to vector<18xf32>
    %74 = vector.shape_cast %73 : vector<18xf32> to vector<18x1xf32>
    %75 = vector.broadcast %74 : vector<18x1xf32> to vector<18x18xf32>
    %76 = arith.divf %72, %75 : vector<18x18xf32>
    %77 = arith.addf %56, %76 : vector<18x18xf32>
    %cst_26 = arith.constant dense<0.000000e+00> : vector<18x16xf32>
    %78 = tpu.matmul %76, %63, %cst_26 {dimension_numbers = #tpu.dot_dimension_numbers<[1], [0], [0], [1], [0, 0, 1, 1], [], []>} : vector<18x18xf32>, vector<18x16xf32>, vector<18x16xf32> -> vector<18x16xf32>
    %c0_27 = arith.constant 0 : index
    %c16 = arith.constant 16 : index
    %79 = vector.load %arg12[%c0_27, %c16] : memref<18x128xf32, #tpu.memory_space<vmem>>, vector<18x16xf32>
    tpu.vector_store %arg12[%c0_27, %c16], %78 {strides = array<i32>} : memref<18x128xf32, #tpu.memory_space<vmem>>, vector<18x16xf32>,
    %80 = vector.extract_strided_slice %28 {offsets = [0, 32], sizes = [18, 16], strides = [1, 1]} : vector<18x128xf32> to vector<18x16xf32>
    %cst_28 = arith.constant 2.500000e-01 : f32
    %81 = vector.broadcast %cst_28 : f32 to vector<18x16xf32>
    %82 = arith.mulf %80, %81 : vector<18x16xf32>
    %83 = vector.extract_strided_slice %29 {offsets = [0, 64], sizes = [18, 16], strides = [1, 1]} : vector<18x256xf32> to vector<18x16xf32>
    %84 = vector.extract_strided_slice %29 {offsets = [0, 80], sizes = [18, 16], strides = [1, 1]} : vector<18x256xf32> to vector<18x16xf32>
    %85 = tpu.transpose %83, [1, 0] : vector<18x16xf32> -> vector<16x18xf32>
    %cst_29 = arith.constant dense<0.000000e+00> : vector<18x18xf32>
    %86 = tpu.matmul %82, %85, %cst_29 {dimension_numbers = #tpu.dot_dimension_numbers<[1], [0], [0], [1], [0, 0, 1, 1], [], []>} : vector<18x16xf32>, vector<16x18xf32>, vector<18x18xf32> -> vector<18x18xf32>
    %cst_30 = arith.constant -1.000000e+30 : f32
    %87 = vector.broadcast %cst_30 : f32 to vector<18x18xf32>
    %88 = arith.select %36, %87, %86 : vector<18x18xi1>, vector<18x18xf32>
    %cst_31 = arith.constant dense<0xFF800000> : vector<18xf32>
    %89 = vector.multi_reduction <maximumf>, %88, %cst_31 [1] : vector<18x18xf32> to vector<18xf32>
    %90 = vector.shape_cast %89 : vector<18xf32> to vector<18x1xf32>
    %91 = vector.broadcast %90 : vector<18x1xf32> to vector<18x18xf32>
    %92 = arith.subf %88, %91 : vector<18x18xf32>
    %93 = math.exp %92 : vector<18x18xf32>
    %cst_32 = arith.constant dense<0.000000e+00> : vector<18xf32>
    %94 = vector.multi_reduction <add>, %93, %cst_32 [1] : vector<18x18xf32> to vector<18xf32>
    %95 = vector.shape_cast %94 : vector<18xf32> to vector<18x1xf32>
    %96 = vector.broadcast %95 : vector<18x1xf32> to vector<18x18xf32>
    %97 = arith.divf %93, %96 : vector<18x18xf32>
    %98 = arith.addf %77, %97 : vector<18x18xf32>
    %cst_33 = arith.constant dense<0.000000e+00> : vector<18x16xf32>
    %99 = tpu.matmul %97, %84, %cst_33 {dimension_numbers = #tpu.dot_dimension_numbers<[1], [0], [0], [1], [0, 0, 1, 1], [], []>} : vector<18x18xf32>, vector<18x16xf32>, vector<18x16xf32> -> vector<18x16xf32>
    %c0_34 = arith.constant 0 : index
    %c32 = arith.constant 32 : index
    %100 = vector.load %arg12[%c0_34, %c32] : memref<18x128xf32, #tpu.memory_space<vmem>>, vector<18x16xf32>
    tpu.vector_store %arg12[%c0_34, %c32], %99 {strides = array<i32>} : memref<18x128xf32, #tpu.memory_space<vmem>>, vector<18x16xf32>,
    %101 = vector.extract_strided_slice %28 {offsets = [0, 48], sizes = [18, 16], strides = [1, 1]} : vector<18x128xf32> to vector<18x16xf32>
    %cst_35 = arith.constant 2.500000e-01 : f32
    %102 = vector.broadcast %cst_35 : f32 to vector<18x16xf32>
    %103 = arith.mulf %101, %102 : vector<18x16xf32>
    %104 = vector.extract_strided_slice %29 {offsets = [0, 96], sizes = [18, 16], strides = [1, 1]} : vector<18x256xf32> to vector<18x16xf32>
    %105 = vector.extract_strided_slice %29 {offsets = [0, 112], sizes = [18, 16], strides = [1, 1]} : vector<18x256xf32> to vector<18x16xf32>
    %106 = tpu.transpose %104, [1, 0] : vector<18x16xf32> -> vector<16x18xf32>
    %cst_36 = arith.constant dense<0.000000e+00> : vector<18x18xf32>
    %107 = tpu.matmul %103, %106, %cst_36 {dimension_numbers = #tpu.dot_dimension_numbers<[1], [0], [0], [1], [0, 0, 1, 1], [], []>} : vector<18x16xf32>, vector<16x18xf32>, vector<18x18xf32> -> vector<18x18xf32>
    %cst_37 = arith.constant -1.000000e+30 : f32
    %108 = vector.broadcast %cst_37 : f32 to vector<18x18xf32>
    %109 = arith.select %36, %108, %107 : vector<18x18xi1>, vector<18x18xf32>
    %cst_38 = arith.constant dense<0xFF800000> : vector<18xf32>
    %110 = vector.multi_reduction <maximumf>, %109, %cst_38 [1] : vector<18x18xf32> to vector<18xf32>
    %111 = vector.shape_cast %110 : vector<18xf32> to vector<18x1xf32>
    %112 = vector.broadcast %111 : vector<18x1xf32> to vector<18x18xf32>
    %113 = arith.subf %109, %112 : vector<18x18xf32>
    %114 = math.exp %113 : vector<18x18xf32>
    %cst_39 = arith.constant dense<0.000000e+00> : vector<18xf32>
    %115 = vector.multi_reduction <add>, %114, %cst_39 [1] : vector<18x18xf32> to vector<18xf32>
    %116 = vector.shape_cast %115 : vector<18xf32> to vector<18x1xf32>
    %117 = vector.broadcast %116 : vector<18x1xf32> to vector<18x18xf32>
    %118 = arith.divf %114, %117 : vector<18x18xf32>
    %119 = arith.addf %98, %118 : vector<18x18xf32>
    %cst_40 = arith.constant dense<0.000000e+00> : vector<18x16xf32>
    %120 = tpu.matmul %118, %105, %cst_40 {dimension_numbers = #tpu.dot_dimension_numbers<[1], [0], [0], [1], [0, 0, 1, 1], [], []>} : vector<18x18xf32>, vector<18x16xf32>, vector<18x16xf32> -> vector<18x16xf32>
    %c0_41 = arith.constant 0 : index
    %c48 = arith.constant 48 : index
    %121 = vector.load %arg12[%c0_41, %c48] : memref<18x128xf32, #tpu.memory_space<vmem>>, vector<18x16xf32>
    tpu.vector_store %arg12[%c0_41, %c48], %120 {strides = array<i32>} : memref<18x128xf32, #tpu.memory_space<vmem>>, vector<18x16xf32>,
    %122 = vector.extract_strided_slice %28 {offsets = [0, 64], sizes = [18, 16], strides = [1, 1]} : vector<18x128xf32> to vector<18x16xf32>
    %cst_42 = arith.constant 2.500000e-01 : f32
    %123 = vector.broadcast %cst_42 : f32 to vector<18x16xf32>
    %124 = arith.mulf %122, %123 : vector<18x16xf32>
    %125 = vector.extract_strided_slice %29 {offsets = [0, 128], sizes = [18, 16], strides = [1, 1]} : vector<18x256xf32> to vector<18x16xf32>
    %126 = vector.extract_strided_slice %29 {offsets = [0, 144], sizes = [18, 16], strides = [1, 1]} : vector<18x256xf32> to vector<18x16xf32>
    %127 = tpu.transpose %125, [1, 0] : vector<18x16xf32> -> vector<16x18xf32>
    %cst_43 = arith.constant dense<0.000000e+00> : vector<18x18xf32>
    %128 = tpu.matmul %124, %127, %cst_43 {dimension_numbers = #tpu.dot_dimension_numbers<[1], [0], [0], [1], [0, 0, 1, 1], [], []>} : vector<18x16xf32>, vector<16x18xf32>, vector<18x18xf32> -> vector<18x18xf32>
    %cst_44 = arith.constant -1.000000e+30 : f32
    %129 = vector.broadcast %cst_44 : f32 to vector<18x18xf32>
    %130 = arith.select %36, %129, %128 : vector<18x18xi1>, vector<18x18xf32>
    %cst_45 = arith.constant dense<0xFF800000> : vector<18xf32>
    %131 = vector.multi_reduction <maximumf>, %130, %cst_45 [1] : vector<18x18xf32> to vector<18xf32>
    %132 = vector.shape_cast %131 : vector<18xf32> to vector<18x1xf32>
    %133 = vector.broadcast %132 : vector<18x1xf32> to vector<18x18xf32>
    %134 = arith.subf %130, %133 : vector<18x18xf32>
    %135 = math.exp %134 : vector<18x18xf32>
    %cst_46 = arith.constant dense<0.000000e+00> : vector<18xf32>
    %136 = vector.multi_reduction <add>, %135, %cst_46 [1] : vector<18x18xf32> to vector<18xf32>
    %137 = vector.shape_cast %136 : vector<18xf32> to vector<18x1xf32>
    %138 = vector.broadcast %137 : vector<18x1xf32> to vector<18x18xf32>
    %139 = arith.divf %135, %138 : vector<18x18xf32>
    %140 = arith.addf %119, %139 : vector<18x18xf32>
    %cst_47 = arith.constant dense<0.000000e+00> : vector<18x16xf32>
    %141 = tpu.matmul %139, %126, %cst_47 {dimension_numbers = #tpu.dot_dimension_numbers<[1], [0], [0], [1], [0, 0, 1, 1], [], []>} : vector<18x18xf32>, vector<18x16xf32>, vector<18x16xf32> -> vector<18x16xf32>
    %c0_48 = arith.constant 0 : index
    %c64 = arith.constant 64 : index
    %142 = vector.load %arg12[%c0_48, %c64] : memref<18x128xf32, #tpu.memory_space<vmem>>, vector<18x16xf32>
    tpu.vector_store %arg12[%c0_48, %c64], %141 {strides = array<i32>} : memref<18x128xf32, #tpu.memory_space<vmem>>, vector<18x16xf32>,
    %143 = vector.extract_strided_slice %28 {offsets = [0, 80], sizes = [18, 16], strides = [1, 1]} : vector<18x128xf32> to vector<18x16xf32>
    %cst_49 = arith.constant 2.500000e-01 : f32
    %144 = vector.broadcast %cst_49 : f32 to vector<18x16xf32>
    %145 = arith.mulf %143, %144 : vector<18x16xf32>
    %146 = vector.extract_strided_slice %29 {offsets = [0, 160], sizes = [18, 16], strides = [1, 1]} : vector<18x256xf32> to vector<18x16xf32>
    %147 = vector.extract_strided_slice %29 {offsets = [0, 176], sizes = [18, 16], strides = [1, 1]} : vector<18x256xf32> to vector<18x16xf32>
    %148 = tpu.transpose %146, [1, 0] : vector<18x16xf32> -> vector<16x18xf32>
    %cst_50 = arith.constant dense<0.000000e+00> : vector<18x18xf32>
    %149 = tpu.matmul %145, %148, %cst_50 {dimension_numbers = #tpu.dot_dimension_numbers<[1], [0], [0], [1], [0, 0, 1, 1], [], []>} : vector<18x16xf32>, vector<16x18xf32>, vector<18x18xf32> -> vector<18x18xf32>
    %cst_51 = arith.constant -1.000000e+30 : f32
    %150 = vector.broadcast %cst_51 : f32 to vector<18x18xf32>
    %151 = arith.select %36, %150, %149 : vector<18x18xi1>, vector<18x18xf32>
    %cst_52 = arith.constant dense<0xFF800000> : vector<18xf32>
    %152 = vector.multi_reduction <maximumf>, %151, %cst_52 [1] : vector<18x18xf32> to vector<18xf32>
    %153 = vector.shape_cast %152 : vector<18xf32> to vector<18x1xf32>
    %154 = vector.broadcast %153 : vector<18x1xf32> to vector<18x18xf32>
    %155 = arith.subf %151, %154 : vector<18x18xf32>
    %156 = math.exp %155 : vector<18x18xf32>
    %cst_53 = arith.constant dense<0.000000e+00> : vector<18xf32>
    %157 = vector.multi_reduction <add>, %156, %cst_53 [1] : vector<18x18xf32> to vector<18xf32>
    %158 = vector.shape_cast %157 : vector<18xf32> to vector<18x1xf32>
    %159 = vector.broadcast %158 : vector<18x1xf32> to vector<18x18xf32>
    %160 = arith.divf %156, %159 : vector<18x18xf32>
    %161 = arith.addf %140, %160 : vector<18x18xf32>
    %cst_54 = arith.constant dense<0.000000e+00> : vector<18x16xf32>
    %162 = tpu.matmul %160, %147, %cst_54 {dimension_numbers = #tpu.dot_dimension_numbers<[1], [0], [0], [1], [0, 0, 1, 1], [], []>} : vector<18x18xf32>, vector<18x16xf32>, vector<18x16xf32> -> vector<18x16xf32>
    %c0_55 = arith.constant 0 : index
    %c80 = arith.constant 80 : index
    %163 = vector.load %arg12[%c0_55, %c80] : memref<18x128xf32, #tpu.memory_space<vmem>>, vector<18x16xf32>
    tpu.vector_store %arg12[%c0_55, %c80], %162 {strides = array<i32>} : memref<18x128xf32, #tpu.memory_space<vmem>>, vector<18x16xf32>,
    %164 = vector.extract_strided_slice %28 {offsets = [0, 96], sizes = [18, 16], strides = [1, 1]} : vector<18x128xf32> to vector<18x16xf32>
    %cst_56 = arith.constant 2.500000e-01 : f32
    %165 = vector.broadcast %cst_56 : f32 to vector<18x16xf32>
    %166 = arith.mulf %164, %165 : vector<18x16xf32>
    %167 = vector.extract_strided_slice %29 {offsets = [0, 192], sizes = [18, 16], strides = [1, 1]} : vector<18x256xf32> to vector<18x16xf32>
    %168 = vector.extract_strided_slice %29 {offsets = [0, 208], sizes = [18, 16], strides = [1, 1]} : vector<18x256xf32> to vector<18x16xf32>
    %169 = tpu.transpose %167, [1, 0] : vector<18x16xf32> -> vector<16x18xf32>
    %cst_57 = arith.constant dense<0.000000e+00> : vector<18x18xf32>
    %170 = tpu.matmul %166, %169, %cst_57 {dimension_numbers = #tpu.dot_dimension_numbers<[1], [0], [0], [1], [0, 0, 1, 1], [], []>} : vector<18x16xf32>, vector<16x18xf32>, vector<18x18xf32> -> vector<18x18xf32>
    %cst_58 = arith.constant -1.000000e+30 : f32
    %171 = vector.broadcast %cst_58 : f32 to vector<18x18xf32>
    %172 = arith.select %36, %171, %170 : vector<18x18xi1>, vector<18x18xf32>
    %cst_59 = arith.constant dense<0xFF800000> : vector<18xf32>
    %173 = vector.multi_reduction <maximumf>, %172, %cst_59 [1] : vector<18x18xf32> to vector<18xf32>
    %174 = vector.shape_cast %173 : vector<18xf32> to vector<18x1xf32>
    %175 = vector.broadcast %174 : vector<18x1xf32> to vector<18x18xf32>
    %176 = arith.subf %172, %175 : vector<18x18xf32>
    %177 = math.exp %176 : vector<18x18xf32>
    %cst_60 = arith.constant dense<0.000000e+00> : vector<18xf32>
    %178 = vector.multi_reduction <add>, %177, %cst_60 [1] : vector<18x18xf32> to vector<18xf32>
    %179 = vector.shape_cast %178 : vector<18xf32> to vector<18x1xf32>
    %180 = vector.broadcast %179 : vector<18x1xf32> to vector<18x18xf32>
    %181 = arith.divf %177, %180 : vector<18x18xf32>
    %182 = arith.addf %161, %181 : vector<18x18xf32>
    %cst_61 = arith.constant dense<0.000000e+00> : vector<18x16xf32>
    %183 = tpu.matmul %181, %168, %cst_61 {dimension_numbers = #tpu.dot_dimension_numbers<[1], [0], [0], [1], [0, 0, 1, 1], [], []>} : vector<18x18xf32>, vector<18x16xf32>, vector<18x16xf32> -> vector<18x16xf32>
    %c0_62 = arith.constant 0 : index
    %c96 = arith.constant 96 : index
    %184 = vector.load %arg12[%c0_62, %c96] : memref<18x128xf32, #tpu.memory_space<vmem>>, vector<18x16xf32>
    tpu.vector_store %arg12[%c0_62, %c96], %183 {strides = array<i32>} : memref<18x128xf32, #tpu.memory_space<vmem>>, vector<18x16xf32>,
    %185 = vector.extract_strided_slice %28 {offsets = [0, 112], sizes = [18, 16], strides = [1, 1]} : vector<18x128xf32> to vector<18x16xf32>
    %cst_63 = arith.constant 2.500000e-01 : f32
    %186 = vector.broadcast %cst_63 : f32 to vector<18x16xf32>
    %187 = arith.mulf %185, %186 : vector<18x16xf32>
    %188 = vector.extract_strided_slice %29 {offsets = [0, 224], sizes = [18, 16], strides = [1, 1]} : vector<18x256xf32> to vector<18x16xf32>
    %189 = vector.extract_strided_slice %29 {offsets = [0, 240], sizes = [18, 16], strides = [1, 1]} : vector<18x256xf32> to vector<18x16xf32>
    %190 = tpu.transpose %188, [1, 0] : vector<18x16xf32> -> vector<16x18xf32>
    %cst_64 = arith.constant dense<0.000000e+00> : vector<18x18xf32>
    %191 = tpu.matmul %187, %190, %cst_64 {dimension_numbers = #tpu.dot_dimension_numbers<[1], [0], [0], [1], [0, 0, 1, 1], [], []>} : vector<18x16xf32>, vector<16x18xf32>, vector<18x18xf32> -> vector<18x18xf32>
    %cst_65 = arith.constant -1.000000e+30 : f32
    %192 = vector.broadcast %cst_65 : f32 to vector<18x18xf32>
    %193 = arith.select %36, %192, %191 : vector<18x18xi1>, vector<18x18xf32>
    %cst_66 = arith.constant dense<0xFF800000> : vector<18xf32>
    %194 = vector.multi_reduction <maximumf>, %193, %cst_66 [1] : vector<18x18xf32> to vector<18xf32>
    %195 = vector.shape_cast %194 : vector<18xf32> to vector<18x1xf32>
    %196 = vector.broadcast %195 : vector<18x1xf32> to vector<18x18xf32>
    %197 = arith.subf %193, %196 : vector<18x18xf32>
    %198 = math.exp %197 : vector<18x18xf32>
    %cst_67 = arith.constant dense<0.000000e+00> : vector<18xf32>
    %199 = vector.multi_reduction <add>, %198, %cst_67 [1] : vector<18x18xf32> to vector<18xf32>
    %200 = vector.shape_cast %199 : vector<18xf32> to vector<18x1xf32>
    %201 = vector.broadcast %200 : vector<18x1xf32> to vector<18x18xf32>
    %202 = arith.divf %198, %201 : vector<18x18xf32>
    %203 = arith.addf %182, %202 : vector<18x18xf32>
    %cst_68 = arith.constant dense<0.000000e+00> : vector<18x16xf32>
    %204 = tpu.matmul %202, %189, %cst_68 {dimension_numbers = #tpu.dot_dimension_numbers<[1], [0], [0], [1], [0, 0, 1, 1], [], []>} : vector<18x18xf32>, vector<18x16xf32>, vector<18x16xf32> -> vector<18x16xf32>
    %c0_69 = arith.constant 0 : index
    %c112 = arith.constant 112 : index
    %205 = vector.load %arg12[%c0_69, %c112] : memref<18x128xf32, #tpu.memory_space<vmem>>, vector<18x16xf32>
    tpu.vector_store %arg12[%c0_69, %c112], %204 {strides = array<i32>} : memref<18x128xf32, #tpu.memory_space<vmem>>, vector<18x16xf32>,
    %cst_70 = arith.constant 1.250000e-01 : f32
    %206 = vector.broadcast %cst_70 : f32 to vector<18x18xf32>
    %207 = arith.mulf %203, %206 : vector<18x18xf32>
    %c0_71 = arith.constant 0 : index
    %c0_72 = arith.constant 0 : index
    %208 = vector.load %arg11[%c0_71, %c0_72] : memref<18x18xf32, #tpu.memory_space<vmem>>, vector<18x18xf32>
    tpu.vector_store %arg11[%c0_71, %c0_72], %207 {strides = array<i32>} : memref<18x18xf32, #tpu.memory_space<vmem>>, vector<18x18xf32>,
    %c0_73 = arith.constant 0 : index
    %c0_74 = arith.constant 0 : index
    %209 = vector.load %arg12[%c0_73, %c0_74] : memref<18x128xf32, #tpu.memory_space<vmem>>, vector<18x128xf32>
    %210 = arith.addf %209, %0 : vector<18x128xf32>
    %c0_75 = arith.constant 0 : index
    %c0_76 = arith.constant 0 : index
    %211 = vector.load %arg4[%c0_75, %c0_76] : memref<1x128xf32, #tpu.memory_space<vmem>>, vector<1x128xf32>
    %c0_77 = arith.constant 0 : index
    %c0_78 = arith.constant 0 : index
    %212 = vector.load %arg5[%c0_77, %c0_78] : memref<1x128xf32, #tpu.memory_space<vmem>>, vector<1x128xf32>
    %cst_79 = arith.constant dense<0.000000e+00> : vector<18xf32>
    %213 = vector.multi_reduction <add>, %210, %cst_79 [1] : vector<18x128xf32> to vector<18xf32>
    %214 = vector.shape_cast %213 : vector<18xf32> to vector<18x1xf32>
    %cst_80 = arith.constant 1.280000e+02 : f32
    %215 = vector.broadcast %cst_80 : f32 to vector<18x1xf32>
    %216 = arith.divf %214, %215 : vector<18x1xf32>
    %217 = vector.broadcast %216 : vector<18x1xf32> to vector<18x128xf32>
    %218 = arith.subf %210, %217 : vector<18x128xf32>
    %219 = arith.mulf %218, %218 : vector<18x128xf32>
    %cst_81 = arith.constant dense<0.000000e+00> : vector<18xf32>
    %220 = vector.multi_reduction <add>, %219, %cst_81 [1] : vector<18x128xf32> to vector<18xf32>
    %221 = vector.shape_cast %220 : vector<18xf32> to vector<18x1xf32>
    %cst_82 = arith.constant 1.280000e+02 : f32
    %222 = vector.broadcast %cst_82 : f32 to vector<18x1xf32>
    %223 = arith.divf %221, %222 : vector<18x1xf32>
    %224 = vector.broadcast %216 : vector<18x1xf32> to vector<18x128xf32>
    %225 = arith.subf %210, %224 : vector<18x128xf32>
    %cst_83 = arith.constant 9.99999974E-6 : f32
    %226 = vector.broadcast %cst_83 : f32 to vector<18x1xf32>
    %227 = arith.addf %223, %226 : vector<18x1xf32>
    %228 = math.rsqrt %227 : vector<18x1xf32>
    %229 = vector.broadcast %228 : vector<18x1xf32> to vector<18x128xf32>
    %230 = arith.mulf %225, %229 : vector<18x128xf32>
    %231 = vector.broadcast %211 : vector<1x128xf32> to vector<18x128xf32>
    %232 = arith.mulf %230, %231 : vector<18x128xf32>
    %233 = vector.broadcast %212 : vector<1x128xf32> to vector<18x128xf32>
    %234 = arith.addf %232, %233 : vector<18x128xf32>
    %235 = arith.truncf %234 : vector<18x128xf32> to vector<18x128xbf16>
    %c0_84 = arith.constant 0 : index
    %c0_85 = arith.constant 0 : index
    %236 = vector.load %arg6[%c0_84, %c0_85] : memref<128x512xbf16, #tpu.memory_space<vmem>>, vector<128x512xbf16>
    %cst_86 = arith.constant dense<0.000000e+00> : vector<18x512xf32>
    %237 = tpu.matmul %235, %236, %cst_86 {dimension_numbers = #tpu.dot_dimension_numbers<[1], [0], [0], [1], [0, 0, 1, 1], [], []>} : vector<18x128xbf16>, vector<128x512xbf16>, vector<18x512xf32> -> vector<18x512xf32>
    %c0_87 = arith.constant 0 : index
    %c0_88 = arith.constant 0 : index
    %238 = vector.load %arg7[%c0_87, %c0_88] : memref<1x512xf32, #tpu.memory_space<vmem>>, vector<1x512xf32>
    %239 = vector.broadcast %238 : vector<1x512xf32> to vector<18x512xf32>
    %240 = arith.addf %237, %239 : vector<18x512xf32>
    %cst_89 = arith.constant 0.000000e+00 : f32
    %241 = vector.broadcast %cst_89 : f32 to vector<18x512xf32>
    %242 = arith.maximumf %240, %241 : vector<18x512xf32>
    %243 = arith.truncf %242 : vector<18x512xf32> to vector<18x512xbf16>
    %c0_90 = arith.constant 0 : index
    %c0_91 = arith.constant 0 : index
    %244 = vector.load %arg8[%c0_90, %c0_91] : memref<512x128xbf16, #tpu.memory_space<vmem>>, vector<512x128xbf16>
    %cst_92 = arith.constant dense<0.000000e+00> : vector<18x128xf32>
    %245 = tpu.matmul %243, %244, %cst_92 {dimension_numbers = #tpu.dot_dimension_numbers<[1], [0], [0], [1], [0, 0, 1, 1], [], []>} : vector<18x512xbf16>, vector<512x128xbf16>, vector<18x128xf32> -> vector<18x128xf32>
    %c0_93 = arith.constant 0 : index
    %c0_94 = arith.constant 0 : index
    %246 = vector.load %arg9[%c0_93, %c0_94] : memref<1x128xf32, #tpu.memory_space<vmem>>, vector<1x128xf32>
    %247 = vector.broadcast %246 : vector<1x128xf32> to vector<18x128xf32>
    %248 = arith.addf %245, %247 : vector<18x128xf32>
    %249 = arith.addf %248, %210 : vector<18x128xf32>
    %c0_95 = arith.constant 0 : index
    %c0_96 = arith.constant 0 : index
    %250 = vector.load %arg10[%c0_95, %c0_96] : memref<18x128xf32, #tpu.memory_space<vmem>>, vector<18x128xf32>
    tpu.vector_store %arg10[%c0_95, %c0_96], %249 {strides = array<i32>} : memref<18x128xf32, #tpu.memory_space<vmem>>, vector<18x128xf32>,
    return
  }
}

module attributes {stable_mosaic.version = 11 : i64} {
  func.func @_matmul_kernel(%arg0: i32, %arg1: i32, %arg2: memref<16x128xbf16, #tpu.memory_space<vmem>>, %arg3: memref<128x512xbf16, #tpu.memory_space<vmem>>, %arg4: memref<1x512xf32, #tpu.memory_space<vmem>>, %arg5: memref<16x512xf32, #tpu.memory_space<vmem>>) attributes {dimension_semantics = [#tpu.dimension_semantics<parallel>, #tpu.dimension_semantics<parallel>], iteration_bounds = array<i64: 1, 13>, scalar_prefetch = 0 : i64, scratch_operands = 0 : i64, tpu.core_type = #tpu.core_type<tc>, window_params = [{transform_indices = @transform_0, window_bounds = array<i64: 16, 128>}, {transform_indices = @transform_1, window_bounds = array<i64: 128, 512>}, {transform_indices = @transform_2, window_bounds = array<i64: 1, 512>}, {transform_indices = @transform_3, window_bounds = array<i64: 16, 512>}]} {
    %c0 = arith.constant 0 : index
    %c0_0 = arith.constant 0 : index
    %0 = vector.load %arg2[%c0, %c0_0] : memref<16x128xbf16, #tpu.memory_space<vmem>>, vector<16x128xbf16>
    %c0_1 = arith.constant 0 : index
    %c0_2 = arith.constant 0 : index
    %1 = vector.load %arg3[%c0_1, %c0_2] : memref<128x512xbf16, #tpu.memory_space<vmem>>, vector<128x512xbf16>
    %cst = arith.constant dense<0.000000e+00> : vector<16x512xf32>
    %2 = tpu.matmul %0, %1, %cst {dimension_numbers = #tpu.dot_dimension_numbers<[1], [0], [0], [1], [0, 0, 1, 1], [], []>} : vector<16x128xbf16>, vector<128x512xbf16>, vector<16x512xf32> -> vector<16x512xf32>
    %c0_3 = arith.constant 0 : index
    %c0_4 = arith.constant 0 : index
    %3 = vector.load %arg4[%c0_3, %c0_4] : memref<1x512xf32, #tpu.memory_space<vmem>>, vector<1x512xf32>
    %4 = vector.broadcast %3 : vector<1x512xf32> to vector<16x512xf32>
    %5 = arith.addf %2, %4 : vector<16x512xf32>
    %c0_5 = arith.constant 0 : index
    %c0_6 = arith.constant 0 : index
    %6 = vector.load %arg5[%c0_5, %c0_6] : memref<16x512xf32, #tpu.memory_space<vmem>>, vector<16x512xf32>
    tpu.vector_store %arg5[%c0_5, %c0_6], %5 {strides = array<i32>} : memref<16x512xf32, #tpu.memory_space<vmem>>, vector<16x512xf32>,
    return
  }
  func.func @transform_0(%arg0: i32, %arg1: i32) -> (i32, i32) {
    %c0_i32 = arith.constant 0 : i32
    %c0_i32_0 = arith.constant 0 : i32
    return %arg0, %c0_i32 : i32, i32
  }
  func.func @transform_1(%arg0: i32, %arg1: i32) -> (i32, i32) {
    %c0_i32 = arith.constant 0 : i32
    %c0_i32_0 = arith.constant 0 : i32
    return %c0_i32, %arg1 : i32, i32
  }
  func.func @transform_2(%arg0: i32, %arg1: i32) -> (i32, i32) {
    %c0_i32 = arith.constant 0 : i32
    %c0_i32_0 = arith.constant 0 : i32
    return %c0_i32, %arg1 : i32, i32
  }
  func.func @transform_3(%arg0: i32, %arg1: i32) -> (i32, i32) {
    %c0_i32 = arith.constant 0 : i32
    return %arg0, %arg1 : i32, i32
  }
}

</mosaic_0001>

<bundles_post_ra>
// kernel: dt_forward.5
= control target key start
LH: loop header
LB: loop body
LE: loop exit
PB: predicated region body
PF: predicated region fallthrough
CT: control target
= control target key end

     0   :  { %v1370_v1 = vmov 0   ;;  %vm498_vm0 = vcmask 523264   ;;  %vm1372_vm1 = vmmov 0   ;;  %vm1093_vm2 = vcmask 781312   ;;  %s1766_s1 = inlined_call_operand.vmem [shape: bf16[64,2400], index: 1, kind: input, shape index: {}]   ;;  %s1767_s0 = inlined_call_operand.vmem [shape: bf16[16,64], index: 0, kind: input, shape index: {}]   ;;  %s1768_s2 = inlined_call_operand.vmem [shape: f32[16,1], index: 2, kind: input, shape index: {}]   ;;  %s1769_s3 = inlined_call_operand.vmem [shape: bf16[16,2400], index: 3, kind: output, shape index: {}]  }
   0x1   :  { %v1257_v0 = vld [vmem:[%s1766_s1 + $0x1cc] ss:$76 sps:$4 sm:$0xff]   ;;  %534 = vmatprep.mubr.bf16.mxu0 %v1370_v1  ;;  %577 = vmatprep.mubr.bf16.mxu1 %v1370_v1  ;;  %v1259_v2 = vld [vmem:[%s1766_s1 + $0x1d4] ss:$76 sps:$4 sm:$0xff]   ;;  %v1262_v4 = vld [vmem:[%s1766_s1 + $0x1d0] ss:$76 sps:$4 sm:$0xff]  }
   0x2   :  { %1256 = vset.pattern.permute.xlu0 %v1370_v1  ;;  %510 = vmatprep.subr.bf16.mxu0 %v1257_v0  ;;  %v1261_v3 = vld [vmem:[%s1766_s1 + $0x1c8] ss:$76 sps:$4 sm:$0xff]   ;;  %v1267_v7 = vld [vmem:[%s1766_s1 + $0x130] ss:$76 sps:$4 sm:$0xff]   ;;  %v1268_v8 = vld [vmem:[%s1766_s1 + $0x138] ss:$76 sps:$4 sm:$0xff]  }
   0x3   :  { %553 = vmatprep.subr.bf16.mxu1 %v1259_v2  ;;  %v1263_v5 = vld [vmem:[%s1766_s1 + $0x134] ss:$76 sps:$4 sm:$0xff]   ;;  %511 = vmatpush1.bf16.msra.mxu0 %v1261_v3  ;;  %v1265_v6 = vld [vmem:[%s1766_s1 + $0x13c] ss:$76 sps:$4 sm:$0xff]   ;;  %v1271_v10 = vld [vmem:[%s1766_s1 + $0xa4] ss:$76 sps:$4 sm:$0xff]  }
   0x4   :  { %554 = vmatpush1.bf16.msra.mxu1 %v1262_v4  ;;  %512 = vmatprep.subr.bf16.mxu0 %v1263_v5  ;;  %v1269_v9 = vld [vmem:[%s1766_s1 + $0x9c] ss:$76 sps:$4 sm:$0xff]   ;;  %v1273_v11 = vld [vmem:[%s1766_s1 + $0x98] ss:$76 sps:$4 sm:$0xff]   ;;  %v1274_v12 = vld [vmem:[%s1766_s1 + $0xa0] ss:$76 sps:$4 sm:$0xff]  }
   0x5   :  { %555 = vmatprep.subr.bf16.mxu1 %v1265_v6  ;;  %v1275_v13 = vld [vmem:[%s1766_s1 + $0x4] ss:$76 sps:$4 sm:$0xff]   ;;  %v1277_v14 = vld [vmem:[%s1766_s1 + $0xc] ss:$76 sps:$4 sm:$0xff]   ;;  %v1280_v16 = vld [vmem:[%s1766_s1 + $0x8] ss:$76 sps:$4 sm:$0xff]  }
   0x6   :  { %v1279_v15 = vld [vmem:[%s1766_s1] ss:$76 sps:$4 sm:$0xff]   ;;  %v1284_v17 = vld [vmem:[%s1766_s1 + $0x1dc] ss:$76 sps:$4 sm:$0xff]   ;;  %v1287_v18 = vld [vmem:[%s1766_s1 + $0x1e4] ss:$76 sps:$4 sm:$0xff]  }
   0x7   :  { %513 = vmatpush1.bf16.msra.mxu0 %v1267_v7  ;;  %v1453_v19 = vld [vmem:[%s1767_s0] sm:$0xff]   ;;  %v1293_v23 = vld [vmem:[%s1766_s1 + $0x14c] ss:$76 sps:$4 sm:$0xff]   ;;  %v1291_v25 = vld [vmem:[%s1766_s1 + $0x148] ss:$76 sps:$4 sm:$0xff]  }
   0x8   :  { %556 = vmatpush1.bf16.msra.mxu1 %v1268_v8  ;;  %514 = vmatprep.subr.bf16.mxu0 %v1269_v9  ;;  %v1282_v20 = vld [vmem:[%s1766_s1 + $0x1d8] ss:$76 sps:$4 sm:$0xff]   ;;  %v1285_v21 = vld [vmem:[%s1766_s1 + $0x1e0] ss:$76 sps:$4 sm:$0xff]   ;;  %v1294_v28 = vld [vmem:[%s1766_s1 + $0xa8] ss:$76 sps:$4 sm:$0xff]  }
   0x9   :  { %557 = vmatprep.subr.bf16.mxu1 %v1271_v10  ;;  %v1290_v22 = vld [vmem:[%s1766_s1 + $0x144] ss:$76 sps:$4 sm:$0xff]   ;;  %v1288_v24 = vld [vmem:[%s1766_s1 + $0x140] ss:$76 sps:$4 sm:$0xff]   ;;  %v1305_v31 = vld [vmem:[%s1766_s1 + $0x1c] ss:$76 sps:$4 sm:$0xff]  }
   0xa   :  { %v1296_v26 = vld [vmem:[%s1766_s1 + $0xac] ss:$76 sps:$4 sm:$0xff]   ;;  %v1299_v27 = vld [vmem:[%s1766_s1 + $0xb4] ss:$76 sps:$4 sm:$0xff]   ;;  %v1297_v29 = vld [vmem:[%s1766_s1 + $0xb0] ss:$76 sps:$4 sm:$0xff]  }
   0xb   :  { %515 = vmatpush1.bf16.msra.mxu0 %v1273_v11  ;;  %v1302_v30 = vld [vmem:[%s1766_s1 + $0x14] ss:$76 sps:$4 sm:$0xff]   ;;  %v1300_v32 = vld [vmem:[%s1766_s1 + $0x10] ss:$76 sps:$4 sm:$0xff]   ;;  %v1303_v33 = vld [vmem:[%s1766_s1 + $0x18] ss:$76 sps:$4 sm:$0xff]  }
   0xc   :  { %558 = vmatpush1.bf16.msra.mxu1 %v1274_v12  ;;  %516 = vmatprep.subr.bf16.mxu0 %v1275_v13  ;;  %v1308_v34 = vld [vmem:[%s1766_s1 + $0x1ec] ss:$76 sps:$4 sm:$0xff]   ;;  %v1311_v35 = vld [vmem:[%s1766_s1 + $0x1f4] ss:$76 sps:$4 sm:$0xff]   ;;  %v1309_v37 = vld [vmem:[%s1766_s1 + $0x1f0] ss:$76 sps:$4 sm:$0xff]  }
   0xd   :  { %559 = vmatprep.subr.bf16.mxu1 %v1277_v14  ;;  %v1306_v36 = vld [vmem:[%s1766_s1 + $0x1e8] ss:$76 sps:$4 sm:$0xff]   ;;  %v1312_v40 = vld [vmem:[%s1766_s1 + $0x150] ss:$76 sps:$4 sm:$0xff]   ;;  %v1315_v41 = vld [vmem:[%s1766_s1 + $0x158] ss:$76 sps:$4 sm:$0xff]  }
   0xe   :  { %v1314_v38 = vld [vmem:[%s1766_s1 + $0x154] ss:$76 sps:$4 sm:$0xff]   ;;  %v1317_v39 = vld [vmem:[%s1766_s1 + $0x15c] ss:$76 sps:$4 sm:$0xff]   ;;  %v1323_v43 = vld [vmem:[%s1766_s1 + $0xc4] ss:$76 sps:$4 sm:$0xff]  }
   0xf   :  { %517 = vmatpush1.bf16.msra.mxu0 %v1279_v15  ;;  %v1320_v42 = vld [vmem:[%s1766_s1 + $0xbc] ss:$76 sps:$4 sm:$0xff]   ;;  %v1318_v44 = vld [vmem:[%s1766_s1 + $0xb8] ss:$76 sps:$4 sm:$0xff]   ;;  %v1321_v45 = vld [vmem:[%s1766_s1 + $0xc0] ss:$76 sps:$4 sm:$0xff]  }
  0x10   :  { %560 = vmatpush1.bf16.msra.mxu1 %v1280_v16  ;;  %596 = vmatprep.subr.bf16.mxu0 %v1284_v17  ;;  %v1326_v46 = vld [vmem:[%s1766_s1 + $0x24] ss:$76 sps:$4 sm:$0xff]   ;;  %v1329_v47 = vld [vmem:[%s1766_s1 + $0x2c] ss:$76 sps:$4 sm:$0xff]   ;;  %v1327_v49 = vld [vmem:[%s1766_s1 + $0x28] ss:$76 sps:$4 sm:$0xff]  }
  0x11   :  { %639 = vmatprep.subr.bf16.mxu1 %v1287_v18  ;;  %v1324_v48 = vld [vmem:[%s1766_s1 + $0x20] ss:$76 sps:$4 sm:$0xff]   ;;  %v1332_v50 = vld [vmem:[%s1766_s1 + $0x1fc] ss:$76 sps:$4 sm:$0xff]   ;;  %v1335_v51 = vld [vmem:[%s1766_s1 + $0x204] ss:$76 sps:$4 sm:$0xff]  }
  0x12   :  { %1186 = vmatmul.mubr.msk.bf16.vlgmr.msra.gmra.mxu0 %vm498_vm0, %v1453_v19  ;;  %v1330_v52 = vld [vmem:[%s1766_s1 + $0x1f8] ss:$76 sps:$4 sm:$0xff]   ;;  %v1333_v53 = vld [vmem:[%s1766_s1 + $0x200] ss:$76 sps:$4 sm:$0xff]   ;;  %v1339_v57 = vld [vmem:[%s1766_s1 + $0x168] ss:$76 sps:$4 sm:$0xff]  }
  0x13   :  { %1187 = vmatmul.mubr.msk.bf16.vlgmr.msra.gmra.mxu1 %vm498_vm0, %v1453_v19  ;;  %597 = vmatpush1.bf16.msra.mxu0 %v1282_v20  ;;  %v1338_v54 = vld [vmem:[%s1766_s1 + $0x164] ss:$76 sps:$4 sm:$0xff]   ;;  %v1341_v55 = vld [vmem:[%s1766_s1 + $0x16c] ss:$76 sps:$4 sm:$0xff]   ;;  %v1347_v59 = vld [vmem:[%s1766_s1 + $0xd4] ss:$76 sps:$4 sm:$0xff]  }
  0x14   :  { %640 = vmatpush1.bf16.msra.mxu1 %v1285_v21  ;;  %598 = vmatprep.subr.bf16.mxu0 %v1290_v22  ;;  %v1336_v56 = vld [vmem:[%s1766_s1 + $0x160] ss:$76 sps:$4 sm:$0xff]   ;;  %v1342_v61 = vld [vmem:[%s1766_s1 + $0xc8] ss:$76 sps:$4 sm:$0xff]   ;;  %v1345_v62 = vld [vmem:[%s1766_s1 + $0xd0] ss:$76 sps:$4 sm:$0xff]  }
  0x15   :  { %641 = vmatprep.subr.bf16.mxu1 %v1293_v23  ;;  %620 = vmatprep.mubr.bf16.mxu0 %v1370_v1  ;;  %v1344_v58 = vld [vmem:[%s1766_s1 + $0xcc] ss:$76 sps:$4 sm:$0xff]   ;;  %v97_v60 = vld [vmem:[%s1768_s2] sm:$0xff]  ;;  %v1353_v2 = vld [vmem:[%s1766_s1 + $0x3c] ss:$76 sps:$4 sm:$0xff]   ;;  %v1371_v8 = vmov 0.0  }
  0x16   :  { %663 = vmatprep.mubr.bf16.mxu1 %v1370_v1  ;;  %101 = vperm.xlu0 %1256, %v97_v60   ;;  %v98_v63 = vld [vmem:[%s1768_s2 + $0x8] sm:$0xff]  ;;  %v1350_v0 = vld [vmem:[%s1766_s1 + $0x34] ss:$76 sps:$4 sm:$0xff]   ;;  %v1348_v3 = vld [vmem:[%s1766_s1 + $0x30] ss:$76 sps:$4 sm:$0xff]  }
  0x17   :  { %599 = vmatpush1.bf16.msra.mxu0 %v1288_v24  ;;  %v1351_v4 = vld [vmem:[%s1766_s1 + $0x38] ss:$76 sps:$4 sm:$0xff]   ;;  %v1354_v6 = vld [vmem:[%s1766_s1 + $0x208] ss:$76 sps:$4 sm:$0xff]   ;;  %v1357_v7 = vld [vmem:[%s1766_s1 + $0x210] ss:$76 sps:$4 sm:$0xff]  }
  0x18   :  { %642 = vmatpush1.bf16.msra.mxu1 %v1291_v25  ;;  %600 = vmatprep.subr.bf16.mxu0 %v1296_v26  ;;  %v1356_v5 = vld [vmem:[%s1766_s1 + $0x20c] ss:$76 sps:$4 sm:$0xff]   ;;  %v1360_v9 = vld [vmem:[%s1766_s1 + $0x174] ss:$76 sps:$4 sm:$0xff]   ;;  %v1358_v10 = vld [vmem:[%s1766_s1 + $0x170] ss:$76 sps:$4 sm:$0xff]  }
  0x19   :  { %643 = vmatprep.subr.bf16.mxu1 %v1299_v27  ;;  %v1361_v11 = vld [vmem:[%s1766_s1 + $0x178] ss:$76 sps:$4 sm:$0xff]   ;;  %v1364_v12 = vld [vmem:[%s1766_s1 + $0xdc] ss:$76 sps:$4 sm:$0xff]   ;;  %v1365_v14 = vld [vmem:[%s1766_s1 + $0xe0] ss:$76 sps:$4 sm:$0xff]  }
  0x1a   :  { %106 = vperm.xlu0 %1256, %v98_v63   ;;  %v1362_v13 = vld [vmem:[%s1766_s1 + $0xd8] ss:$76 sps:$4 sm:$0xff]   ;;  %v1369_v16 = vld [vmem:[%s1766_s1 + $0x48] ss:$76 sps:$4 sm:$0xff]  }
  0x1b   :  { %601 = vmatpush1.bf16.msra.mxu0 %v1294_v28  ;;  %v1368_v15 = vld [vmem:[%s1766_s1 + $0x44] ss:$76 sps:$4 sm:$0xff]  }
  0x1c   :  { %644 = vmatpush1.bf16.msra.mxu1 %v1297_v29  ;;  %602 = vmatprep.subr.bf16.mxu0 %v1302_v30 }
  0x1d   :  { %645 = vmatprep.subr.bf16.mxu1 %v1305_v31 }
  0x1f   :  { %603 = vmatpush1.bf16.msra.mxu0 %v1300_v32 }
  0x20   :  { %646 = vmatpush1.bf16.msra.mxu1 %v1303_v33  ;;  %682 = vmatprep.subr.bf16.mxu0 %v1308_v34 }
  0x21   :  { %725 = vmatprep.subr.bf16.mxu1 %v1311_v35 }
  0x22   :  { %1188 = vmatmul.mubr.msk.bf16.vlgmr.msra.gmra.mxu0 %vm498_vm0, %v1453_v19 }
  0x23   :  { %1189 = vmatmul.mubr.msk.bf16.vlgmr.msra.gmra.mxu1 %vm498_vm0, %v1453_v19  ;;  %683 = vmatpush1.bf16.msra.mxu0 %v1306_v36 }
  0x24   :  { %726 = vmatpush1.bf16.msra.mxu1 %v1309_v37  ;;  %684 = vmatprep.subr.bf16.mxu0 %v1314_v38 }
  0x25   :  { %727 = vmatprep.subr.bf16.mxu1 %v1317_v39  ;;  %706 = vmatprep.mubr.bf16.mxu0 %v1370_v1 }
  0x26   :  { %749 = vmatprep.mubr.bf16.mxu1 %v1370_v1 }
  0x27   :  { %685 = vmatpush1.bf16.msra.mxu0 %v1312_v40 }
  0x28   :  { %728 = vmatpush1.bf16.msra.mxu1 %v1315_v41  ;;  %686 = vmatprep.subr.bf16.mxu0 %v1320_v42 }
  0x29   :  { %729 = vmatprep.subr.bf16.mxu1 %v1323_v43 }
  0x2b   :  { %687 = vmatpush1.bf16.msra.mxu0 %v1318_v44 }
  0x2c   :  { %730 = vmatpush1.bf16.msra.mxu1 %v1321_v45  ;;  %688 = vmatprep.subr.bf16.mxu0 %v1326_v46 }
  0x2d   :  { %731 = vmatprep.subr.bf16.mxu1 %v1329_v47 }
  0x2f   :  { %689 = vmatpush1.bf16.msra.mxu0 %v1324_v48 }
  0x30   :  { %732 = vmatpush1.bf16.msra.mxu1 %v1327_v49  ;;  %768 = vmatprep.subr.bf16.mxu0 %v1332_v50 }
  0x31   :  { %811 = vmatprep.subr.bf16.mxu1 %v1335_v51 }
  0x32   :  { %1190 = vmatmul.mubr.msk.bf16.vlgmr.msra.gmra.mxu0 %vm498_vm0, %v1453_v19 }
  0x33   :  { %1191 = vmatmul.mubr.msk.bf16.vlgmr.msra.gmra.mxu1 %vm498_vm0, %v1453_v19  ;;  %769 = vmatpush1.bf16.msra.mxu0 %v1330_v52 }
  0x34   :  { %812 = vmatpush1.bf16.msra.mxu1 %v1333_v53  ;;  %770 = vmatprep.subr.bf16.mxu0 %v1338_v54 }
  0x35   :  { %813 = vmatprep.subr.bf16.mxu1 %v1341_v55  ;;  %792 = vmatprep.mubr.bf16.mxu0 %v1370_v1 }
  0x36   :  { %835 = vmatprep.mubr.bf16.mxu1 %v1370_v1 }
  0x37   :  { %771 = vmatpush1.bf16.msra.mxu0 %v1336_v56 }
  0x38   :  { %814 = vmatpush1.bf16.msra.mxu1 %v1339_v57  ;;  %772 = vmatprep.subr.bf16.mxu0 %v1344_v58 }
  0x39   :  { %815 = vmatprep.subr.bf16.mxu1 %v1347_v59 }
  0x3b   :  { %773 = vmatpush1.bf16.msra.mxu0 %v1342_v61 }
  0x3c   :  { %816 = vmatpush1.bf16.msra.mxu1 %v1345_v62  ;;  %774 = vmatprep.subr.bf16.mxu0 %v1350_v0 }
  0x3d   :  { %817 = vmatprep.subr.bf16.mxu1 %v1353_v2 }
  0x3f   :  { %775 = vmatpush1.bf16.msra.mxu0 %v1348_v3 }
  0x40   :  { %818 = vmatpush1.bf16.msra.mxu1 %v1351_v4  ;;  %854 = vmatprep.subr.bf16.mxu0 %v1356_v5 }
  0x41   :  { %1241 = vmatprep.subr.bf16.mxu1 %v1371_v8 }
  0x42   :  { %1192 = vmatmul.mubr.msk.bf16.vlgmr.msra.gmra.mxu0 %vm498_vm0, %v1453_v19 }
  0x43   :  { %1193 = vmatmul.mubr.msk.bf16.vlgmr.msra.gmra.mxu1 %vm498_vm0, %v1453_v19  ;;  %855 = vmatpush1.bf16.msra.mxu0 %v1354_v6 }
  0x44   :  { %1242 = vmatpush3.bf16.msra.mxu1 %v1357_v7  ;;  %856 = vmatprep.subr.bf16.mxu0 %v1360_v9 }
  0x45   :  { %1243 = vmatprep.subr.bf16.mxu1 %v1371_v8  ;;  %878 = vmatprep.mubr.bf16.mxu0 %v1370_v1  ;;  %v1366_v1 = vld [vmem:[%s1766_s1 + $0x40] ss:$76 sps:$4 sm:$0xff]  }
  0x46   :  { %1249 = vmatprep.mubr.msk.bf16.mxu1 %vm1372_vm1, %v1371_v8 }
  0x47   :  { %857 = vmatpush1.bf16.msra.mxu0 %v1358_v10 }
  0x48   :  { %1244 = vmatpush3.bf16.msra.mxu1 %v1361_v11  ;;  %858 = vmatprep.subr.bf16.mxu0 %v1364_v12 }
  0x49   :  { %1245 = vmatprep.subr.bf16.mxu1 %v1371_v8 }
  0x4b   :  { %859 = vmatpush1.bf16.msra.mxu0 %v1362_v13 }
  0x4c   :  { %1246 = vmatpush3.bf16.msra.mxu1 %v1365_v14  ;;  %860 = vmatprep.subr.bf16.mxu0 %v1368_v15 }
  0x4d   :  { %1247 = vmatprep.subr.bf16.mxu1 %v1371_v8 }
  0x4f   :  { %861 = vmatpush1.bf16.msra.mxu0 %v1366_v1 }
  0x50   :  { %1248 = vmatpush3.bf16.msra.mxu1 %v1369_v16 }
  0x52   :  { %1194 = vmatmul.mubr.msk.bf16.vlgmr.msra.gmra.mxu0 %vm498_vm0, %v1453_v19 }
  0x53   :  { %1250 = vmatmul.mubr.msk.bf16.vlgmr.msra.gmra.mxu1 %vm498_vm0, %v1453_v19 }
  0x91   :  { %v1662_v17 = vpop.permute.xlu0 %101 }
  0x95   :  { %v1668_v29 = vpop.permute.xlu0 %106 }
  0xd2   :  { %v536_v18 = vpop.f32.mrf.mxu0 }
  0xd3   :  { %v579_v20 = vpop.f32.mrf.mxu1  ;;  %v537_v21 = vadd.f32 %v536_v18, %v1662_v17 }
  0xd4   :  { %v580_v22 = vadd.f32 %v579_v20, %v1662_v17  ;;  %v538_v23 = vpop.f32.mrf.mxu0 }
  0xd5   :  { %v581_v24 = vpop.f32.mrf.mxu1  ;;  %v930_v25 = vmax.f32 %v537_v21, 0.0  ;;  %v539_v27 = vadd.f32 %v538_v23, %v1662_v17 }
  0xd6   :  { %v932_v26 = vmax.f32 %v580_v22, 0.0  ;;  %v582_v28 = vadd.f32 %v581_v24, %v1662_v17  ;;  %v540_v30 = vpop.f32.mrf.mxu0 }
  0xd7   :  { %v583_v19 = vpop.f32.mrf.mxu1  ;;  %v931_v31 = vmax.f32 %v539_v27, 0.0  ;;  %v541_v33 = vadd.f32 %v540_v30, %v1668_v29 }
  0xd8   :  { %v933_v32 = vmax.f32 %v582_v28, 0.0  ;;  %v584_v34 = vadd.f32 %v583_v19, %v1668_v29  ;;  %v542_v35 = vpop.f32.mrf.mxu0 }
  0xd9   :  { %v585_v36 = vpop.f32.mrf.mxu1  ;;  %v1216_v37 = vpack.c.bf16 %v931_v31, %v930_v25  ;;  %v543_v39 = vadd.f32 %v542_v35, %v1668_v29  ;;  %v949_v41 = vmax.f32 %v541_v33, 0.0 }
  0xda   :  { %v1217_v38 = vpack.c.bf16 %v933_v32, %v932_v26  ;;  %v586_v40 = vadd.f32 %v585_v36, %v1668_v29  ;;  %v951_v42 = vmax.f32 %v584_v34, 0.0 }
  0xdb   :  { %1084 = vst [vmem:[%s1769_s3] sm:$0xff] %v1216_v37  ;;  %v950_v43 = vmax.f32 %v543_v39, 0.0 }
  0xdc   :  { %1085 = vst [vmem:[%s1769_s3 + $0x8] sm:$0xff] %v1217_v38  ;;  %v952_v44 = vmax.f32 %v586_v40, 0.0 }
  0xdd   :  { %v1226_v45 = vpack.c.bf16 %v950_v43, %v949_v41 }
  0xde   :  { %v1227_v46 = vpack.c.bf16 %v952_v44, %v951_v42 }
  0xdf   :  { %1095 = vst [vmem:[%s1769_s3 + $0x4c] sm:$0xff] %v1226_v45 }
  0xe0   :  { %1096 = vst [vmem:[%s1769_s3 + $0x54] sm:$0xff] %v1227_v46 }
  0xe2   :  { %v622_v47 = vpop.f32.mrf.mxu0 }
  0xe3   :  { %v665_v48 = vpop.f32.mrf.mxu1  ;;  %v623_v49 = vadd.f32 %v622_v47, %v1662_v17 }
  0xe4   :  { %v666_v50 = vadd.f32 %v665_v48, %v1662_v17  ;;  %v624_v51 = vpop.f32.mrf.mxu0 }
  0xe5   :  { %v667_v52 = vpop.f32.mrf.mxu1  ;;  %v934_v53 = vmax.f32 %v623_v49, 0.0  ;;  %v625_v55 = vadd.f32 %v624_v51, %v1662_v17 }
  0xe6   :  { %v936_v54 = vmax.f32 %v666_v50, 0.0  ;;  %v668_v56 = vadd.f32 %v667_v52, %v1662_v17  ;;  %v626_v57 = vpop.f32.mrf.mxu0 }
  0xe7   :  { %v669_v58 = vpop.f32.mrf.mxu1  ;;  %v935_v59 = vmax.f32 %v625_v55, 0.0  ;;  %v627_v61 = vadd.f32 %v626_v57, %v1668_v29 }
  0xe8   :  { %v937_v60 = vmax.f32 %v668_v56, 0.0  ;;  %v670_v62 = vadd.f32 %v669_v58, %v1668_v29  ;;  %v628_v63 = vpop.f32.mrf.mxu0 }
  0xe9   :  { %v671_v0 = vpop.f32.mrf.mxu1  ;;  %v1218_v2 = vpack.c.bf16 %v935_v59, %v934_v53  ;;  %v629_v4 = vadd.f32 %v628_v63, %v1668_v29  ;;  %v953_v6 = vmax.f32 %v627_v61, 0.0 }
  0xea   :  { %v1219_v3 = vpack.c.bf16 %v937_v60, %v936_v54  ;;  %v672_v5 = vadd.f32 %v671_v0, %v1668_v29  ;;  %v955_v7 = vmax.f32 %v670_v62, 0.0 }
  0xeb   :  { %1086 = vst [vmem:[%s1769_s3 + $0x10] sm:$0xff] %v1218_v2  ;;  %v954_v8 = vmax.f32 %v629_v4, 0.0 }
  0xec   :  { %1087 = vst [vmem:[%s1769_s3 + $0x18] sm:$0xff] %v1219_v3  ;;  %v956_v9 = vmax.f32 %v672_v5, 0.0 }
  0xed   :  { %v1228_v10 = vpack.c.bf16 %v954_v8, %v953_v6 }
  0xee   :  { %v1229_v11 = vpack.c.bf16 %v956_v9, %v955_v7 }
  0xef   :  { %1097 = vst [vmem:[%s1769_s3 + $0x5c] sm:$0xff] %v1228_v10 }
  0xf0   :  { %1098 = vst [vmem:[%s1769_s3 + $0x64] sm:$0xff] %v1229_v11 }
  0xf2   :  { %v708_v12 = vpop.f32.mrf.mxu0 }
  0xf3   :  { %v751_v13 = vpop.f32.mrf.mxu1  ;;  %v709_v14 = vadd.f32 %v708_v12, %v1662_v17 }
  0xf4   :  { %v752_v15 = vadd.f32 %v751_v13, %v1662_v17  ;;  %v710_v1 = vpop.f32.mrf.mxu0 }
  0xf5   :  { %v753_v16 = vpop.f32.mrf.mxu1  ;;  %v938_v18 = vmax.f32 %v709_v14, 0.0  ;;  %v711_v21 = vadd.f32 %v710_v1, %v1662_v17 }
  0xf6   :  { %v940_v20 = vmax.f32 %v752_v15, 0.0  ;;  %v754_v22 = vadd.f32 %v753_v16, %v1662_v17  ;;  %v712_v23 = vpop.f32.mrf.mxu0 }
  0xf7   :  { %v755_v24 = vpop.f32.mrf.mxu1  ;;  %v939_v25 = vmax.f32 %v711_v21, 0.0  ;;  %v713_v27 = vadd.f32 %v712_v23, %v1668_v29 }
  0xf8   :  { %v941_v26 = vmax.f32 %v754_v22, 0.0  ;;  %v756_v28 = vadd.f32 %v755_v24, %v1668_v29  ;;  %v714_v30 = vpop.f32.mrf.mxu0 }
  0xf9   :  { %v757_v19 = vpop.f32.mrf.mxu1  ;;  %v1220_v31 = vpack.c.bf16 %v939_v25, %v938_v18  ;;  %v715_v33 = vadd.f32 %v714_v30, %v1668_v29  ;;  %v957_v35 = vmax.f32 %v713_v27, 0.0 }
  0xfa   :  { %v1221_v32 = vpack.c.bf16 %v941_v26, %v940_v20  ;;  %v758_v34 = vadd.f32 %v757_v19, %v1668_v29  ;;  %v959_v36 = vmax.f32 %v756_v28, 0.0 }
  0xfb   :  { %1088 = vst [vmem:[%s1769_s3 + $0x20] sm:$0xff] %v1220_v31  ;;  %v958_v37 = vmax.f32 %v715_v33, 0.0 }
  0xfc   :  { %1089 = vst [vmem:[%s1769_s3 + $0x28] sm:$0xff] %v1221_v32  ;;  %v960_v38 = vmax.f32 %v758_v34, 0.0 }
  0xfd   :  { %v1230_v39 = vpack.c.bf16 %v958_v37, %v957_v35 }
  0xfe   :  { %v1231_v40 = vpack.c.bf16 %v960_v38, %v959_v36 }
  0xff   :  { %1099 = vst [vmem:[%s1769_s3 + $0x6c] sm:$0xff] %v1230_v39 }
 0x100   :  { %1100 = vst [vmem:[%s1769_s3 + $0x74] sm:$0xff] %v1231_v40 }
 0x102   :  { %v794_v41 = vpop.f32.mrf.mxu0 }
 0x103   :  { %v837_v42 = vpop.f32.mrf.mxu1  ;;  %v795_v43 = vadd.f32 %v794_v41, %v1662_v17 }
 0x104   :  { %v838_v44 = vadd.f32 %v837_v42, %v1662_v17  ;;  %v796_v45 = vpop.f32.mrf.mxu0 }
 0x105   :  { %v839_v46 = vpop.f32.mrf.mxu1  ;;  %v942_v47 = vmax.f32 %v795_v43, 0.0  ;;  %v797_v49 = vadd.f32 %v796_v45, %v1662_v17 }
 0x106   :  { %v944_v48 = vmax.f32 %v838_v44, 0.0  ;;  %v840_v50 = vadd.f32 %v839_v46, %v1662_v17  ;;  %v798_v51 = vpop.f32.mrf.mxu0 }
 0x107   :  { %v841_v52 = vpop.f32.mrf.mxu1  ;;  %v943_v53 = vmax.f32 %v797_v49, 0.0  ;;  %v799_v55 = vadd.f32 %v798_v51, %v1668_v29 }
 0x108   :  { %v945_v54 = vmax.f32 %v840_v50, 0.0  ;;  %v842_v56 = vadd.f32 %v841_v52, %v1668_v29  ;;  %v800_v57 = vpop.f32.mrf.mxu0 }
 0x109   :  { %v843_v58 = vpop.f32.mrf.mxu1  ;;  %v1222_v59 = vpack.c.bf16 %v943_v53, %v942_v47  ;;  %v801_v61 = vadd.f32 %v800_v57, %v1668_v29  ;;  %v961_v63 = vmax.f32 %v799_v55, 0.0 }
 0x10a   :  { %v1223_v60 = vpack.c.bf16 %v945_v54, %v944_v48  ;;  %v844_v62 = vadd.f32 %v843_v58, %v1668_v29  ;;  %v963_v0 = vmax.f32 %v842_v56, 0.0 }
 0x10b   :  { %1090 = vst [vmem:[%s1769_s3 + $0x30] sm:$0xff] %v1222_v59  ;;  %v962_v2 = vmax.f32 %v801_v61, 0.0 }
 0x10c   :  { %1091 = vst [vmem:[%s1769_s3 + $0x38] sm:$0xff] %v1223_v60  ;;  %v964_v3 = vmax.f32 %v844_v62, 0.0 }
 0x10d   :  { %v1232_v4 = vpack.c.bf16 %v962_v2, %v961_v63 }
 0x10e   :  { %v1233_v5 = vpack.c.bf16 %v964_v3, %v963_v0 }
 0x10f   :  { %1101 = vst [vmem:[%s1769_s3 + $0x7c] sm:$0xff] %v1232_v4 }
 0x110   :  { %1102 = vst [vmem:[%s1769_s3 + $0x84] sm:$0xff] %v1233_v5 }
 0x112   :  { %v880_v6 = vpop.f32.mrf.mxu0 }
 0x113   :  { %v923_v7 = vpop.f32.mrf.mxu1  ;;  %v881_v8 = vadd.f32 %v880_v6, %v1662_v17 }
 0x114   :  { %v924_v9 = vadd.f32 %v923_v7, %v1662_v17  ;;  %v882_v10 = vpop.f32.mrf.mxu0 }
 0x115   :  { %v1251_v11 = vpop.f32.mrf.mxu1  ;;  %v883_v13 = vadd.f32 %v882_v10, %v1662_v17  ;;  %v946_v14 = vmax.f32 %v881_v8, 0.0 }
 0x116   :  { %v948_v12 = vmax.f32 %v924_v9, 0.0  ;;  %v884_v15 = vpop.f32.mrf.mxu0 }
 0x117   :  { %v926_v1 = vpop.f32.mrf.mxu1  ;;  %v947_v18 = vmax.f32 %v883_v13, 0.0  ;;  %v885_v20 = vadd.f32 %v884_v15, %v1668_v29 }
 0x118   :  { %v1225_v16 = vpack.c.bf16 %v948_v12, %v948_v12  ;;  %v927_v21 = vadd.f32 %v926_v1, %v1668_v29  ;;  %v886_v22 = vpop.f32.mrf.mxu0 }
 0x119   :  { %v1252_v23 = vpop.f32.mrf.mxu1  ;;  %v1224_v24 = vpack.c.bf16 %v947_v18, %v946_v14  ;;  %v887_v17 = vadd.f32 %v886_v22, %v1668_v29  ;;  %v965_v26 = vmax.f32 %v885_v20, 0.0 }
 0x11a   :  { %1094 = vst.msk [vmem:[%s1769_s3 + $0x48] sm:$0xf] %vm1093_vm2, %v1225_v16  ;;  %v967_v25 = vmax.f32 %v927_v21, 0.0 }
 0x11b   :  { %1092 = vst [vmem:[%s1769_s3 + $0x40] sm:$0xff] %v1224_v24  ;;  %v966_v28 = vmax.f32 %v887_v17, 0.0 }
 0x11c   :  { %v1235_v27 = vpack.c.bf16 %v967_v25, %v967_v25 }
 0x11d   :  { %v1234_v30 = vpack.c.bf16 %v966_v28, %v965_v26 }
 0x11e   :  { %1104 = vst.msk [vmem:[%s1769_s3 + $0x94] sm:$0xf] %vm1093_vm2, %v1235_v27 }
 0x11f   :  { %1103 = vst [vmem:[%s1769_s3 + $0x8c] sm:$0xff] %v1234_v30 }

// kernel: dt_forward.6
= control target key start
LH: loop header
LB: loop body
LE: loop exit
PB: predicated region body
PF: predicated region fallthrough
CT: control target
= control target key end

     0   :  { %v1104_v1 = vmov 0   ;;  %vm816_vm0 = vcmask 715776   ;;  %s1456_s1 = inlined_call_operand.vmem [shape: bf16[256,600], index: 1, kind: input, shape index: {}]   ;;  %s1457_s0 = inlined_call_operand.vmem [shape: bf16[32,256], index: 0, kind: input, shape index: {}]   ;;  %s1458_s2 = inlined_call_operand.vmem [shape: f32[32,1], index: 2, kind: input, shape index: {}]   ;;  %s1459_s3 = inlined_call_operand.vmem [shape: bf16[32,600], index: 3, kind: output, shape index: {}]  }
   0x1   :  { %v986_v0 = vld [vmem:[%s1456_s1 + $0x11c] ss:$20 sps:$4 sm:$0xff]   ;;  %984 = vset.pattern.permute.xlu0 %v1104_v1  ;;  %985 = vset.pattern.permute.xlu1 %v1104_v1  ;;  %v988_v2 = vld [vmem:[%s1456_s1 + $0x124] ss:$20 sps:$4 sm:$0xff]   ;;  %v991_v4 = vld [vmem:[%s1456_s1 + $0x120] ss:$20 sps:$4 sm:$0xff]  }
   0x2   :  { %575 = vmatprep.subr.bf16.mxu0 %v986_v0  ;;  %v990_v3 = vld [vmem:[%s1456_s1 + $0x118] ss:$20 sps:$4 sm:$0xff]   ;;  %628 = vmatprep.subr.bf16.mxu1 %v988_v2  ;;  %v992_v5 = vld [vmem:[%s1456_s1 + $0xf4] ss:$20 sps:$4 sm:$0xff]   ;;  %v994_v6 = vld [vmem:[%s1456_s1 + $0xfc] ss:$20 sps:$4 sm:$0xff]  }
   0x3   :  { %576 = vmatpush1.bf16.msra.mxu0 %v990_v3  ;;  %629 = vmatpush1.bf16.msra.mxu1 %v991_v4  ;;  %v996_v7 = vld [vmem:[%s1456_s1 + $0xf0] ss:$20 sps:$4 sm:$0xff]   ;;  %v997_v8 = vld [vmem:[%s1456_s1 + $0xf8] ss:$20 sps:$4 sm:$0xff]   ;;  %v1000_v10 = vld [vmem:[%s1456_s1 + $0xd4] ss:$20 sps:$4 sm:$0xff]  }
   0x4   :  { %577 = vmatprep.subr.bf16.mxu0 %v992_v5  ;;  %630 = vmatprep.subr.bf16.mxu1 %v994_v6  ;;  %v998_v9 = vld [vmem:[%s1456_s1 + $0xcc] ss:$20 sps:$4 sm:$0xff]   ;;  %v1002_v11 = vld [vmem:[%s1456_s1 + $0xc8] ss:$20 sps:$4 sm:$0xff]   ;;  %v1003_v12 = vld [vmem:[%s1456_s1 + $0xd0] ss:$20 sps:$4 sm:$0xff]  }
   0x5   :  { %v1004_v13 = vld [vmem:[%s1456_s1 + $0xa4] ss:$20 sps:$4 sm:$0xff]   ;;  %v1006_v14 = vld [vmem:[%s1456_s1 + $0xac] ss:$20 sps:$4 sm:$0xff]   ;;  %v1009_v16 = vld [vmem:[%s1456_s1 + $0xa8] ss:$20 sps:$4 sm:$0xff]  }
   0x6   :  { %v1008_v15 = vld [vmem:[%s1456_s1 + $0xa0] ss:$20 sps:$4 sm:$0xff]   ;;  %v1010_v17 = vld [vmem:[%s1456_s1 + $0x7c] ss:$20 sps:$4 sm:$0xff]   ;;  %v1012_v18 = vld [vmem:[%s1456_s1 + $0x84] ss:$20 sps:$4 sm:$0xff]  }
   0x7   :  { %578 = vmatpush1.bf16.msra.mxu0 %v996_v7  ;;  %631 = vmatpush1.bf16.msra.mxu1 %v997_v8  ;;  %v1014_v19 = vld [vmem:[%s1456_s1 + $0x78] ss:$20 sps:$4 sm:$0xff]   ;;  %v1015_v20 = vld [vmem:[%s1456_s1 + $0x80] ss:$20 sps:$4 sm:$0xff]   ;;  %v1018_v22 = vld [vmem:[%s1456_s1 + $0x5c] ss:$20 sps:$4 sm:$0xff]  }
   0x8   :  { %579 = vmatprep.subr.bf16.mxu0 %v998_v9  ;;  %632 = vmatprep.subr.bf16.mxu1 %v1000_v10  ;;  %v1016_v21 = vld [vmem:[%s1456_s1 + $0x54] ss:$20 sps:$4 sm:$0xff]   ;;  %v1020_v23 = vld [vmem:[%s1456_s1 + $0x50] ss:$20 sps:$4 sm:$0xff]   ;;  %v1021_v24 = vld [vmem:[%s1456_s1 + $0x58] ss:$20 sps:$4 sm:$0xff]  }
   0x9   :  { %v1022_v25 = vld [vmem:[%s1456_s1 + $0x2c] ss:$20 sps:$4 sm:$0xff]   ;;  %v1024_v26 = vld [vmem:[%s1456_s1 + $0x34] ss:$20 sps:$4 sm:$0xff]   ;;  %v1027_v28 = vld [vmem:[%s1456_s1 + $0x30] ss:$20 sps:$4 sm:$0xff]  }
   0xa   :  { %v1026_v27 = vld [vmem:[%s1456_s1 + $0x28] ss:$20 sps:$4 sm:$0xff]   ;;  %v1028_v29 = vld [vmem:[%s1456_s1 + $0x4] ss:$20 sps:$4 sm:$0xff]   ;;  %v1030_v30 = vld [vmem:[%s1456_s1 + $0xc] ss:$20 sps:$4 sm:$0xff]  }
   0xb   :  { %580 = vmatpush1.bf16.msra.mxu0 %v1002_v11  ;;  %633 = vmatpush1.bf16.msra.mxu1 %v1003_v12  ;;  %v1032_v31 = vld [vmem:[%s1456_s1] ss:$20 sps:$4 sm:$0xff]   ;;  %v1033_v32 = vld [vmem:[%s1456_s1 + $0x8] ss:$20 sps:$4 sm:$0xff]   ;;  %v1036_v34 = vld [vmem:[%s1456_s1 + $0x264] ss:$20 sps:$4 sm:$0xff]  }
   0xc   :  { %581 = vmatprep.subr.bf16.mxu0 %v1004_v13  ;;  %634 = vmatprep.subr.bf16.mxu1 %v1006_v14  ;;  %v1034_v33 = vld [vmem:[%s1456_s1 + $0x25c] ss:$20 sps:$4 sm:$0xff]   ;;  %v1038_v35 = vld [vmem:[%s1456_s1 + $0x258] ss:$20 sps:$4 sm:$0xff]   ;;  %v1039_v36 = vld [vmem:[%s1456_s1 + $0x260] ss:$20 sps:$4 sm:$0xff]  }
   0xd   :  { %v1040_v37 = vld [vmem:[%s1456_s1 + $0x234] ss:$20 sps:$4 sm:$0xff]   ;;  %v1042_v38 = vld [vmem:[%s1456_s1 + $0x23c] ss:$20 sps:$4 sm:$0xff]   ;;  %v1045_v40 = vld [vmem:[%s1456_s1 + $0x238] ss:$20 sps:$4 sm:$0xff]  }
   0xe   :  { %v1044_v39 = vld [vmem:[%s1456_s1 + $0x230] ss:$20 sps:$4 sm:$0xff]   ;;  %v1046_v41 = vld [vmem:[%s1456_s1 + $0x20c] ss:$20 sps:$4 sm:$0xff]   ;;  %v1048_v42 = vld [vmem:[%s1456_s1 + $0x214] ss:$20 sps:$4 sm:$0xff]  }
   0xf   :  { %582 = vmatpush1.bf16.msra.mxu0 %v1008_v15  ;;  %635 = vmatpush1.bf16.msra.mxu1 %v1009_v16  ;;  %v1050_v43 = vld [vmem:[%s1456_s1 + $0x208] ss:$20 sps:$4 sm:$0xff]   ;;  %v1051_v44 = vld [vmem:[%s1456_s1 + $0x210] ss:$20 sps:$4 sm:$0xff]   ;;  %v1054_v46 = vld [vmem:[%s1456_s1 + $0x1ec] ss:$20 sps:$4 sm:$0xff]  }
  0x10   :  { %583 = vmatprep.subr.bf16.mxu0 %v1010_v17  ;;  %636 = vmatprep.subr.bf16.mxu1 %v1012_v18  ;;  %v1052_v45 = vld [vmem:[%s1456_s1 + $0x1e4] ss:$20 sps:$4 sm:$0xff]   ;;  %v1056_v47 = vld [vmem:[%s1456_s1 + $0x1e0] ss:$20 sps:$4 sm:$0xff]   ;;  %v1057_v48 = vld [vmem:[%s1456_s1 + $0x1e8] ss:$20 sps:$4 sm:$0xff]  }
  0x11   :  { %v1272_v49 = vld [vmem:[%s1457_s0 + $0x4] ss:$8 sps:$4 sm:$0xff]   ;;  %v1058_v50 = vld [vmem:[%s1456_s1 + $0x1bc] ss:$20 sps:$4 sm:$0xff]   ;;  %v1063_v53 = vld [vmem:[%s1456_s1 + $0x1c0] ss:$20 sps:$4 sm:$0xff]  }
  0x12   :  { %v1060_v51 = vld [vmem:[%s1456_s1 + $0x1c4] ss:$20 sps:$4 sm:$0xff]   ;;  %607 = vmatprep.mubr.bf16.mxu0 %v1272_v49  ;;  %660 = vmatprep.mubr.bf16.mxu1 %v1272_v49  ;;  %v1064_v54 = vld [vmem:[%s1456_s1 + $0x194] ss:$20 sps:$4 sm:$0xff]   ;;  %v1066_v55 = vld [vmem:[%s1456_s1 + $0x19c] ss:$20 sps:$4 sm:$0xff]  }
  0x13   :  { %584 = vmatpush1.bf16.msra.mxu0 %v1014_v19  ;;  %637 = vmatpush1.bf16.msra.mxu1 %v1015_v20  ;;  %v1062_v52 = vld [vmem:[%s1456_s1 + $0x1b8] ss:$20 sps:$4 sm:$0xff]   ;;  %v1068_v56 = vld [vmem:[%s1456_s1 + $0x190] ss:$20 sps:$4 sm:$0xff]   ;;  %v1072_v59 = vld [vmem:[%s1456_s1 + $0x174] ss:$20 sps:$4 sm:$0xff]  }
  0x14   :  { %585 = vmatprep.subr.bf16.mxu0 %v1016_v21  ;;  %638 = vmatprep.subr.bf16.mxu1 %v1018_v22  ;;  %v1069_v57 = vld [vmem:[%s1456_s1 + $0x198] ss:$20 sps:$4 sm:$0xff]   ;;  %v1074_v60 = vld [vmem:[%s1456_s1 + $0x168] ss:$20 sps:$4 sm:$0xff]   ;;  %v1075_v61 = vld [vmem:[%s1456_s1 + $0x170] ss:$20 sps:$4 sm:$0xff]  }
  0x15   :  { %v1070_v58 = vld [vmem:[%s1456_s1 + $0x16c] ss:$20 sps:$4 sm:$0xff]   ;;  %v1076_v62 = vld [vmem:[%s1456_s1 + $0x144] ss:$20 sps:$4 sm:$0xff]   ;;  %v1081_v1 = vld [vmem:[%s1456_s1 + $0x148] ss:$20 sps:$4 sm:$0xff]  }
  0x16   :  { %v1078_v63 = vld [vmem:[%s1456_s1 + $0x14c] ss:$20 sps:$4 sm:$0xff]   ;;  %v1085_v2 = vld [vmem:[%s1456_s1 + $0x268] ss:$20 sps:$4 sm:$0xff]   ;;  %v117_v4 = vld [vmem:[%s1458_s2 + $0x10] sm:$0xff] }
  0x17   :  { %586 = vmatpush1.bf16.msra.mxu0 %v1020_v23  ;;  %639 = vmatpush1.bf16.msra.mxu1 %v1021_v24  ;;  %v1080_v0 = vld [vmem:[%s1456_s1 + $0x140] ss:$20 sps:$4 sm:$0xff]   ;;  %v116_v6 = vld [vmem:[%s1458_s2 + $0x8] sm:$0xff]  ;;  %v118_v11 = vld [vmem:[%s1458_s2 + $0x18] sm:$0xff] }
  0x18   :  { %587 = vmatprep.subr.bf16.mxu0 %v1022_v25  ;;  %640 = vmatprep.subr.bf16.mxu1 %v1024_v26  ;;  %v115_v3 = vld [vmem:[%s1458_s2] sm:$0xff]  ;;  %v1086_v7 = vld [vmem:[%s1456_s1 + $0x128] ss:$20 sps:$4 sm:$0xff]   ;;  %v1089_v12 = vld [vmem:[%s1456_s1 + $0x218] ss:$20 sps:$4 sm:$0xff]  }
  0x19   :  { %121 = vperm.xlu0 %984, %v115_v3   ;;  %v1336_v5 = vld [vmem:[%s1457_s0] ss:$8 sps:$4 sm:$0xff]   ;;  %131 = vperm.xlu1 %985, %v117_v4   ;;  %v1094_v9 = vld [vmem:[%s1457_s0 + $0x14] ss:$8 sps:$4 sm:$0xff]   ;;  %v1097_v13 = vld [vmem:[%s1457_s0 + $0x10] ss:$8 sps:$4 sm:$0xff]  }
  0x1a   :  { %v1087_v8 = vld [vmem:[%s1456_s1 + $0x240] ss:$20 sps:$4 sm:$0xff]   ;;  %v1090_v14 = vld [vmem:[%s1456_s1 + $0xd8] ss:$20 sps:$4 sm:$0xff]   ;;  %v1091_v15 = vld [vmem:[%s1456_s1 + $0x1f0] ss:$20 sps:$4 sm:$0xff]  }
  0x1b   :  { %588 = vmatpush1.bf16.msra.mxu0 %v1026_v27  ;;  %641 = vmatpush1.bf16.msra.mxu1 %v1027_v28  ;;  %v1088_v10 = vld [vmem:[%s1456_s1 + $0x100] ss:$20 sps:$4 sm:$0xff]   ;;  %v1092_v16 = vld [vmem:[%s1456_s1 + $0xb0] ss:$20 sps:$4 sm:$0xff]   ;;  %v1093_v17 = vld [vmem:[%s1456_s1 + $0x1c8] ss:$20 sps:$4 sm:$0xff]  }
  0x1c   :  { %589 = vmatprep.subr.bf16.mxu0 %v1028_v29  ;;  %642 = vmatprep.subr.bf16.mxu1 %v1030_v30  ;;  %v1096_v18 = vld [vmem:[%s1456_s1 + $0x88] ss:$20 sps:$4 sm:$0xff]   ;;  %v1098_v19 = vld [vmem:[%s1456_s1 + $0x1a0] ss:$20 sps:$4 sm:$0xff]   ;;  %v1100_v21 = vld [vmem:[%s1456_s1 + $0x178] ss:$20 sps:$4 sm:$0xff]  }
  0x1d   :  { %126 = vperm.xlu0 %984, %v116_v6   ;;  %136 = vperm.xlu1 %985, %v118_v11   ;;  %v1099_v20 = vld [vmem:[%s1456_s1 + $0x60] ss:$20 sps:$4 sm:$0xff]   ;;  %v1101_v22 = vld [vmem:[%s1456_s1 + $0x38] ss:$20 sps:$4 sm:$0xff]   ;;  %v1102_v23 = vld [vmem:[%s1456_s1 + $0x150] ss:$20 sps:$4 sm:$0xff]  }
  0x1e   :  { %v1103_v24 = vld [vmem:[%s1456_s1 + $0x10] ss:$20 sps:$4 sm:$0xff]  }
  0x1f   :  { %590 = vmatpush1.bf16.msra.mxu0 %v1032_v31  ;;  %643 = vmatpush1.bf16.msra.mxu1 %v1033_v32 }
  0x20   :  { %591 = vmatprep.subr.bf16.mxu0 %v1034_v33  ;;  %644 = vmatprep.subr.bf16.mxu1 %v1036_v34 }
  0x23   :  { %592 = vmatpush2.bf16.msra.mxu0 %v1038_v35  ;;  %645 = vmatpush2.bf16.msra.mxu1 %v1039_v36 }
  0x24   :  { %593 = vmatprep.subr.bf16.mxu0 %v1040_v37  ;;  %646 = vmatprep.subr.bf16.mxu1 %v1042_v38 }
  0x27   :  { %594 = vmatpush2.bf16.msra.mxu0 %v1044_v39  ;;  %647 = vmatpush2.bf16.msra.mxu1 %v1045_v40 }
  0x28   :  { %595 = vmatprep.subr.bf16.mxu0 %v1046_v41  ;;  %648 = vmatprep.subr.bf16.mxu1 %v1048_v42 }
  0x2b   :  { %596 = vmatpush2.bf16.msra.mxu0 %v1050_v43  ;;  %649 = vmatpush2.bf16.msra.mxu1 %v1051_v44 }
  0x2c   :  { %597 = vmatprep.subr.bf16.mxu0 %v1052_v45  ;;  %650 = vmatprep.subr.bf16.mxu1 %v1054_v46 }
  0x2f   :  { %598 = vmatpush2.bf16.msra.mxu0 %v1056_v47  ;;  %651 = vmatpush2.bf16.msra.mxu1 %v1057_v48 }
  0x30   :  { %599 = vmatprep.subr.bf16.mxu0 %v1058_v50  ;;  %652 = vmatprep.subr.bf16.mxu1 %v1060_v51 }
  0x33   :  { %600 = vmatpush2.bf16.msra.mxu0 %v1062_v52  ;;  %653 = vmatpush2.bf16.msra.mxu1 %v1063_v53 }
  0x34   :  { %601 = vmatprep.subr.bf16.mxu0 %v1064_v54  ;;  %654 = vmatprep.subr.bf16.mxu1 %v1066_v55 }
  0x37   :  { %602 = vmatpush2.bf16.msra.mxu0 %v1068_v56  ;;  %655 = vmatpush2.bf16.msra.mxu1 %v1069_v57 }
  0x38   :  { %603 = vmatprep.subr.bf16.mxu0 %v1070_v58  ;;  %656 = vmatprep.subr.bf16.mxu1 %v1072_v59 }
  0x3b   :  { %604 = vmatpush2.bf16.msra.mxu0 %v1074_v60  ;;  %657 = vmatpush2.bf16.msra.mxu1 %v1075_v61 }
  0x3c   :  { %605 = vmatprep.subr.bf16.mxu0 %v1076_v62  ;;  %658 = vmatprep.subr.bf16.mxu1 %v1078_v63 }
  0x3f   :  { %606 = vmatpush2.bf16.msra.mxu0 %v1080_v0  ;;  %659 = vmatpush2.bf16.msra.mxu1 %v1081_v1 }
  0x40   :  { %939 = vmatprep.subr.bf16.mxu0 %v1085_v2  ;;  %967 = vmatprep.subr.bf16.mxu1 %v1085_v2 }
  0x42   :  { %608 = vmatmul.mubr.bf16.vlgmr.msra.gmra.mxu0 %v1336_v5  ;;  %661 = vmatmul.mubr.bf16.vlgmr.msra.gmra.mxu1 %v1336_v5 }
  0x43   :  { %940 = vmatpush3.bf16.msra.mxu0 %v1086_v7  ;;  %975 = vmatpush3.bf16.msra.mxu1 %v1086_v7 }
  0x44   :  { %941 = vmatprep.subr.bf16.mxu0 %v1087_v8  ;;  %968 = vmatprep.subr.bf16.mxu1 %v1087_v8 }
  0x45   :  { %617 = vmatprep.mubr.bf16.mxu0 %v1094_v9  ;;  %670 = vmatprep.mubr.bf16.mxu1 %v1094_v9 }
  0x47   :  { %942 = vmatpush3.bf16.msra.mxu0 %v1088_v10  ;;  %976 = vmatpush3.bf16.msra.mxu1 %v1088_v10 }
  0x48   :  { %943 = vmatprep.subr.bf16.mxu0 %v1089_v12  ;;  %969 = vmatprep.subr.bf16.mxu1 %v1089_v12 }
  0x4a   :  { %618 = vmatmul.mubr.bf16.gmra.mxu0 %v1097_v13  ;;  %671 = vmatmul.mubr.bf16.gmra.mxu1 %v1097_v13 }
  0x4b   :  { %944 = vmatpush3.bf16.msra.mxu0 %v1090_v14  ;;  %977 = vmatpush3.bf16.msra.mxu1 %v1090_v14 }
  0x4c   :  { %945 = vmatprep.subr.bf16.mxu0 %v1091_v15  ;;  %970 = vmatprep.subr.bf16.mxu1 %v1091_v15 }
  0x4d   :  { %713 = vmatprep.mubr.bf16.mxu0 %v1272_v49  ;;  %721 = vmatprep.mubr.bf16.mxu1 %v1094_v9 }
  0x4f   :  { %946 = vmatpush3.bf16.msra.mxu0 %v1092_v16  ;;  %978 = vmatpush3.bf16.msra.mxu1 %v1092_v16 }
  0x50   :  { %947 = vmatprep.subr.bf16.mxu0 %v1093_v17  ;;  %971 = vmatprep.subr.bf16.mxu1 %v1093_v17 }
  0x53   :  { %948 = vmatpush3.bf16.msra.mxu0 %v1096_v18  ;;  %979 = vmatpush3.bf16.msra.mxu1 %v1096_v18 }
  0x54   :  { %949 = vmatprep.subr.bf16.mxu0 %v1098_v19  ;;  %972 = vmatprep.subr.bf16.mxu1 %v1098_v19 }
  0x57   :  { %950 = vmatpush3.bf16.msra.mxu0 %v1099_v20  ;;  %980 = vmatpush3.bf16.msra.mxu1 %v1099_v20 }
  0x58   :  { %951 = vmatprep.subr.bf16.mxu0 %v1100_v21  ;;  %973 = vmatprep.subr.bf16.mxu1 %v1100_v21 }
  0x5b   :  { %952 = vmatpush3.bf16.msra.mxu0 %v1101_v22  ;;  %981 = vmatpush3.bf16.msra.mxu1 %v1101_v22 }
  0x5c   :  { %953 = vmatprep.subr.bf16.mxu0 %v1102_v23  ;;  %974 = vmatprep.subr.bf16.mxu1 %v1102_v23 }
  0x5f   :  { %954 = vmatpush3.bf16.msra.mxu0 %v1103_v24  ;;  %982 = vmatpush3.bf16.msra.mxu1 %v1103_v24 }
  0x62   :  { %714 = vmatmul.mubr.bf16.vlgmr.msra.gmra.mxu0 %v1336_v5  ;;  %722 = vmatmul.mubr.bf16.vlgmr.msra.gmra.mxu1 %v1097_v13 }
  0x94   :  { %v1399_v25 = vpop.permute.xlu0 %121  ;;  %v1407_v37 = vpop.permute.xlu1 %131 }
  0x98   :  { %v1405_v36 = vpop.permute.xlu0 %126  ;;  %v137_v54 = vpop.permute.xlu1 %136 }
 0x102   :  { %v609_v26 = vpop.f32.mrf.mxu0  ;;  %v662_v27 = vpop.f32.mrf.mxu1 }
 0x103   :  { %v610_v28 = vadd.f32 %v609_v26, %v1399_v25  ;;  %v663_v29 = vadd.f32 %v662_v27, %v1399_v25 }
 0x104   :  { %v611_v30 = vpop.f32.mrf.mxu0  ;;  %v664_v31 = vpop.f32.mrf.mxu1 }
 0x105   :  { %v730_v32 = vmax.f32 %v610_v28, 0.0  ;;  %v732_v33 = vmax.f32 %v663_v29, 0.0  ;;  %v612_v34 = vadd.f32 %v611_v30, %v1399_v25  ;;  %v665_v35 = vadd.f32 %v664_v31, %v1399_v25 }
 0x106   :  { %v613_v38 = vpop.f32.mrf.mxu0  ;;  %v666_v39 = vpop.f32.mrf.mxu1 }
 0x107   :  { %v731_v40 = vmax.f32 %v612_v34, 0.0  ;;  %v733_v41 = vmax.f32 %v665_v35, 0.0  ;;  %v614_v42 = vadd.f32 %v613_v38, %v1405_v36  ;;  %v667_v43 = vadd.f32 %v666_v39, %v1405_v36 }
 0x108   :  { %v615_v44 = vpop.f32.mrf.mxu0  ;;  %v668_v45 = vpop.f32.mrf.mxu1 }
 0x109   :  { %v927_v46 = vpack.c.bf16 %v731_v40, %v730_v32  ;;  %v928_v47 = vpack.c.bf16 %v733_v41, %v732_v33  ;;  %v616_v48 = vadd.f32 %v615_v44, %v1405_v36  ;;  %v669_v49 = vadd.f32 %v668_v45, %v1405_v36 }
 0x10a   :  { %v619_v50 = vpop.f32.mrf.mxu0  ;;  %v672_v51 = vpop.f32.mrf.mxu1  ;;  %v735_v55 = vmax.f32 %v614_v42, 0.0  ;;  %v737_v56 = vmax.f32 %v667_v43, 0.0 }
 0x10b   :  { %814 = vst [vmem:[%s1459_s3] sm:$0xff] %v927_v46  ;;  %815 = vst [vmem:[%s1459_s3 + $0x8] sm:$0xff] %v928_v47  ;;  %v620_v52 = vadd.f32 %v619_v50, %v1407_v37  ;;  %v673_v53 = vadd.f32 %v672_v51, %v1407_v37  ;;  %v736_v57 = vmax.f32 %v616_v48, 0.0  ;;  %v738_v58 = vmax.f32 %v669_v49, 0.0 }
 0x10c   :  { %v621_v59 = vpop.f32.mrf.mxu0  ;;  %v674_v60 = vpop.f32.mrf.mxu1 }
 0x10d   :  { %v622_v61 = vadd.f32 %v621_v59, %v1407_v37  ;;  %v740_v62 = vmax.f32 %v620_v52, 0.0  ;;  %v675_v63 = vadd.f32 %v674_v60, %v1407_v37  ;;  %v742_v0 = vmax.f32 %v673_v53, 0.0 }
 0x10e   :  { %v930_v1 = vpack.c.bf16 %v736_v57, %v735_v55  ;;  %v931_v2 = vpack.c.bf16 %v738_v58, %v737_v56  ;;  %v623_v3 = vpop.f32.mrf.mxu0  ;;  %v676_v4 = vpop.f32.mrf.mxu1 }
 0x10f   :  { %v741_v5 = vmax.f32 %v622_v61, 0.0  ;;  %v743_v6 = vmax.f32 %v675_v63, 0.0  ;;  %v624_v7 = vadd.f32 %v623_v3, %v137_v54  ;;  %v677_v8 = vadd.f32 %v676_v4, %v137_v54 }
 0x110   :  { %818 = vst [vmem:[%s1459_s3 + $0x14] sm:$0xff] %v930_v1  ;;  %819 = vst [vmem:[%s1459_s3 + $0x1c] sm:$0xff] %v931_v2  ;;  %v625_v9 = vpop.f32.mrf.mxu0  ;;  %v678_v10 = vpop.f32.mrf.mxu1 }
 0x111   :  { %v933_v11 = vpack.c.bf16 %v741_v5, %v740_v62  ;;  %v934_v12 = vpack.c.bf16 %v743_v6, %v742_v0  ;;  %v626_v13 = vadd.f32 %v625_v9, %v137_v54  ;;  %v745_v14 = vmax.f32 %v624_v7, 0.0 }
 0x112   :  { %v679_v15 = vadd.f32 %v678_v10, %v137_v54  ;;  %v747_v16 = vmax.f32 %v677_v8, 0.0 }
 0x113   :  { %821 = vst [vmem:[%s1459_s3 + $0x28] sm:$0xff] %v933_v11  ;;  %822 = vst [vmem:[%s1459_s3 + $0x30] sm:$0xff] %v934_v12  ;;  %v746_v17 = vmax.f32 %v626_v13, 0.0 }
 0x114   :  { %v748_v18 = vmax.f32 %v679_v15, 0.0 }
 0x115   :  { %v936_v19 = vpack.c.bf16 %v746_v17, %v745_v14 }
 0x116   :  { %v937_v20 = vpack.c.bf16 %v748_v18, %v747_v16 }
 0x117   :  { %824 = vst [vmem:[%s1459_s3 + $0x3c] sm:$0xff] %v936_v19 }
 0x118   :  { %825 = vst [vmem:[%s1459_s3 + $0x44] sm:$0xff] %v937_v20 }
 0x122   :  { %v955_v21 = vpop.f32.mrf.mxu0  ;;  %v961_v22 = vpop.f32.mrf.mxu1 }
 0x124   :  { %v956_v23 = vpop.f32.mrf.mxu0  ;;  %v962_v24 = vpop.f32.mrf.mxu1 }
 0x125   :  { %v957_v26 = vadd.f32 %v956_v23, %v955_v21  ;;  %v963_v27 = vadd.f32 %v962_v24, %v961_v22 }
 0x126   :  { %v958_v28 = vpop.f32.mrf.mxu0  ;;  %v964_v29 = vpop.f32.mrf.mxu1 }
 0x127   :  { %v716_v30 = vadd.f32 %v957_v26, %v1399_v25  ;;  %v724_v31 = vadd.f32 %v963_v27, %v1407_v37 }
 0x128   :  { %v959_v32 = vpop.f32.mrf.mxu0  ;;  %v965_v33 = vpop.f32.mrf.mxu1 }
 0x129   :  { %v734_v34 = vmax.f32 %v716_v30, 0.0  ;;  %v744_v35 = vmax.f32 %v724_v31, 0.0  ;;  %v960_v38 = vadd.f32 %v959_v32, %v958_v28  ;;  %v966_v39 = vadd.f32 %v965_v33, %v964_v29 }
 0x12b   :  { %v929_v40 = vpack.c.bf16 %v734_v34, %v734_v34  ;;  %v935_v41 = vpack.c.bf16 %v744_v35, %v744_v35  ;;  %v719_v42 = vadd.f32 %v960_v38, %v1405_v36  ;;  %v727_v43 = vadd.f32 %v966_v39, %v137_v54 }
 0x12d   :  { %817 = vst.msk [vmem:[%s1459_s3 + $0x10] sm:$0xf] %vm816_vm0, %v929_v40  ;;  %823 = vst.msk [vmem:[%s1459_s3 + $0x38] sm:$0xf] %vm816_vm0, %v935_v41  ;;  %v739_v25 = vmax.f32 %v719_v42, 0.0  ;;  %v749_v37 = vmax.f32 %v727_v43, 0.0 }
 0x12f   :  { %v932_v44 = vpack.c.bf16 %v739_v25, %v739_v25  ;;  %v938_v45 = vpack.c.bf16 %v749_v37, %v749_v37 }
 0x131   :  { %820 = vst.msk [vmem:[%s1459_s3 + $0x24] sm:$0xf] %vm816_vm0, %v932_v44  ;;  %826 = vst.msk [vmem:[%s1459_s3 + $0x4c] sm:$0xf] %vm816_vm0, %v938_v45 }

// kernel: dt_forward.7
= control target key start
LH: loop header
LB: loop body
LE: loop exit
PB: predicated region body
PF: predicated region fallthrough
CT: control target
= control target key end

     0   :  { %vm2995_vm0 = vmmov 0   ;;  %s3661_s1 = inlined_call_operand.vmem [shape: bf16[3200,128], index: 1, kind: input, shape index: {}]   ;;  %s3662_s0 = inlined_call_operand.vmem [shape: bf16[8,3200], index: 0, kind: input, shape index: {}]   ;;  %s3663_s2 = inlined_call_operand.vmem [shape: f32[1,128], index: 2, kind: input, shape index: {}]   ;;  %s3664_s3 = inlined_call_operand.vmem [shape: f32[8,128], index: 3, kind: output, shape index: {}]  }
   0x1   :  { %v2769_v0 = vld [vmem:[%s3661_s1 + $0x78] sm:$0xff]   ;;  %v2773_v4 = vld [vmem:[%s3661_s1 + $0x70] sm:$0xff]   ;;  %v2777_v8 = vld [vmem:[%s3661_s1 + $0x68] sm:$0xff]  }
   0x2   :  { %v2770_v1 = vld [vmem:[%s3661_s1 + $0x38] sm:$0xff]   ;;  %2474 = vmatprep.subr.bf16.mxu0 %v2769_v0  ;;  %v2774_v5 = vld [vmem:[%s3661_s1 + $0x30] sm:$0xff]   ;;  %v2778_v9 = vld [vmem:[%s3661_s1 + $0x28] sm:$0xff]  }
   0x3   :  { %v2771_v2 = vld [vmem:[%s3661_s1 + $0xf8] sm:$0xff]   ;;  %2475 = vmatpush3.bf16.msra.mxu0 %v2770_v1  ;;  %v2775_v6 = vld [vmem:[%s3661_s1 + $0xf0] sm:$0xff]   ;;  %v2779_v10 = vld [vmem:[%s3661_s1 + $0xe8] sm:$0xff]  }
   0x4   :  { %v2772_v3 = vld [vmem:[%s3661_s1 + $0xb8] sm:$0xff]   ;;  %2496 = vmatprep.subr.bf16.mxu1 %v2771_v2  ;;  %2476 = vmatprep.subr.bf16.mxu0 %v2773_v4  ;;  %v2776_v7 = vld [vmem:[%s3661_s1 + $0xb0] sm:$0xff]   ;;  %v2780_v11 = vld [vmem:[%s3661_s1 + $0xa8] sm:$0xff]  }
   0x5   :  { %2497 = vmatpush3.bf16.msra.mxu1 %v2772_v3  ;;  %v2781_v12 = vld [vmem:[%s3661_s1 + $0x60] sm:$0xff]   ;;  %v2785_v16 = vld [vmem:[%s3661_s1 + $0x58] sm:$0xff]   ;;  %v2789_v20 = vld [vmem:[%s3661_s1 + $0x50] sm:$0xff]  }
   0x6   :  { %2498 = vmatprep.subr.bf16.mxu1 %v2775_v6  ;;  %v2782_v13 = vld [vmem:[%s3661_s1 + $0x20] sm:$0xff]   ;;  %v2786_v17 = vld [vmem:[%s3661_s1 + $0x18] sm:$0xff]   ;;  %v2790_v21 = vld [vmem:[%s3661_s1 + $0x10] sm:$0xff]  }
   0x7   :  { %2477 = vmatpush3.bf16.msra.mxu0 %v2774_v5  ;;  %v2783_v14 = vld [vmem:[%s3661_s1 + $0xe0] sm:$0xff]   ;;  %v2787_v18 = vld [vmem:[%s3661_s1 + $0xd8] sm:$0xff]   ;;  %v2791_v22 = vld [vmem:[%s3661_s1 + $0xd0] sm:$0xff]  }
   0x8   :  { %2478 = vmatprep.subr.bf16.mxu0 %v2777_v8  ;;  %v2784_v15 = vld [vmem:[%s3661_s1 + $0xa0] sm:$0xff]   ;;  %v2788_v19 = vld [vmem:[%s3661_s1 + $0x98] sm:$0xff]   ;;  %v2792_v23 = vld [vmem:[%s3661_s1 + $0x90] sm:$0xff]  }
   0x9   :  { %2499 = vmatpush3.bf16.msra.mxu1 %v2776_v7  ;;  %v2793_v24 = vld [vmem:[%s3661_s1 + $0x48] sm:$0xff]   ;;  %v2797_v28 = vld [vmem:[%s3661_s1 + $0x40] sm:$0xff]   ;;  %v2803_v35 = vld [vmem:[%s3661_s1 + $0x178] sm:$0xff]  }
   0xa   :  { %2500 = vmatprep.subr.bf16.mxu1 %v2779_v10  ;;  %v2794_v25 = vld [vmem:[%s3661_s1 + $0x8] sm:$0xff]   ;;  %v2798_v29 = vld [vmem:[%s3661_s1] sm:$0xff]   ;;  %v2806_v39 = vld [vmem:[%s3661_s1 + $0x138] sm:$0xff]  }
   0xb   :  { %2479 = vmatpush3.bf16.msra.mxu0 %v2778_v9  ;;  %v2795_v26 = vld [vmem:[%s3661_s1 + $0xc8] sm:$0xff]   ;;  %v2799_v30 = vld [vmem:[%s3661_s1 + $0xc0] sm:$0xff]   ;;  %v2807_v40 = vld [vmem:[%s3661_s1 + $0x1f8] sm:$0xff]  }
   0xc   :  { %2480 = vmatprep.subr.bf16.mxu0 %v2781_v12  ;;  %v2796_v27 = vld [vmem:[%s3661_s1 + $0x88] sm:$0xff]   ;;  %v15_v31 = vld [vmem:[%s3662_s0] sm:$0xff]  ;;  %v2808_v41 = vld [vmem:[%s3661_s1 + $0x1b8] sm:$0xff]  }
   0xd   :  { %2501 = vmatpush3.bf16.msra.mxu1 %v2780_v11  ;;  %v2249_v32 = vcombine.low %v15_v31, %v15_v31  ;;  %v2250_v33 = vcombine.high %v15_v31, %v15_v31  ;;  %v2802_v34 = vld [vmem:[%s3661_s1 + $0x80] sm:$0xff]   ;;  %v16_v36 = vld [vmem:[%s3662_s0 + $0x8] sm:$0xff]  ;;  %v2809_v42 = vld [vmem:[%s3661_s1 + $0x170] sm:$0xff]  }
   0xe   :  { %2502 = vmatprep.subr.bf16.mxu1 %v2783_v14  ;;  %v2251_v37 = vcombine.low %v16_v36, %v16_v36  ;;  %v2252_v38 = vcombine.high %v16_v36, %v16_v36  ;;  %v2810_v43 = vld [vmem:[%s3661_s1 + $0x130] sm:$0xff]   ;;  %v2813_v46 = vld [vmem:[%s3661_s1 + $0x168] sm:$0xff]   ;;  %v2817_v50 = vld [vmem:[%s3661_s1 + $0x160] sm:$0xff]  }
   0xf   :  { %2481 = vmatpush3.bf16.msra.mxu0 %v2782_v13  ;;  %1755 = vmatprep.mubr.bf16.mxu0 %v2250_v33  ;;  %v2811_v44 = vld [vmem:[%s3661_s1 + $0x1f0] sm:$0xff]   ;;  %v2814_v47 = vld [vmem:[%s3661_s1 + $0x128] sm:$0xff]   ;;  %v2818_v51 = vld [vmem:[%s3661_s1 + $0x120] sm:$0xff]  }
  0x10   :  { %2482 = vmatprep.subr.bf16.mxu0 %v2785_v16  ;;  %1795 = vmatprep.mubr.bf16.mxu1 %v2252_v38  ;;  %v2812_v45 = vld [vmem:[%s3661_s1 + $0x1b0] sm:$0xff]   ;;  %v2815_v48 = vld [vmem:[%s3661_s1 + $0x1e8] sm:$0xff]   ;;  %v2819_v52 = vld [vmem:[%s3661_s1 + $0x1e0] sm:$0xff]  }
  0x11   :  { %2503 = vmatpush3.bf16.msra.mxu1 %v2784_v15  ;;  %v2816_v49 = vld [vmem:[%s3661_s1 + $0x1a8] sm:$0xff]   ;;  %v2820_v53 = vld [vmem:[%s3661_s1 + $0x1a0] sm:$0xff]   ;;  %v2821_v54 = vld [vmem:[%s3661_s1 + $0x158] sm:$0xff]  }
  0x12   :  { %2504 = vmatprep.subr.bf16.mxu1 %v2787_v18  ;;  %v2822_v55 = vld [vmem:[%s3661_s1 + $0x118] sm:$0xff]   ;;  %v2825_v58 = vld [vmem:[%s3661_s1 + $0x150] sm:$0xff]   ;;  %v2829_v62 = vld [vmem:[%s3661_s1 + $0x148] sm:$0xff]  }
  0x13   :  { %2483 = vmatpush3.bf16.msra.mxu0 %v2786_v17  ;;  %v2823_v56 = vld [vmem:[%s3661_s1 + $0x1d8] sm:$0xff]   ;;  %v2826_v59 = vld [vmem:[%s3661_s1 + $0x110] sm:$0xff]   ;;  %v2830_v63 = vld [vmem:[%s3661_s1 + $0x108] sm:$0xff]  }
  0x14   :  { %2484 = vmatprep.subr.bf16.mxu0 %v2789_v20  ;;  %v2824_v57 = vld [vmem:[%s3661_s1 + $0x198] sm:$0xff]   ;;  %v2827_v60 = vld [vmem:[%s3661_s1 + $0x1d0] sm:$0xff]   ;;  %v2831_v0 = vld [vmem:[%s3661_s1 + $0x1c8] sm:$0xff]  }
  0x15   :  { %2505 = vmatpush3.bf16.msra.mxu1 %v2788_v19  ;;  %v2828_v61 = vld [vmem:[%s3661_s1 + $0x190] sm:$0xff]   ;;  %v2832_v1 = vld [vmem:[%s3661_s1 + $0x188] sm:$0xff]   ;;  %v2833_v2 = vld [vmem:[%s3661_s1 + $0x140] sm:$0xff]  }
  0x16   :  { %2506 = vmatprep.subr.bf16.mxu1 %v2791_v22  ;;  %v2834_v3 = vld [vmem:[%s3661_s1 + $0x100] sm:$0xff]   ;;  %v17_v5 = vld [vmem:[%s3662_s0 + $0x10] sm:$0xff]  ;;  %v2839_v9 = vld [vmem:[%s3661_s1 + $0x278] sm:$0xff]  }
  0x17   :  { %2485 = vmatpush3.bf16.msra.mxu0 %v2790_v21  ;;  %v2835_v4 = vld [vmem:[%s3661_s1 + $0x1c0] sm:$0xff]   ;;  %v2253_v6 = vcombine.low %v17_v5, %v17_v5  ;;  %v2254_v7 = vcombine.high %v17_v5, %v17_v5  ;;  %v18_v10 = vld [vmem:[%s3662_s0 + $0x18] sm:$0xff]  ;;  %v2845_v16 = vld [vmem:[%s3661_s1 + $0x270] sm:$0xff]  }
  0x18   :  { %2486 = vmatprep.subr.bf16.mxu0 %v2793_v24  ;;  %v2838_v8 = vld [vmem:[%s3661_s1 + $0x180] sm:$0xff]   ;;  %v2255_v11 = vcombine.low %v18_v10, %v18_v10  ;;  %v2256_v12 = vcombine.high %v18_v10, %v18_v10  ;;  %v2842_v13 = vld [vmem:[%s3661_s1 + $0x238] sm:$0xff]   ;;  %v2846_v17 = vld [vmem:[%s3661_s1 + $0x230] sm:$0xff]  }
  0x19   :  { %2507 = vmatpush3.bf16.msra.mxu1 %v2792_v23  ;;  %v2843_v14 = vld [vmem:[%s3661_s1 + $0x2f8] sm:$0xff]   ;;  %v2847_v18 = vld [vmem:[%s3661_s1 + $0x2f0] sm:$0xff]   ;;  %v2849_v20 = vld [vmem:[%s3661_s1 + $0x268] sm:$0xff]  }
  0x1a   :  { %2508 = vmatprep.subr.bf16.mxu1 %v2795_v26  ;;  %v2844_v15 = vld [vmem:[%s3661_s1 + $0x2b8] sm:$0xff]   ;;  %v2848_v19 = vld [vmem:[%s3661_s1 + $0x2b0] sm:$0xff]   ;;  %v2850_v21 = vld [vmem:[%s3661_s1 + $0x228] sm:$0xff]  }
  0x1b   :  { %2487 = vmatpush3.bf16.msra.mxu0 %v2794_v25  ;;  %v2851_v22 = vld [vmem:[%s3661_s1 + $0x2e8] sm:$0xff]   ;;  %v2853_v24 = vld [vmem:[%s3661_s1 + $0x260] sm:$0xff]   ;;  %v2860_v31 = vld [vmem:[%s3661_s1 + $0x298] sm:$0xff]  }
  0x1c   :  { %2488 = vmatprep.subr.bf16.mxu0 %v2797_v28  ;;  %v2852_v23 = vld [vmem:[%s3661_s1 + $0x2a8] sm:$0xff]   ;;  %v2854_v25 = vld [vmem:[%s3661_s1 + $0x220] sm:$0xff]   ;;  %v2857_v28 = vld [vmem:[%s3661_s1 + $0x258] sm:$0xff]  }
  0x1d   :  { %2509 = vmatpush3.bf16.msra.mxu1 %v2796_v27  ;;  %v2855_v26 = vld [vmem:[%s3661_s1 + $0x2e0] sm:$0xff]   ;;  %v2862_v33 = vld [vmem:[%s3661_s1 + $0x210] sm:$0xff]   ;;  %v2865_v36 = vld [vmem:[%s3661_s1 + $0x248] sm:$0xff]  }
  0x1e   :  { %2510 = vmatprep.subr.bf16.mxu1 %v2799_v30  ;;  %v2856_v27 = vld [vmem:[%s3661_s1 + $0x2a0] sm:$0xff]   ;;  %v2859_v30 = vld [vmem:[%s3661_s1 + $0x2d8] sm:$0xff]   ;;  %v2867_v38 = vld [vmem:[%s3661_s1 + $0x2c8] sm:$0xff]  }
  0x1f   :  { %2489 = vmatpush3.bf16.msra.mxu0 %v2798_v29  ;;  %v2858_v29 = vld [vmem:[%s3661_s1 + $0x218] sm:$0xff]   ;;  %v2901_v10 = vld [vmem:[%s3661_s1 + $0x348] sm:$0xff]  }
  0x20   :  { %2518 = vmatprep.subr.bf16.mxu0 %v2803_v35  ;;  %v2864_v35 = vld [vmem:[%s3661_s1 + $0x290] sm:$0xff]   ;;  %v2896_v5 = vld [vmem:[%s3661_s1 + $0x398] sm:$0xff]  }
  0x21   :  { %2511 = vmatpush3.bf16.msra.mxu1 %v2802_v34  ;;  %v2863_v34 = vld [vmem:[%s3661_s1 + $0x2d0] sm:$0xff]  }
  0x22   :  { %1756 = vmatmul.mubr.bf16.vlgmr.msra.gmra.mxu0 %v2249_v32  ;;  %2540 = vmatprep.subr.bf16.mxu1 %v2807_v40  ;;  %v2861_v32 = vld [vmem:[%s3661_s1 + $0x250] sm:$0xff]   ;;  %v2869_v40 = vld [vmem:[%s3661_s1 + $0x240] sm:$0xff]  }
  0x23   :  { %2519 = vmatpush3.bf16.msra.mxu0 %v2806_v39  ;;  %1835 = vmatprep.mubr.bf16.mxu0 %v2254_v7  ;;  %v2868_v39 = vld [vmem:[%s3661_s1 + $0x288] sm:$0xff]   ;;  %v2898_v7 = vld [vmem:[%s3661_s1 + $0x310] sm:$0xff]  }
  0x24   :  { %1796 = vmatmul.mubr.bf16.vlgmr.msra.gmra.mxu1 %v2251_v37  ;;  %2520 = vmatprep.subr.bf16.mxu0 %v2809_v42  ;;  %v2866_v37 = vld [vmem:[%s3661_s1 + $0x208] sm:$0xff]   ;;  %v2871_v42 = vld [vmem:[%s3661_s1 + $0x2c0] sm:$0xff]  }
  0x25   :  { %2541 = vmatpush3.bf16.msra.mxu1 %v2808_v41  ;;  %1875 = vmatprep.mubr.bf16.mxu1 %v2256_v12  ;;  %v2870_v41 = vld [vmem:[%s3661_s1 + $0x200] sm:$0xff]   ;;  %v2903_v12 = vld [vmem:[%s3661_s1 + $0x3c8] sm:$0xff]  }
  0x26   :  { %2542 = vmatprep.subr.bf16.mxu1 %v2811_v44 }
  0x27   :  { %2521 = vmatpush3.bf16.msra.mxu0 %v2810_v43  ;;  %v19_v43 = vld [vmem:[%s3662_s0 + $0x20] sm:$0xff] }
  0x28   :  { %2522 = vmatprep.subr.bf16.mxu0 %v2813_v46  ;;  %v2257_v44 = vcombine.low %v19_v43, %v19_v43  ;;  %v2874_v46 = vld [vmem:[%s3661_s1 + $0x280] sm:$0xff]  }
  0x29   :  { %2543 = vmatpush3.bf16.msra.mxu1 %v2812_v45  ;;  %v2258_v45 = vcombine.high %v19_v43, %v19_v43  ;;  %v2932_v43 = vld [vmem:[%s3661_s1 + $0x498] sm:$0xff]  }
  0x2a   :  { %2544 = vmatprep.subr.bf16.mxu1 %v2815_v48  ;;  %v20_v48 = vld [vmem:[%s3662_s0 + $0x28] sm:$0xff] }
  0x2b   :  { %2523 = vmatpush3.bf16.msra.mxu0 %v2814_v47  ;;  %v2875_v47 = vld [vmem:[%s3661_s1 + $0x378] sm:$0xff]  }
  0x2c   :  { %2524 = vmatprep.subr.bf16.mxu0 %v2817_v50  ;;  %v2260_v50 = vcombine.high %v20_v48, %v20_v48 }
  0x2d   :  { %2545 = vmatpush3.bf16.msra.mxu1 %v2816_v49  ;;  %v2259_v49 = vcombine.low %v20_v48, %v20_v48  ;;  %v2937_v48 = vld [vmem:[%s3661_s1 + $0x448] sm:$0xff]  }
  0x2e   :  { %2546 = vmatprep.subr.bf16.mxu1 %v2819_v52  ;;  %v2879_v52 = vld [vmem:[%s3661_s1 + $0x3f8] sm:$0xff]  }
  0x2f   :  { %2525 = vmatpush3.bf16.msra.mxu0 %v2818_v51  ;;  %v2878_v51 = vld [vmem:[%s3661_s1 + $0x338] sm:$0xff]  }
  0x30   :  { %2526 = vmatprep.subr.bf16.mxu0 %v2821_v54  ;;  %v2881_v54 = vld [vmem:[%s3661_s1 + $0x370] sm:$0xff]  }
  0x31   :  { %2547 = vmatpush3.bf16.msra.mxu1 %v2820_v53  ;;  %v2880_v53 = vld [vmem:[%s3661_s1 + $0x3b8] sm:$0xff]  }
  0x32   :  { %2548 = vmatprep.subr.bf16.mxu1 %v2823_v56  ;;  %v2883_v56 = vld [vmem:[%s3661_s1 + $0x3f0] sm:$0xff]  }
  0x33   :  { %2527 = vmatpush3.bf16.msra.mxu0 %v2822_v55  ;;  %v2882_v55 = vld [vmem:[%s3661_s1 + $0x330] sm:$0xff]  }
  0x34   :  { %2528 = vmatprep.subr.bf16.mxu0 %v2825_v58  ;;  %v2885_v58 = vld [vmem:[%s3661_s1 + $0x368] sm:$0xff]  }
  0x35   :  { %2549 = vmatpush3.bf16.msra.mxu1 %v2824_v57  ;;  %v2884_v57 = vld [vmem:[%s3661_s1 + $0x3b0] sm:$0xff]  }
  0x36   :  { %2550 = vmatprep.subr.bf16.mxu1 %v2827_v60  ;;  %v2887_v60 = vld [vmem:[%s3661_s1 + $0x3e8] sm:$0xff]  }
  0x37   :  { %2529 = vmatpush3.bf16.msra.mxu0 %v2826_v59  ;;  %v2886_v59 = vld [vmem:[%s3661_s1 + $0x328] sm:$0xff]  }
  0x38   :  { %2530 = vmatprep.subr.bf16.mxu0 %v2829_v62  ;;  %v2889_v62 = vld [vmem:[%s3661_s1 + $0x360] sm:$0xff]  }
  0x39   :  { %2551 = vmatpush3.bf16.msra.mxu1 %v2828_v61  ;;  %v2888_v61 = vld [vmem:[%s3661_s1 + $0x3a8] sm:$0xff]  }
  0x3a   :  { %2552 = vmatprep.subr.bf16.mxu1 %v2831_v0  ;;  %v2891_v0 = vld [vmem:[%s3661_s1 + $0x3e0] sm:$0xff]  }
  0x3b   :  { %2531 = vmatpush3.bf16.msra.mxu0 %v2830_v63  ;;  %v2890_v63 = vld [vmem:[%s3661_s1 + $0x320] sm:$0xff]  }
  0x3c   :  { %2532 = vmatprep.subr.bf16.mxu0 %v2833_v2  ;;  %v2893_v2 = vld [vmem:[%s3661_s1 + $0x358] sm:$0xff]  }
  0x3d   :  { %2553 = vmatpush3.bf16.msra.mxu1 %v2832_v1  ;;  %v2892_v1 = vld [vmem:[%s3661_s1 + $0x3a0] sm:$0xff]  }
  0x3e   :  { %2554 = vmatprep.subr.bf16.mxu1 %v2835_v4  ;;  %v2895_v4 = vld [vmem:[%s3661_s1 + $0x3d8] sm:$0xff]  }
  0x3f   :  { %2533 = vmatpush3.bf16.msra.mxu0 %v2834_v3  ;;  %v2894_v3 = vld [vmem:[%s3661_s1 + $0x318] sm:$0xff]  }
  0x40   :  { %2562 = vmatprep.subr.bf16.mxu0 %v2839_v9  ;;  %v2900_v9 = vld [vmem:[%s3661_s1 + $0x390] sm:$0xff]  }
  0x41   :  { %2555 = vmatpush3.bf16.msra.mxu1 %v2838_v8  ;;  %v2899_v8 = vld [vmem:[%s3661_s1 + $0x3d0] sm:$0xff]  }
  0x42   :  { %1836 = vmatmul.mubr.bf16.vlgmr.msra.gmra.mxu0 %v2253_v6  ;;  %2584 = vmatprep.subr.bf16.mxu1 %v2843_v14  ;;  %v2897_v6 = vld [vmem:[%s3661_s1 + $0x350] sm:$0xff]   ;;  %v2905_v14 = vld [vmem:[%s3661_s1 + $0x340] sm:$0xff]  }
  0x43   :  { %2563 = vmatpush3.bf16.msra.mxu0 %v2842_v13  ;;  %1915 = vmatprep.mubr.bf16.mxu0 %v2258_v45  ;;  %v2904_v13 = vld [vmem:[%s3661_s1 + $0x388] sm:$0xff]   ;;  %v2934_v45 = vld [vmem:[%s3661_s1 + $0x410] sm:$0xff]  }
  0x44   :  { %1876 = vmatmul.mubr.bf16.vlgmr.msra.gmra.mxu1 %v2255_v11  ;;  %2564 = vmatprep.subr.bf16.mxu0 %v2845_v16  ;;  %v2902_v11 = vld [vmem:[%s3661_s1 + $0x308] sm:$0xff]   ;;  %v2907_v16 = vld [vmem:[%s3661_s1 + $0x3c0] sm:$0xff]  }
  0x45   :  { %2585 = vmatpush3.bf16.msra.mxu1 %v2844_v15  ;;  %1955 = vmatprep.mubr.bf16.mxu1 %v2260_v50  ;;  %v2906_v15 = vld [vmem:[%s3661_s1 + $0x300] sm:$0xff]   ;;  %v2939_v50 = vld [vmem:[%s3661_s1 + $0x4c8] sm:$0xff]  }
  0x46   :  { %2586 = vmatprep.subr.bf16.mxu1 %v2847_v18 }
  0x47   :  { %2565 = vmatpush3.bf16.msra.mxu0 %v2846_v17  ;;  %v21_v17 = vld [vmem:[%s3662_s0 + $0x30] sm:$0xff] }
  0x48   :  { %2566 = vmatprep.subr.bf16.mxu0 %v2849_v20  ;;  %v2261_v18 = vcombine.low %v21_v17, %v21_v17  ;;  %v2910_v20 = vld [vmem:[%s3661_s1 + $0x380] sm:$0xff]  }
  0x49   :  { %2587 = vmatpush3.bf16.msra.mxu1 %v2848_v19  ;;  %v2262_v19 = vcombine.high %v21_v17, %v21_v17  ;;  %v2968_v17 = vld [vmem:[%s3661_s1 + $0x598] sm:$0xff]  }
  0x4a   :  { %2588 = vmatprep.subr.bf16.mxu1 %v2851_v22  ;;  %v22_v22 = vld [vmem:[%s3662_s0 + $0x38] sm:$0xff] }
  0x4b   :  { %2567 = vmatpush3.bf16.msra.mxu0 %v2850_v21  ;;  %v2911_v21 = vld [vmem:[%s3661_s1 + $0x478] sm:$0xff]  }
  0x4c   :  { %2568 = vmatprep.subr.bf16.mxu0 %v2853_v24  ;;  %v2264_v24 = vcombine.high %v22_v22, %v22_v22 }
  0x4d   :  { %2589 = vmatpush3.bf16.msra.mxu1 %v2852_v23  ;;  %v2263_v23 = vcombine.low %v22_v22, %v22_v22  ;;  %v2973_v22 = vld [vmem:[%s3661_s1 + $0x548] sm:$0xff]  }
  0x4e   :  { %2590 = vmatprep.subr.bf16.mxu1 %v2855_v26  ;;  %v2915_v26 = vld [vmem:[%s3661_s1 + $0x4f8] sm:$0xff]  }
  0x4f   :  { %2569 = vmatpush3.bf16.msra.mxu0 %v2854_v25  ;;  %v2914_v25 = vld [vmem:[%s3661_s1 + $0x438] sm:$0xff]  }
  0x50   :  { %2570 = vmatprep.subr.bf16.mxu0 %v2857_v28  ;;  %v2917_v28 = vld [vmem:[%s3661_s1 + $0x470] sm:$0xff]  }
  0x51   :  { %2591 = vmatpush3.bf16.msra.mxu1 %v2856_v27  ;;  %v2916_v27 = vld [vmem:[%s3661_s1 + $0x4b8] sm:$0xff]  }
  0x52   :  { %2592 = vmatprep.subr.bf16.mxu1 %v2859_v30  ;;  %v2919_v30 = vld [vmem:[%s3661_s1 + $0x4f0] sm:$0xff]  }
  0x53   :  { %2571 = vmatpush3.bf16.msra.mxu0 %v2858_v29  ;;  %v2918_v29 = vld [vmem:[%s3661_s1 + $0x430] sm:$0xff]  }
  0x54   :  { %2572 = vmatprep.subr.bf16.mxu0 %v2861_v32  ;;  %v2921_v32 = vld [vmem:[%s3661_s1 + $0x468] sm:$0xff]  }
  0x55   :  { %2593 = vmatpush3.bf16.msra.mxu1 %v2860_v31  ;;  %v2920_v31 = vld [vmem:[%s3661_s1 + $0x4b0] sm:$0xff]  }
  0x56   :  { %2594 = vmatprep.subr.bf16.mxu1 %v2863_v34  ;;  %v2923_v34 = vld [vmem:[%s3661_s1 + $0x4e8] sm:$0xff]  }
  0x57   :  { %2573 = vmatpush3.bf16.msra.mxu0 %v2862_v33  ;;  %v2922_v33 = vld [vmem:[%s3661_s1 + $0x428] sm:$0xff]  }
  0x58   :  { %2574 = vmatprep.subr.bf16.mxu0 %v2865_v36  ;;  %v2925_v36 = vld [vmem:[%s3661_s1 + $0x460] sm:$0xff]  }
  0x59   :  { %2595 = vmatpush3.bf16.msra.mxu1 %v2864_v35  ;;  %v2924_v35 = vld [vmem:[%s3661_s1 + $0x4a8] sm:$0xff]  }
  0x5a   :  { %2596 = vmatprep.subr.bf16.mxu1 %v2867_v38  ;;  %v2927_v38 = vld [vmem:[%s3661_s1 + $0x4e0] sm:$0xff]  }
  0x5b   :  { %2575 = vmatpush3.bf16.msra.mxu0 %v2866_v37  ;;  %v2926_v37 = vld [vmem:[%s3661_s1 + $0x420] sm:$0xff]  }
  0x5c   :  { %2576 = vmatprep.subr.bf16.mxu0 %v2869_v40  ;;  %v2929_v40 = vld [vmem:[%s3661_s1 + $0x458] sm:$0xff]  }
  0x5d   :  { %2597 = vmatpush3.bf16.msra.mxu1 %v2868_v39  ;;  %v2928_v39 = vld [vmem:[%s3661_s1 + $0x4a0] sm:$0xff]  }
  0x5e   :  { %2598 = vmatprep.subr.bf16.mxu1 %v2871_v42  ;;  %v2931_v42 = vld [vmem:[%s3661_s1 + $0x4d8] sm:$0xff]  }
  0x5f   :  { %2577 = vmatpush3.bf16.msra.mxu0 %v2870_v41  ;;  %v2930_v41 = vld [vmem:[%s3661_s1 + $0x418] sm:$0xff]  }
  0x60   :  { %2606 = vmatprep.subr.bf16.mxu0 %v2875_v47  ;;  %v2936_v47 = vld [vmem:[%s3661_s1 + $0x490] sm:$0xff]  }
  0x61   :  { %2599 = vmatpush3.bf16.msra.mxu1 %v2874_v46  ;;  %v2935_v46 = vld [vmem:[%s3661_s1 + $0x4d0] sm:$0xff]  }
  0x62   :  { %1916 = vmatmul.mubr.bf16.vlgmr.msra.gmra.mxu0 %v2257_v44  ;;  %2628 = vmatprep.subr.bf16.mxu1 %v2879_v52  ;;  %v2933_v44 = vld [vmem:[%s3661_s1 + $0x450] sm:$0xff]   ;;  %v2941_v52 = vld [vmem:[%s3661_s1 + $0x440] sm:$0xff]  }
  0x63   :  { %2607 = vmatpush3.bf16.msra.mxu0 %v2878_v51  ;;  %1995 = vmatprep.mubr.bf16.mxu0 %v2262_v19  ;;  %v2940_v51 = vld [vmem:[%s3661_s1 + $0x488] sm:$0xff]   ;;  %v2970_v19 = vld [vmem:[%s3661_s1 + $0x510] sm:$0xff]  }
  0x64   :  { %1956 = vmatmul.mubr.bf16.vlgmr.msra.gmra.mxu1 %v2259_v49  ;;  %2608 = vmatprep.subr.bf16.mxu0 %v2881_v54  ;;  %v2938_v49 = vld [vmem:[%s3661_s1 + $0x408] sm:$0xff]   ;;  %v2943_v54 = vld [vmem:[%s3661_s1 + $0x4c0] sm:$0xff]  }
  0x65   :  { %2629 = vmatpush3.bf16.msra.mxu1 %v2880_v53  ;;  %2035 = vmatprep.mubr.bf16.mxu1 %v2264_v24  ;;  %v2942_v53 = vld [vmem:[%s3661_s1 + $0x400] sm:$0xff]   ;;  %v2975_v24 = vld [vmem:[%s3661_s1 + $0x5c8] sm:$0xff]  }
  0x66   :  { %2630 = vmatprep.subr.bf16.mxu1 %v2883_v56 }
  0x67   :  { %2609 = vmatpush3.bf16.msra.mxu0 %v2882_v55  ;;  %v23_v55 = vld [vmem:[%s3662_s0 + $0x40] sm:$0xff] }
  0x68   :  { %2610 = vmatprep.subr.bf16.mxu0 %v2885_v58  ;;  %v2265_v56 = vcombine.low %v23_v55, %v23_v55  ;;  %v2946_v58 = vld [vmem:[%s3661_s1 + $0x480] sm:$0xff]  }
  0x69   :  { %2631 = vmatpush3.bf16.msra.mxu1 %v2884_v57  ;;  %v2266_v57 = vcombine.high %v23_v55, %v23_v55 }
  0x6a   :  { %2632 = vmatprep.subr.bf16.mxu1 %v2887_v60  ;;  %v24_v60 = vld [vmem:[%s3662_s0 + $0x48] sm:$0xff] }
  0x6b   :  { %2611 = vmatpush3.bf16.msra.mxu0 %v2886_v59  ;;  %v2947_v59 = vld [vmem:[%s3661_s1 + $0x578] sm:$0xff]  }
  0x6c   :  { %2612 = vmatprep.subr.bf16.mxu0 %v2889_v62  ;;  %v2268_v62 = vcombine.high %v24_v60, %v24_v60 }
  0x6d   :  { %2633 = vmatpush3.bf16.msra.mxu1 %v2888_v61  ;;  %v2267_v61 = vcombine.low %v24_v60, %v24_v60 }
  0x6e   :  { %2634 = vmatprep.subr.bf16.mxu1 %v2891_v0  ;;  %v2951_v0 = vld [vmem:[%s3661_s1 + $0x5f8] sm:$0xff]  }
  0x6f   :  { %2613 = vmatpush3.bf16.msra.mxu0 %v2890_v63  ;;  %v2950_v63 = vld [vmem:[%s3661_s1 + $0x538] sm:$0xff]  }
  0x70   :  { %2614 = vmatprep.subr.bf16.mxu0 %v2893_v2  ;;  %v2953_v2 = vld [vmem:[%s3661_s1 + $0x570] sm:$0xff]  }
  0x71   :  { %2635 = vmatpush3.bf16.msra.mxu1 %v2892_v1  ;;  %v2952_v1 = vld [vmem:[%s3661_s1 + $0x5b8] sm:$0xff]  }
  0x72   :  { %2636 = vmatprep.subr.bf16.mxu1 %v2895_v4  ;;  %v2955_v4 = vld [vmem:[%s3661_s1 + $0x5f0] sm:$0xff]  }
  0x73   :  { %2615 = vmatpush3.bf16.msra.mxu0 %v2894_v3  ;;  %v2954_v3 = vld [vmem:[%s3661_s1 + $0x530] sm:$0xff]  }
  0x74   :  { %2616 = vmatprep.subr.bf16.mxu0 %v2897_v6  ;;  %v2957_v6 = vld [vmem:[%s3661_s1 + $0x568] sm:$0xff]  }
  0x75   :  { %2637 = vmatpush3.bf16.msra.mxu1 %v2896_v5  ;;  %v2956_v5 = vld [vmem:[%s3661_s1 + $0x5b0] sm:$0xff]  }
  0x76   :  { %2638 = vmatprep.subr.bf16.mxu1 %v2899_v8  ;;  %v2959_v8 = vld [vmem:[%s3661_s1 + $0x5e8] sm:$0xff]  }
  0x77   :  { %2617 = vmatpush3.bf16.msra.mxu0 %v2898_v7  ;;  %v2958_v7 = vld [vmem:[%s3661_s1 + $0x528] sm:$0xff]  }
  0x78   :  { %2618 = vmatprep.subr.bf16.mxu0 %v2901_v10  ;;  %v2961_v10 = vld [vmem:[%s3661_s1 + $0x560] sm:$0xff]  }
  0x79   :  { %2639 = vmatpush3.bf16.msra.mxu1 %v2900_v9  ;;  %v2960_v9 = vld [vmem:[%s3661_s1 + $0x5a8] sm:$0xff]  }
  0x7a   :  { %2640 = vmatprep.subr.bf16.mxu1 %v2903_v12  ;;  %v2963_v12 = vld [vmem:[%s3661_s1 + $0x5e0] sm:$0xff]  }
  0x7b   :  { %2619 = vmatpush3.bf16.msra.mxu0 %v2902_v11  ;;  %v2962_v11 = vld [vmem:[%s3661_s1 + $0x520] sm:$0xff]  }
  0x7c   :  { %2620 = vmatprep.subr.bf16.mxu0 %v2905_v14  ;;  %v2965_v14 = vld [vmem:[%s3661_s1 + $0x558] sm:$0xff]  }
  0x7d   :  { %2641 = vmatpush3.bf16.msra.mxu1 %v2904_v13  ;;  %v2964_v13 = vld [vmem:[%s3661_s1 + $0x5a0] sm:$0xff]  }
  0x7e   :  { %2642 = vmatprep.subr.bf16.mxu1 %v2907_v16  ;;  %v2967_v16 = vld [vmem:[%s3661_s1 + $0x5d8] sm:$0xff]  }
  0x7f   :  { %2621 = vmatpush3.bf16.msra.mxu0 %v2906_v15  ;;  %v2966_v15 = vld [vmem:[%s3661_s1 + $0x518] sm:$0xff]  }
  0x80   :  { %2650 = vmatprep.subr.bf16.mxu0 %v2911_v21  ;;  %v2972_v21 = vld [vmem:[%s3661_s1 + $0x590] sm:$0xff]  }
  0x81   :  { %2643 = vmatpush3.bf16.msra.mxu1 %v2910_v20  ;;  %v2971_v20 = vld [vmem:[%s3661_s1 + $0x5d0] sm:$0xff]  }
  0x82   :  { %1996 = vmatmul.mubr.bf16.vlgmr.msra.gmra.mxu0 %v2261_v18  ;;  %2672 = vmatprep.subr.bf16.mxu1 %v2915_v26  ;;  %v2969_v18 = vld [vmem:[%s3661_s1 + $0x550] sm:$0xff]   ;;  %v2977_v26 = vld [vmem:[%s3661_s1 + $0x540] sm:$0xff]  }
  0x83   :  { %2651 = vmatpush3.bf16.msra.mxu0 %v2914_v25  ;;  %2075 = vmatprep.mubr.bf16.mxu0 %v2266_v57  ;;  %v2976_v25 = vld [vmem:[%s3661_s1 + $0x588] sm:$0xff]  }
  0x84   :  { %2036 = vmatmul.mubr.bf16.vlgmr.msra.gmra.mxu1 %v2263_v23  ;;  %2652 = vmatprep.subr.bf16.mxu0 %v2917_v28  ;;  %v2974_v23 = vld [vmem:[%s3661_s1 + $0x508] sm:$0xff]   ;;  %v2979_v28 = vld [vmem:[%s3661_s1 + $0x5c0] sm:$0xff]  }
  0x85   :  { %2673 = vmatpush3.bf16.msra.mxu1 %v2916_v27  ;;  %2115 = vmatprep.mubr.bf16.mxu1 %v2268_v62  ;;  %v2978_v27 = vld [vmem:[%s3661_s1 + $0x500] sm:$0xff]  }
  0x86   :  { %2674 = vmatprep.subr.bf16.mxu1 %v2919_v30 }
  0x87   :  { %2653 = vmatpush3.bf16.msra.mxu0 %v2918_v29  ;;  %v25_v29 = vld [vmem:[%s3662_s0 + $0x50] sm:$0xff] }
  0x88   :  { %2654 = vmatprep.subr.bf16.mxu0 %v2921_v32  ;;  %v2269_v30 = vcombine.low %v25_v29, %v25_v29  ;;  %v2982_v32 = vld [vmem:[%s3661_s1 + $0x580] sm:$0xff]  }
  0x89   :  { %2675 = vmatpush3.bf16.msra.mxu1 %v2920_v31  ;;  %v2270_v31 = vcombine.high %v25_v29, %v25_v29 }
  0x8a   :  { %2676 = vmatprep.subr.bf16.mxu1 %v2923_v34  ;;  %v2994_v34 = vmov 0.0  }
  0x8b   :  { %2655 = vmatpush3.bf16.msra.mxu0 %v2922_v33  ;;  %v26_v33 = vld [vmem:[%s3662_s0 + $0x58] sm:$0xff] }
  0x8c   :  { %2656 = vmatprep.subr.bf16.mxu0 %v2925_v36  ;;  %v2272_v36 = vcombine.high %v26_v33, %v26_v33 }
  0x8d   :  { %2677 = vmatpush3.bf16.msra.mxu1 %v2924_v35  ;;  %v2271_v35 = vcombine.low %v26_v33, %v26_v33 }
  0x8e   :  { %2678 = vmatprep.subr.bf16.mxu1 %v2927_v38  ;;  %v2986_v38 = vld [vmem:[%s3661_s1 + $0x630] sm:$0xff]  }
  0x8f   :  { %2657 = vmatpush3.bf16.msra.mxu0 %v2926_v37  ;;  %v2985_v37 = vld [vmem:[%s3661_s1 + $0x638] sm:$0xff]  }
  0x90   :  { %2658 = vmatprep.subr.bf16.mxu0 %v2929_v40  ;;  %v2988_v40 = vld [vmem:[%s3661_s1 + $0x620] sm:$0xff]  }
  0x91   :  { %2679 = vmatpush3.bf16.msra.mxu1 %v2928_v39  ;;  %v2987_v39 = vld [vmem:[%s3661_s1 + $0x628] sm:$0xff]  }
  0x92   :  { %2680 = vmatprep.subr.bf16.mxu1 %v2931_v42  ;;  %v2990_v42 = vld [vmem:[%s3661_s1 + $0x610] sm:$0xff]  }
  0x93   :  { %2659 = vmatpush3.bf16.msra.mxu0 %v2930_v41  ;;  %v2989_v41 = vld [vmem:[%s3661_s1 + $0x618] sm:$0xff]  }
  0x94   :  { %2660 = vmatprep.subr.bf16.mxu0 %v2933_v44  ;;  %v2992_v44 = vld [vmem:[%s3661_s1 + $0x600] sm:$0xff]  }
  0x95   :  { %2681 = vmatpush3.bf16.msra.mxu1 %v2932_v43  ;;  %v2991_v43 = vld [vmem:[%s3661_s1 + $0x608] sm:$0xff]  }
  0x96   :  { %2682 = vmatprep.subr.bf16.mxu1 %v2935_v46 }
  0x97   :  { %2661 = vmatpush3.bf16.msra.mxu0 %v2934_v45  ;;  %v2993_v45 = vld [vmem:[%s3662_s0 + $0x60] ss:$0 sps:$4 sm:$0xff]  }
  0x98   :  { %2662 = vmatprep.subr.bf16.mxu0 %v2937_v48 }
  0x99   :  { %2683 = vmatpush3.bf16.msra.mxu1 %v2936_v47  ;;  %v2248_v47 = vld [vmem:[%s3663_s2] ss:$0 sm:$0xff] }
  0x9a   :  { %2684 = vmatprep.subr.bf16.mxu1 %v2939_v50 }
  0x9b   :  { %2663 = vmatpush3.bf16.msra.mxu0 %v2938_v49 }
  0x9c   :  { %2664 = vmatprep.subr.bf16.mxu0 %v2941_v52 }
  0x9d   :  { %2685 = vmatpush3.bf16.msra.mxu1 %v2940_v51 }
  0x9e   :  { %2686 = vmatprep.subr.bf16.mxu1 %v2943_v54 }
  0x9f   :  { %2665 = vmatpush3.bf16.msra.mxu0 %v2942_v53 }
  0xa0   :  { %2694 = vmatprep.subr.bf16.mxu0 %v2947_v59 }
  0xa1   :  { %2687 = vmatpush3.bf16.msra.mxu1 %v2946_v58 }
  0xa2   :  { %2076 = vmatmul.mubr.bf16.vlgmr.msra.gmra.mxu0 %v2265_v56  ;;  %2716 = vmatprep.subr.bf16.mxu1 %v2951_v0 }
  0xa3   :  { %2695 = vmatpush3.bf16.msra.mxu0 %v2950_v63  ;;  %2155 = vmatprep.mubr.bf16.mxu0 %v2270_v31 }
  0xa4   :  { %2116 = vmatmul.mubr.bf16.vlgmr.msra.gmra.mxu1 %v2267_v61  ;;  %2696 = vmatprep.subr.bf16.mxu0 %v2953_v2 }
  0xa5   :  { %2717 = vmatpush3.bf16.msra.mxu1 %v2952_v1  ;;  %2195 = vmatprep.mubr.bf16.mxu1 %v2272_v36 }
  0xa6   :  { %2718 = vmatprep.subr.bf16.mxu1 %v2955_v4 }
  0xa7   :  { %2697 = vmatpush3.bf16.msra.mxu0 %v2954_v3 }
  0xa8   :  { %2698 = vmatprep.subr.bf16.mxu0 %v2957_v6 }
  0xa9   :  { %2719 = vmatpush3.bf16.msra.mxu1 %v2956_v5 }
  0xaa   :  { %2720 = vmatprep.subr.bf16.mxu1 %v2959_v8 }
  0xab   :  { %2699 = vmatpush3.bf16.msra.mxu0 %v2958_v7 }
  0xac   :  { %2700 = vmatprep.subr.bf16.mxu0 %v2961_v10 }
  0xad   :  { %2721 = vmatpush3.bf16.msra.mxu1 %v2960_v9 }
  0xae   :  { %2722 = vmatprep.subr.bf16.mxu1 %v2963_v12 }
  0xaf   :  { %2701 = vmatpush3.bf16.msra.mxu0 %v2962_v11 }
  0xb0   :  { %2702 = vmatprep.subr.bf16.mxu0 %v2965_v14 }
  0xb1   :  { %2723 = vmatpush3.bf16.msra.mxu1 %v2964_v13 }
  0xb2   :  { %2724 = vmatprep.subr.bf16.mxu1 %v2967_v16 }
  0xb3   :  { %2703 = vmatpush3.bf16.msra.mxu0 %v2966_v15 }
  0xb4   :  { %2704 = vmatprep.subr.bf16.mxu0 %v2969_v18 }
  0xb5   :  { %2725 = vmatpush3.bf16.msra.mxu1 %v2968_v17 }
  0xb6   :  { %2726 = vmatprep.subr.bf16.mxu1 %v2971_v20 }
  0xb7   :  { %2705 = vmatpush3.bf16.msra.mxu0 %v2970_v19 }
  0xb8   :  { %2706 = vmatprep.subr.bf16.mxu0 %v2973_v22 }
  0xb9   :  { %2727 = vmatpush3.bf16.msra.mxu1 %v2972_v21 }
  0xba   :  { %2728 = vmatprep.subr.bf16.mxu1 %v2975_v24 }
  0xbb   :  { %2707 = vmatpush3.bf16.msra.mxu0 %v2974_v23 }
  0xbc   :  { %2708 = vmatprep.subr.bf16.mxu0 %v2977_v26 }
  0xbd   :  { %2729 = vmatpush3.bf16.msra.mxu1 %v2976_v25 }
  0xbe   :  { %2730 = vmatprep.subr.bf16.mxu1 %v2979_v28 }
  0xbf   :  { %2709 = vmatpush3.bf16.msra.mxu0 %v2978_v27 }
  0xc0   :  { %2747 = vmatprep.subr.bf16.mxu0 %v2994_v34 }
  0xc1   :  { %2731 = vmatpush3.bf16.msra.mxu1 %v2982_v32 }
  0xc2   :  { %2156 = vmatmul.mubr.bf16.vlgmr.msra.gmra.mxu0 %v2269_v30 }
  0xc3   :  { %2748 = vmatpush3.bf16.msra.mxu0 %v2985_v37  ;;  %2763 = vmatprep.mubr.msk.bf16.mxu0 %vm2995_vm0, %v2994_v34 }
  0xc4   :  { %2196 = vmatmul.mubr.bf16.vlgmr.msra.gmra.mxu1 %v2271_v35  ;;  %2749 = vmatprep.subr.bf16.mxu0 %v2994_v34 }
  0xc7   :  { %2750 = vmatpush3.bf16.msra.mxu0 %v2986_v38 }
  0xc8   :  { %2751 = vmatprep.subr.bf16.mxu0 %v2994_v34 }
  0xcb   :  { %2752 = vmatpush3.bf16.msra.mxu0 %v2987_v39 }
  0xcc   :  { %2753 = vmatprep.subr.bf16.mxu0 %v2994_v34 }
  0xcf   :  { %2754 = vmatpush3.bf16.msra.mxu0 %v2988_v40 }
  0xd0   :  { %2755 = vmatprep.subr.bf16.mxu0 %v2994_v34 }
  0xd3   :  { %2756 = vmatpush3.bf16.msra.mxu0 %v2989_v41 }
  0xd4   :  { %2757 = vmatprep.subr.bf16.mxu0 %v2994_v34 }
  0xd7   :  { %2758 = vmatpush3.bf16.msra.mxu0 %v2990_v42 }
  0xd8   :  { %2759 = vmatprep.subr.bf16.mxu0 %v2994_v34 }
  0xdb   :  { %2760 = vmatpush3.bf16.msra.mxu0 %v2991_v43 }
  0xdc   :  { %2761 = vmatprep.subr.bf16.mxu0 %v2994_v34 }
  0xdf   :  { %2762 = vmatpush3.bf16.msra.mxu0 %v2992_v44 }
  0xe2   :  { %v2490_v46 = vpop.f32.mrf.mxu0  ;;  %2764 = vmatmul.mubr.bf16.vlgmr.msra.gmra.mxu0 %v2993_v45 }
  0xe4   :  { %v2491_v48 = vpop.f32.mrf.mxu0  ;;  %v2512_v49 = vpop.f32.mrf.mxu1 }
  0xe5   :  { %v2492_v50 = vadd.f32 %v2491_v48, %v2490_v46 }
  0xe6   :  { %v2493_v51 = vpop.f32.mrf.mxu0  ;;  %v2513_v52 = vpop.f32.mrf.mxu1 }
  0xe7   :  { %v1758_v53 = vadd.f32 %v2492_v50, %v2248_v47  ;;  %v2514_v54 = vadd.f32 %v2513_v52, %v2512_v49 }
  0xe8   :  { %v2494_v55 = vpop.f32.mrf.mxu0  ;;  %v2515_v56 = vpop.f32.mrf.mxu1 }
  0xe9   :  { %v1798_v57 = vadd.f32 %v2514_v54, %v1758_v53 }
  0xea   :  { %v2516_v58 = vpop.f32.mrf.mxu1 }
 0x102   :  { %v2534_v59 = vpop.f32.mrf.mxu0 }
 0x104   :  { %v2535_v60 = vpop.f32.mrf.mxu0  ;;  %v2556_v62 = vpop.f32.mrf.mxu1 }
 0x105   :  { %v2536_v61 = vadd.f32 %v2535_v60, %v2534_v59 }
 0x106   :  { %v2537_v63 = vpop.f32.mrf.mxu0  ;;  %v2557_v1 = vpop.f32.mrf.mxu1 }
 0x107   :  { %v1838_v0 = vadd.f32 %v2536_v61, %v1798_v57  ;;  %v2558_v2 = vadd.f32 %v2557_v1, %v2556_v62 }
 0x108   :  { %v2538_v3 = vpop.f32.mrf.mxu0  ;;  %v2559_v4 = vpop.f32.mrf.mxu1 }
 0x109   :  { %v1878_v5 = vadd.f32 %v2558_v2, %v1838_v0 }
 0x10a   :  { %v2560_v6 = vpop.f32.mrf.mxu1 }
 0x122   :  { %v2578_v7 = vpop.f32.mrf.mxu0 }
 0x124   :  { %v2579_v8 = vpop.f32.mrf.mxu0  ;;  %v2600_v9 = vpop.f32.mrf.mxu1 }
 0x125   :  { %v2580_v10 = vadd.f32 %v2579_v8, %v2578_v7 }
 0x126   :  { %v2581_v11 = vpop.f32.mrf.mxu0  ;;  %v2601_v12 = vpop.f32.mrf.mxu1 }
 0x127   :  { %v1918_v13 = vadd.f32 %v2580_v10, %v1878_v5  ;;  %v2602_v14 = vadd.f32 %v2601_v12, %v2600_v9 }
 0x128   :  { %v2582_v15 = vpop.f32.mrf.mxu0  ;;  %v2603_v16 = vpop.f32.mrf.mxu1 }
 0x129   :  { %v1958_v17 = vadd.f32 %v2602_v14, %v1918_v13 }
 0x12a   :  { %v2604_v18 = vpop.f32.mrf.mxu1 }
 0x142   :  { %v2622_v19 = vpop.f32.mrf.mxu0 }
 0x144   :  { %v2623_v20 = vpop.f32.mrf.mxu0  ;;  %v2644_v21 = vpop.f32.mrf.mxu1 }
 0x145   :  { %v2624_v22 = vadd.f32 %v2623_v20, %v2622_v19 }
 0x146   :  { %v2625_v23 = vpop.f32.mrf.mxu0  ;;  %v2645_v24 = vpop.f32.mrf.mxu1 }
 0x147   :  { %v1998_v25 = vadd.f32 %v2624_v22, %v1958_v17  ;;  %v2646_v26 = vadd.f32 %v2645_v24, %v2644_v21 }
 0x148   :  { %v2626_v27 = vpop.f32.mrf.mxu0  ;;  %v2647_v28 = vpop.f32.mrf.mxu1 }
 0x149   :  { %v2038_v29 = vadd.f32 %v2646_v26, %v1998_v25 }
 0x14a   :  { %v2648_v30 = vpop.f32.mrf.mxu1 }
 0x162   :  { %v2666_v31 = vpop.f32.mrf.mxu0 }
 0x164   :  { %v2667_v32 = vpop.f32.mrf.mxu0  ;;  %v2688_v33 = vpop.f32.mrf.mxu1 }
 0x165   :  { %v2668_v47 = vadd.f32 %v2667_v32, %v2666_v31 }
 0x166   :  { %v2669_v34 = vpop.f32.mrf.mxu0  ;;  %v2689_v35 = vpop.f32.mrf.mxu1 }
 0x167   :  { %v2078_v48 = vadd.f32 %v2668_v47, %v2038_v29  ;;  %v2690_v49 = vadd.f32 %v2689_v35, %v2688_v33 }
 0x168   :  { %v2670_v36 = vpop.f32.mrf.mxu0  ;;  %v2691_v37 = vpop.f32.mrf.mxu1 }
 0x169   :  { %v2118_v51 = vadd.f32 %v2690_v49, %v2078_v48 }
 0x16a   :  { %v2692_v38 = vpop.f32.mrf.mxu1 }
 0x182   :  { %v2710_v39 = vpop.f32.mrf.mxu0 }
 0x184   :  { %v2711_v40 = vpop.f32.mrf.mxu0  ;;  %v2732_v41 = vpop.f32.mrf.mxu1 }
 0x185   :  { %v2712_v50 = vadd.f32 %v2711_v40, %v2710_v39 }
 0x186   :  { %v2713_v42 = vpop.f32.mrf.mxu0  ;;  %v2733_v43 = vpop.f32.mrf.mxu1 }
 0x187   :  { %v2158_v52 = vadd.f32 %v2712_v50, %v2118_v51  ;;  %v2734_v53 = vadd.f32 %v2733_v43, %v2732_v41 }
 0x188   :  { %v2714_v44 = vpop.f32.mrf.mxu0  ;;  %v2735_v45 = vpop.f32.mrf.mxu1 }
 0x189   :  { %v2198_v54 = vadd.f32 %v2734_v53, %v2158_v52 }
 0x18a   :  { %v2736_v46 = vpop.f32.mrf.mxu1 }
 0x1a2   :  { %v2237_v55 = vpop.f32.mrf.mxu0 }
 0x1a3   :  { %v2238_v56 = vadd.f32 %v2237_v55, %v2198_v54 }
 0x1a4   :  { %v2765_v57 = vpop.f32.mrf.mxu0 }
 0x1a5   :  { %2243 = vst [vmem:[%s3664_s3] sm:$0xff] %v2238_v56 }
 0x1a6   :  { %v2240_v58 = vpop.f32.mrf.mxu0 }
 0x1a8   :  { %v2766_v59 = vpop.f32.mrf.mxu0 }

// kernel: dt_forward.9
= control target key start
LH: loop header
LB: loop body
LE: loop exit
PB: predicated region body
PF: predicated region fallthrough
CT: control target
= control target key end

     0   :  { %s961_s12 = smov 0   ;;  %s963_s13 = smov 0   ;;  %s1164_s0 = inlined_call_operand.vmem [shape: bf16[16,128], index: 0, kind: input, shape index: {}]   ;;  %s1165_s1 = inlined_call_operand.vmem [shape: bf16[128,6656], index: 1, kind: input, shape index: {}]   ;;  %s1166_s2 = inlined_call_operand.vmem [shape: f32[1,6656], index: 2, kind: input, shape index: {}]   ;;  %s1167_s3 = inlined_call_operand.vmem [shape: f32[16,6656], index: 3, kind: output, shape index: {}]  }
   0x1   :  { %s965_s14 = smov 0   ;;  %s967_s15 = smov 0  }
   0x2   :  { %s969_s16 = smov 0  }
   0x3 LB: > { %s22_s17 = sadd.s32 1, %s934_s15  ;;  %s758_s18 = sadd.s32 4294967295, %s938_s16   ;;  %s938_s16 = sphi %s969_s16, %s13_s16   ;;  %s934_s15 = sphi %s967_s15, %s1172_s15   ;;  %s930_s14 = sphi %s965_s14, %s1171_s14   ;;  %s926_s13 = sphi %s963_s13, %s1170_s13   ;;  %s922_s12 = sphi %s961_s12, %s1169_s12  }
   0x4   : > { %p23_p0 = scmp.ge.s32.totalorder %s22_s17, 13  ;;  %p65_p1 = scmp.ne.s32.totalorder %s926_s13, %s922_s12 }
   0x5   : > { %p66_p2 = scmp.eq.s32.totalorder %s938_s16, 0  ;;  %p123_p4 = scmp.eq.s32.totalorder %s758_s18, 12 }
   0x6   : > { %s1174_s17 = smov (%p23_p0, %s22_s17), 0  ;;  %s58_s20 = sadd.s32 1, %s926_s13 }
   0x7   : > { %p67_p3 = por %p66_p2, %p65_p1  ;;  %s55_s19 = ssub.s32 %s934_s15, %s1174_s17 }
   0x8   : > { %p56_p5 = scmp.eq.s32.totalorder %s55_s19, 0  ;;  %p996_p6 = por %p123_p4, %p65_p1 }
   0x9   : > { %p762_p7 = scmp.ge.s32.totalorder %s938_s16, 13 }
   0xa   : > { %s1001_s22 = scalar_select %p56_p5, %s926_s13, %s58_s20  }
   0xb   : > { %154 = sbr.rel (%p762_p7) target bundleno = 36 (0x24), region = 20 }
  0x10   : > { %157 = sbr.rel (!%p67_p3) target bundleno = 36 (0x24), region = 24  ;;  %s159_s23 = sand.u32 (%p67_p3), 1, %s926_s13  }
  0x11   : > { %s808_s24 = sshll.u32 (%p67_p3), %s934_s15, 4  ;;  %s763_s25 = sshll.u32 (%p67_p3), %s159_s23, 8 }
  0x12   : > { %s1009_s28 = scalar_lea.vmem (%p67_p3), %s1165_s1, %s808_s24  ;;  %s1014_s29 = scalar_lea.vmem (%p67_p3), [#allocation2], %s763_s25 }
  0x13   : > { %v177_v0 = vld [vmem:[%s1009_s28] sm:$0xff] (%p67_p3)  ;;  %v179_v1 = vld [vmem:[%s1009_s28 + $0x8] sm:$0xff] (%p67_p3)  ;;  %v181_v2 = vld [vmem:[%s1009_s28 + $0xd0] sm:$0xff] (%p67_p3) }
  0x14   : > { %178 = vst [vmem:[%s1014_s29] sm:$0xff] (%p67_p3), %v177_v0  ;;  %180 = vst [vmem:[%s1014_s29 + $0x8] sm:$0xff] (%p67_p3), %v179_v1  ;;  %v183_v3 = vld [vmem:[%s1009_s28 + $0xd8] sm:$0xff] (%p67_p3)  ;;  %v185_v4 = vld [vmem:[%s1009_s28 + $0x1a0] sm:$0xff] (%p67_p3) }
  0x15   : > { %182 = vst [vmem:[%s1014_s29 + $0x10] sm:$0xff] %v181_v2  ;;  %v187_v5 = vld [vmem:[%s1009_s28 + $0x1a8] sm:$0xff]  ;;  %184 = vst [vmem:[%s1014_s29 + $0x18] sm:$0xff] %v183_v3  ;;  %v189_v6 = vld [vmem:[%s1009_s28 + $0x270] sm:$0xff] }
  0x16   : > { %186 = vst [vmem:[%s1014_s29 + $0x20] sm:$0xff] %v185_v4  ;;  %188 = vst [vmem:[%s1014_s29 + $0x28] sm:$0xff] %v187_v5  ;;  %v191_v7 = vld [vmem:[%s1009_s28 + $0x278] sm:$0xff]  ;;  %v193_v8 = vld [vmem:[%s1009_s28 + $0x340] sm:$0xff] }
  0x17   : > { %190 = vst [vmem:[%s1014_s29 + $0x30] sm:$0xff] %v189_v6  ;;  %192 = vst [vmem:[%s1014_s29 + $0x38] sm:$0xff] %v191_v7  ;;  %v195_v9 = vld [vmem:[%s1009_s28 + $0x348] sm:$0xff]  ;;  %v197_v10 = vld [vmem:[%s1009_s28 + $0x410] sm:$0xff] }
  0x18   : > { %194 = vst [vmem:[%s1014_s29 + $0x40] sm:$0xff] %v193_v8  ;;  %v199_v11 = vld [vmem:[%s1009_s28 + $0x418] sm:$0xff]  ;;  %196 = vst [vmem:[%s1014_s29 + $0x48] sm:$0xff] %v195_v9  ;;  %v201_v12 = vld [vmem:[%s1009_s28 + $0x4e0] sm:$0xff] }
  0x19   : > { %198 = vst [vmem:[%s1014_s29 + $0x50] sm:$0xff] %v197_v10  ;;  %200 = vst [vmem:[%s1014_s29 + $0x58] sm:$0xff] %v199_v11  ;;  %v203_v13 = vld [vmem:[%s1009_s28 + $0x4e8] sm:$0xff]  ;;  %v205_v14 = vld [vmem:[%s1009_s28 + $0x5b0] sm:$0xff] }
  0x1a   : > { %202 = vst [vmem:[%s1014_s29 + $0x60] sm:$0xff] %v201_v12  ;;  %204 = vst [vmem:[%s1014_s29 + $0x68] sm:$0xff] %v203_v13  ;;  %v207_v15 = vld [vmem:[%s1009_s28 + $0x5b8] sm:$0xff]  ;;  %v209_v16 = vld [vmem:[%s1009_s28 + $0x680] sm:$0xff] }
  0x1b   : > { %206 = vst [vmem:[%s1014_s29 + $0x70] sm:$0xff] %v205_v14  ;;  %v211_v17 = vld [vmem:[%s1009_s28 + $0x688] sm:$0xff]  ;;  %208 = vst [vmem:[%s1014_s29 + $0x78] sm:$0xff] %v207_v15  ;;  %v213_v18 = vld [vmem:[%s1009_s28 + $0x750] sm:$0xff] }
  0x1c   : > { %210 = vst [vmem:[%s1014_s29 + $0x80] sm:$0xff] %v209_v16  ;;  %212 = vst [vmem:[%s1014_s29 + $0x88] sm:$0xff] %v211_v17  ;;  %v215_v19 = vld [vmem:[%s1009_s28 + $0x758] sm:$0xff]  ;;  %v217_v20 = vld [vmem:[%s1009_s28 + $0x820] sm:$0xff] }
  0x1d   : > { %214 = vst [vmem:[%s1014_s29 + $0x90] sm:$0xff] %v213_v18  ;;  %216 = vst [vmem:[%s1014_s29 + $0x98] sm:$0xff] %v215_v19  ;;  %v219_v21 = vld [vmem:[%s1009_s28 + $0x828] sm:$0xff]  ;;  %v221_v22 = vld [vmem:[%s1009_s28 + $0x8f0] sm:$0xff] }
  0x1e   : > { %218 = vst [vmem:[%s1014_s29 + $0xa0] sm:$0xff] %v217_v20  ;;  %v223_v23 = vld [vmem:[%s1009_s28 + $0x8f8] sm:$0xff]  ;;  %220 = vst [vmem:[%s1014_s29 + $0xa8] sm:$0xff] %v219_v21  ;;  %v225_v24 = vld [vmem:[%s1009_s28 + $0x9c0] sm:$0xff] }
  0x1f   : > { %222 = vst [vmem:[%s1014_s29 + $0xb0] sm:$0xff] %v221_v22  ;;  %224 = vst [vmem:[%s1014_s29 + $0xb8] sm:$0xff] %v223_v23  ;;  %v227_v25 = vld [vmem:[%s1009_s28 + $0x9c8] sm:$0xff]  ;;  %v229_v26 = vld [vmem:[%s1009_s28 + $0xa90] sm:$0xff] }
  0x20   : > { %226 = vst [vmem:[%s1014_s29 + $0xc0] sm:$0xff] %v225_v24  ;;  %228 = vst [vmem:[%s1014_s29 + $0xc8] sm:$0xff] %v227_v25  ;;  %v231_v27 = vld [vmem:[%s1009_s28 + $0xa98] sm:$0xff]  ;;  %v233_v28 = vld [vmem:[%s1009_s28 + $0xb60] sm:$0xff] }
  0x21   : > { %230 = vst [vmem:[%s1014_s29 + $0xd0] sm:$0xff] %v229_v26  ;;  %v235_v29 = vld [vmem:[%s1009_s28 + $0xb68] sm:$0xff]  ;;  %232 = vst [vmem:[%s1014_s29 + $0xd8] sm:$0xff] %v231_v27  ;;  %v237_v30 = vld [vmem:[%s1009_s28 + $0xc30] sm:$0xff] }
  0x22   : > { %234 = vst [vmem:[%s1014_s29 + $0xe0] sm:$0xff] %v233_v28  ;;  %236 = vst [vmem:[%s1014_s29 + $0xe8] sm:$0xff] %v235_v29  ;;  %v239_v31 = vld [vmem:[%s1009_s28 + $0xc38] sm:$0xff] }
  0x23   : > { %238 = vst [vmem:[%s1014_s29 + $0xf0] sm:$0xff] %v237_v30  ;;  %240 = vst [vmem:[%s1014_s29 + $0xf8] sm:$0xff] %v239_v31 }
  0x24 PF: > { %p766_p8 = scmp.ge.s32.totalorder %s938_s16, 1  ;;  %p253_p9 = scmp.lt.s32.totalorder %s938_s16, 14 }
  0x26   : > { %p254_p10 = pnand %p766_p8, %p253_p9 }
  0x27   : > { %s260_s30 = sand.u32 (!%p254_p10), 1, %s922_s12   ;;  %s769_s8 = sshll.u32 (!%p254_p10), %s930_s14, 2 }
  0x28   : > { %257 = sbr.rel (%p254_p10) target bundleno = 289 (0x121), region = 51  ;;  %s767_s4 = sshll.u32 (!%p254_p10), %s260_s30, 8 }
  0x29   : > { %s1082_s5 = scalar_lea.vmem (!%p254_p10), [#allocation2], %s767_s4  ;;  %p299_p11 = scmp.lt.s32.totalorder (!%p254_p10), %s769_s8, 51 }
  0x2a   : > { %s768_s18 = sshll.u32 (!%p254_p10), %s260_s30, 6 }
  0x2b   : > { %s1125_s19 = scalar_lea.vmem (!%p254_p10), [#allocation3], %s768_s18 }
  0x2d   : > { %v940_v32 = vmov 0   ;;  %v851_v33 = vld [vmem:[%s1082_s5 + $0xe4] ss:$16 sps:$4 sm:$0xff]   ;;  %v853_v34 = vld [vmem:[%s1082_s5 + $0xec] ss:$16 sps:$4 sm:$0xff]   ;;  %v342_v2 = vlaneseq  ;;  %s1176_s8 = smov (!%p299_p11, %s769_s8), 51 }
  0x2e   : > { %560 = vmatprep.mubr.bf16.mxu0 %v940_v32  ;;  %603 = vmatprep.mubr.bf16.mxu1 %v940_v32  ;;  %v855_v35 = vld [vmem:[%s1082_s5 + $0xe0] ss:$16 sps:$4 sm:$0xff]   ;;  %v856_v36 = vld [vmem:[%s1082_s5 + $0xe8] ss:$16 sps:$4 sm:$0xff]   ;;  %v857_v37 = vld [vmem:[%s1082_s5 + $0xc4] ss:$16 sps:$4 sm:$0xff]   ;;  %s301_s11 = scalar_lea.vmem %s1166_s2, %s1176_s8 }
  0x2f   : > { %528 = vmatprep.subr.bf16.mxu0 %v851_v33  ;;  %571 = vmatprep.subr.bf16.mxu1 %v853_v34  ;;  %v859_v38 = vld [vmem:[%s1082_s5 + $0xcc] ss:$16 sps:$4 sm:$0xff]   ;;  %v861_v39 = vld [vmem:[%s1082_s5 + $0xc0] ss:$16 sps:$4 sm:$0xff]   ;;  %v862_v40 = vld [vmem:[%s1082_s5 + $0xc8] ss:$16 sps:$4 sm:$0xff]  }
  0x30   : > { %529 = vmatpush1.bf16.msra.mxu0 %v855_v35  ;;  %572 = vmatpush1.bf16.msra.mxu1 %v856_v36  ;;  %v863_v41 = vld [vmem:[%s1082_s5 + $0xa4] ss:$16 sps:$4 sm:$0xff]   ;;  %v865_v42 = vld [vmem:[%s1082_s5 + $0xac] ss:$16 sps:$4 sm:$0xff]   ;;  %v867_v43 = vld [vmem:[%s1082_s5 + $0xa0] ss:$16 sps:$4 sm:$0xff]  }
  0x31   : > { %530 = vmatprep.subr.bf16.mxu0 %v857_v37  ;;  %573 = vmatprep.subr.bf16.mxu1 %v859_v38  ;;  %v868_v44 = vld [vmem:[%s1082_s5 + $0xa8] ss:$16 sps:$4 sm:$0xff]   ;;  %v869_v45 = vld [vmem:[%s1082_s5 + $0x84] ss:$16 sps:$4 sm:$0xff]   ;;  %v871_v46 = vld [vmem:[%s1082_s5 + $0x8c] ss:$16 sps:$4 sm:$0xff]  }
  0x32   : > { %v873_v47 = vld [vmem:[%s1082_s5 + $0x80] ss:$16 sps:$4 sm:$0xff]   ;;  %v874_v48 = vld [vmem:[%s1082_s5 + $0x88] ss:$16 sps:$4 sm:$0xff]   ;;  %v875_v49 = vld [vmem:[%s1082_s5 + $0x64] ss:$16 sps:$4 sm:$0xff]  }
  0x33   : > { %v877_v50 = vld [vmem:[%s1082_s5 + $0x6c] ss:$16 sps:$4 sm:$0xff]   ;;  %v879_v51 = vld [vmem:[%s1082_s5 + $0x60] ss:$16 sps:$4 sm:$0xff]   ;;  %v880_v52 = vld [vmem:[%s1082_s5 + $0x68] ss:$16 sps:$4 sm:$0xff]  }
  0x34   : > { %531 = vmatpush1.bf16.msra.mxu0 %v861_v39  ;;  %574 = vmatpush1.bf16.msra.mxu1 %v862_v40  ;;  %v881_v53 = vld [vmem:[%s1082_s5 + $0x44] ss:$16 sps:$4 sm:$0xff]   ;;  %v883_v54 = vld [vmem:[%s1082_s5 + $0x4c] ss:$16 sps:$4 sm:$0xff]   ;;  %v885_v55 = vld [vmem:[%s1082_s5 + $0x40] ss:$16 sps:$4 sm:$0xff]  }
  0x35   : > { %532 = vmatprep.subr.bf16.mxu0 %v863_v41  ;;  %575 = vmatprep.subr.bf16.mxu1 %v865_v42  ;;  %v886_v56 = vld [vmem:[%s1082_s5 + $0x48] ss:$16 sps:$4 sm:$0xff]   ;;  %v887_v57 = vld [vmem:[%s1082_s5 + $0x24] ss:$16 sps:$4 sm:$0xff]   ;;  %v889_v58 = vld [vmem:[%s1082_s5 + $0x2c] ss:$16 sps:$4 sm:$0xff]  }
  0x36   : > { %v891_v59 = vld [vmem:[%s1082_s5 + $0x20] ss:$16 sps:$4 sm:$0xff]   ;;  %v892_v60 = vld [vmem:[%s1082_s5 + $0x28] ss:$16 sps:$4 sm:$0xff]   ;;  %v893_v61 = vld [vmem:[%s1082_s5 + $0x4] ss:$16 sps:$4 sm:$0xff]  }
  0x37   : > { %v895_v62 = vld [vmem:[%s1082_s5 + $0xc] ss:$16 sps:$4 sm:$0xff]   ;;  %v897_v63 = vld [vmem:[%s1082_s5] ss:$16 sps:$4 sm:$0xff]   ;;  %v898_v0 = vld [vmem:[%s1082_s5 + $0x8] ss:$16 sps:$4 sm:$0xff]  }
  0x38   : > { %533 = vmatpush1.bf16.msra.mxu0 %v867_v43  ;;  %576 = vmatpush1.bf16.msra.mxu1 %v868_v44  ;;  %v899_v1 = vld [vmem:[%s1164_s0] sm:$0xff]   ;;  %v343_v3 = vshrl.u32 %v342_v2, 7  ;;  %s809_s12 = sshll.u32 (%p996_p6), %s930_s14, 5 }
  0x39   : > { %534 = vmatprep.subr.bf16.mxu0 %v869_v45  ;;  %577 = vmatprep.subr.bf16.mxu1 %v871_v46  ;;  %v340_v6 = vld [vmem:[%s301_s11] sm:$0xf]  ;;  %s634_s24 = scalar_lea.vmem (%p996_p6), %s1167_s3, %s809_s12 }
  0x3a   : > { %v344_v4 = vsub.s32 0, %v343_v3  ;;  %v352_v5 = vsub.s32 2, %v343_v3  ;;  %v348_v7 = vsub.s32 1, %v343_v3  ;;  %v356_v8 = vsub.s32 3, %v343_v3 }
  0x3c   : > { %535 = vmatpush1.bf16.msra.mxu0 %v873_v47  ;;  %578 = vmatpush1.bf16.msra.mxu1 %v874_v48  ;;  %v345_v9 = vrot.slane %v340_v6, %v344_v4  ;;  %v353_v10 = vrot.slane %v340_v6, %v352_v5  ;;  %v349_v11 = vrot.slane %v340_v6, %v348_v7 }
  0x3d   : > { %536 = vmatprep.subr.bf16.mxu0 %v875_v49  ;;  %579 = vmatprep.subr.bf16.mxu1 %v877_v50  ;;  %v357_v12 = vrot.slane %v340_v6, %v356_v8 }
  0x40   : > { %537 = vmatpush1.bf16.msra.mxu0 %v879_v51  ;;  %580 = vmatpush1.bf16.msra.mxu1 %v880_v52 }
  0x41   : > { %538 = vmatprep.subr.bf16.mxu0 %v881_v53  ;;  %581 = vmatprep.subr.bf16.mxu1 %v883_v54 }
  0x44   : > { %539 = vmatpush1.bf16.msra.mxu0 %v885_v55  ;;  %582 = vmatpush1.bf16.msra.mxu1 %v886_v56 }
  0x45   : > { %540 = vmatprep.subr.bf16.mxu0 %v887_v57  ;;  %583 = vmatprep.subr.bf16.mxu1 %v889_v58 }
  0x48   : > { %541 = vmatpush1.bf16.msra.mxu0 %v891_v59  ;;  %584 = vmatpush1.bf16.msra.mxu1 %v892_v60 }
  0x49   : > { %542 = vmatprep.subr.bf16.mxu0 %v893_v61  ;;  %585 = vmatprep.subr.bf16.mxu1 %v895_v62 }
  0x4c   : > { %543 = vmatpush1.bf16.msra.mxu0 %v897_v63  ;;  %586 = vmatpush1.bf16.msra.mxu1 %v898_v0 }
  0x4f   : > { %561 = vmatmul.mubr.bf16.vlgmr.msra.gmra.mxu0 %v899_v1  ;;  %604 = vmatmul.mubr.bf16.vlgmr.msra.gmra.mxu1 %v899_v1 }
 0x10f   : > { %v562_v13 = vpop.f32.mrf.mxu0  ;;  %v605_v14 = vpop.f32.mrf.mxu1 }
 0x110   : > { %v563_v15 = vadd.f32 %v562_v13, %v345_v9  ;;  %v606_v16 = vadd.f32 %v605_v14, %v353_v10 }
 0x111   : > { %v564_v17 = vpop.f32.mrf.mxu0  ;;  %v607_v18 = vpop.f32.mrf.mxu1 }
 0x112   : > { %614 = vst [vmem:[%s1125_s19] sm:$0xff] %v563_v15  ;;  %616 = vst [vmem:[%s1125_s19 + $0x10] sm:$0xff] %v606_v16  ;;  %v565_v19 = vadd.f32 %v564_v17, %v349_v11  ;;  %v608_v20 = vadd.f32 %v607_v18, %v357_v12 }
 0x113   : > { %v566_v21 = vpop.f32.mrf.mxu0  ;;  %v609_v22 = vpop.f32.mrf.mxu1 }
 0x114   : > { %615 = vst [vmem:[%s1125_s19 + $0x8] sm:$0xff] %v565_v19  ;;  %617 = vst [vmem:[%s1125_s19 + $0x18] sm:$0xff] %v608_v20  ;;  %v567_v23 = vadd.f32 %v566_v21, %v345_v9  ;;  %v610_v24 = vadd.f32 %v609_v22, %v353_v10  ;;  %628 = sbr.rel (!%p996_p6) target bundleno = 289 (0x121), region = 59 }
 0x115   : > { %v568_v25 = vpop.f32.mrf.mxu0  ;;  %v611_v26 = vpop.f32.mrf.mxu1 }
 0x116   : > { %618 = vst [vmem:[%s1125_s19 + $0x20] sm:$0xff] %v567_v23  ;;  %620 = vst [vmem:[%s1125_s19 + $0x30] sm:$0xff] %v610_v24  ;;  %v569_v27 = vadd.f32 %v568_v25, %v349_v11  ;;  %v612_v28 = vadd.f32 %v611_v26, %v357_v12 }
 0x118   : > { %619 = vst [vmem:[%s1125_s19 + $0x28] sm:$0xff] %v569_v27  ;;  %621 = vst [vmem:[%s1125_s19 + $0x38] sm:$0xff] %v612_v28 }
 0x119   : > { %v647_v29 = vld [vmem:[%s1125_s19] sm:$0xff]  ;;  %v651_v31 = vld [vmem:[%s1125_s19 + $0x10] sm:$0xff] }
 0x11a   : > { %648 = vst [vmem:[%s634_s24] sm:$0xff] %v647_v29  ;;  %652 = vst [vmem:[%s634_s24 + $0x10] sm:$0xff] %v651_v31 }
 0x11b   : > { %v649_v30 = vld [vmem:[%s1125_s19 + $0x8] sm:$0xff]  ;;  %v653_v32 = vld [vmem:[%s1125_s19 + $0x18] sm:$0xff] }
 0x11c   : > { %650 = vst [vmem:[%s634_s24 + $0x8] sm:$0xff] %v649_v30  ;;  %654 = vst [vmem:[%s634_s24 + $0x18] sm:$0xff] %v653_v32 }
 0x11d   : > { %v655_v33 = vld [vmem:[%s1125_s19 + $0x20] sm:$0xff]  ;;  %v659_v35 = vld [vmem:[%s1125_s19 + $0x30] sm:$0xff] }
 0x11e   : > { %656 = vst [vmem:[%s634_s24 + $0x1a0] sm:$0xff] %v655_v33  ;;  %660 = vst [vmem:[%s634_s24 + $0x1b0] sm:$0xff] %v659_v35 }
 0x11f   : > { %v657_v34 = vld [vmem:[%s1125_s19 + $0x28] sm:$0xff]  ;;  %v661_v36 = vld [vmem:[%s1125_s19 + $0x38] sm:$0xff] }
 0x120   : > { %658 = vst [vmem:[%s634_s24 + $0x1a8] sm:$0xff] %v657_v34  ;;  %662 = vst [vmem:[%s634_s24 + $0x1b8] sm:$0xff] %v661_v36 }
 0x121 PF: > { %s13_s16 = sadd.s32 1, %s938_s16   ;;  %s1169_s12 = smov %s926_s13 }
 0x122   : > { %p10_p12 = scmp.ge.s32.totalorder %s13_s16, 15   ;;  %s1170_s13 = smov %s1001_s22 }
 0x123   : > { %s1171_s14 = smov %s934_s15  ;;  %s1172_s15 = smov %s1174_s17 }
 0x124   :  { %12 = sbr.rel (!%p10_p12) target bundleno = 3 (0x3), region = 119 }

// kernel: dt_forward.8
= control target key start
LH: loop header
LB: loop body
LE: loop exit
PB: predicated region body
PF: predicated region fallthrough
CT: control target
= control target key end

     0   :  { %vm47_vm0 = vcmask 1041408   ;;  %v4037_v34 = vmov 0   ;;  %vm4039_vm1 = vmmov 0   ;;  %vm378_vm2 = vcmask 130048   ;;  %s4042_s17 = smov 64   ;;  %s4043_s18 = smov 32   ;;  %s5243_s0 = inlined_call_operand.vmem [shape: f32[18,128], index: 0, kind: input, shape index: {}]   ;;  %s5244_s3 = inlined_call_operand.vmem [shape: bf16[128,384], index: 3, kind: input, shape index: {}]   ;;  %s5245_s1 = inlined_call_operand.vmem [shape: f32[1,128], index: 1, kind: input, shape index: {}]   ;;  %s5246_s2 = inlined_call_operand.vmem [shape: f32[1,128], index: 2, kind: input, shape index: {}]   ;;  %s5247_s11 = inlined_call_operand.vmem [shape: f32[18,18], index: 11, kind: output, shape index: {1}]   ;;  %s5248_s6 = inlined_call_operand.vmem [shape: bf16[128,512], index: 6, kind: input, shape index: {}]   ;;  %s5249_s8 = inlined_call_operand.vmem [shape: bf16[512,128], index: 8, kind: input, shape index: {}]   ;;  %s5250_s4 = inlined_call_operand.vmem [shape: f32[1,128], index: 4, kind: input, shape index: {}]   ;;  %s5251_s5 = inlined_call_operand.vmem [shape: f32[1,128], index: 5, kind: input, shape index: {}]   ;;  %s5252_s7 = inlined_call_operand.vmem [shape: f32[1,512], index: 7, kind: input, shape index: {}]   ;;  %s5253_s9 = inlined_call_operand.vmem [shape: f32[1,128], index: 9, kind: input, shape index: {}]   ;;  %s5254_s10 = inlined_call_operand.vmem [shape: f32[18,128], index: 10, kind: output, shape index: {0}]  }
   0x1   :  { %v38_v0 = vld [vmem:[%s5243_s0] sm:$0xff]  ;;  %v40_v1 = vld [vmem:[%s5243_s0 + $0x10] sm:$0x3]  ;;  %v39_v3 = vld [vmem:[%s5243_s0 + $0x8] sm:$0xff]  ;;  %292 = vmatprep.mubr.bf16.mxu0 %v4037_v34  ;;  %s4044_s19 = smov 80   ;;  %s4045_s20 = smov 48  }
   0x2   :  { %43 = vadd.xlane.f32.xlu0 %v38_v0  ;;  %v48_v2 = vsel %vm47_vm0, %v40_v1, 0.0  ;;  %v3814_v4 = vld [vmem:[%s5244_s3 + $0xac] ss:$12 sps:$4 sm:$0xff]   ;;  %v3816_v5 = vld [vmem:[%s5244_s3 + $0xa8] ss:$12 sps:$4 sm:$0xff]   ;;  %s4046_s21 = smov 16  }
   0x3   :  { %49 = vadd.xlane.f32.xlu1 %v48_v2  ;;  %260 = vmatprep.subr.bf16.mxu0 %v3814_v4  ;;  %v3817_v6 = vld [vmem:[%s5244_s3 + $0xb0] ss:$12 sps:$4 sm:$0xff]   ;;  %v3818_v20 = vld [vmem:[%s5244_s3 + $0x94] ss:$12 sps:$4 sm:$0xff]   ;;  %v3821_v22 = vld [vmem:[%s5244_s3 + $0x98] ss:$12 sps:$4 sm:$0xff]  }
   0x4   :  { %261 = vmatpush1.bf16.msra.mxu0 %v3816_v5  ;;  %3544 = vmatprep.subr.bf16.mxu1 %v3817_v6  ;;  %v3820_v21 = vld [vmem:[%s5244_s3 + $0x90] ss:$12 sps:$4 sm:$0xff]   ;;  %v3824_v24 = vld [vmem:[%s5244_s3 + $0x78] ss:$12 sps:$4 sm:$0xff]   ;;  %v3825_v25 = vld [vmem:[%s5244_s3 + $0x80] ss:$12 sps:$4 sm:$0xff]  }
   0x5   :  { %3545 = vmatpush3.bf16.msra.mxu1 %v3817_v6  ;;  %262 = vmatprep.subr.bf16.mxu0 %v3818_v20  ;;  %v3822_v23 = vld [vmem:[%s5244_s3 + $0x7c] ss:$12 sps:$4 sm:$0xff]   ;;  %v3826_v26 = vld [vmem:[%s5244_s3 + $0x64] ss:$12 sps:$4 sm:$0xff]   ;;  %v3828_v27 = vld [vmem:[%s5244_s3 + $0x60] ss:$12 sps:$4 sm:$0xff]  }
   0x6   :  { %45 = vadd.xlane.f32.xlu0 %v39_v3  ;;  %3546 = vmatprep.subr.bf16.mxu1 %v3821_v22  ;;  %v3829_v28 = vld [vmem:[%s5244_s3 + $0x68] ss:$12 sps:$4 sm:$0xff]   ;;  %v3830_v29 = vld [vmem:[%s5244_s3 + $0x4c] ss:$12 sps:$4 sm:$0xff]   ;;  %v3833_v30 = vld [vmem:[%s5244_s3 + $0x50] ss:$12 sps:$4 sm:$0xff]  }
   0x7   :  { %v3832_v31 = vld [vmem:[%s5244_s3 + $0x48] ss:$12 sps:$4 sm:$0xff]   ;;  %v3837_v33 = vld [vmem:[%s5244_s3 + $0x38] ss:$12 sps:$4 sm:$0xff]   ;;  %v3836_v35 = vld [vmem:[%s5244_s3 + $0x30] ss:$12 sps:$4 sm:$0xff]  }
   0x8   :  { %263 = vmatpush1.bf16.msra.mxu0 %v3820_v21  ;;  %v3834_v32 = vld [vmem:[%s5244_s3 + $0x34] ss:$12 sps:$4 sm:$0xff]   ;;  %v3838_v36 = vld [vmem:[%s5244_s3 + $0x1c] ss:$12 sps:$4 sm:$0xff]   ;;  %v3840_v38 = vld [vmem:[%s5244_s3 + $0x18] ss:$12 sps:$4 sm:$0xff]  }
   0x9   :  { %3547 = vmatpush3.bf16.msra.mxu1 %v3821_v22  ;;  %264 = vmatprep.subr.bf16.mxu0 %v3822_v23  ;;  %v3841_v37 = vld [vmem:[%s5244_s3 + $0x20] ss:$12 sps:$4 sm:$0xff]   ;;  %v3842_v39 = vld [vmem:[%s5244_s3 + $0x4] ss:$12 sps:$4 sm:$0xff]   ;;  %v3845_v40 = vld [vmem:[%s5244_s3 + $0x8] ss:$12 sps:$4 sm:$0xff]  }
   0xa   :  { %3548 = vmatprep.subr.bf16.mxu1 %v3825_v25  ;;  %v3844_v41 = vld [vmem:[%s5244_s3] ss:$12 sps:$4 sm:$0xff]   ;;  %vm480_vm4 = vcmask 146432   ;;  %vm487_vm7 = vcmask 140288   ;;  %vm619_vm8 = vcmask 123904   ;;  %vm875_vm9 = vcmask 261248  }
   0xb   :  { %v3209_v53 = vld [vmem:[%s5245_s1] ss:$0 sm:$0xff]  ;;  %s4040_s1 = smov 96   ;;  %vm878_vm10 = vcmask 255104   ;;  %vm1134_vm11 = vcmask 392448   ;;  %vm1393_vm12 = vcmask 523648  }
   0xc   :  { %265 = vmatpush1.bf16.msra.mxu0 %v3824_v24  ;;  %v3210_v59 = vld [vmem:[%s5246_s2] ss:$0 sm:$0xff]  ;;  %s4041_s2 = smov 112   ;;  %vm1649_vm13 = vcmask 654848   ;;  %vm1908_vm14 = vcmask 786048   ;;  %vm2167_vm15 = vcmask 917248  }
   0xd   :  { %3549 = vmatpush3.bf16.msra.mxu1 %v3825_v25  ;;  %266 = vmatprep.subr.bf16.mxu0 %v3826_v26 }
   0xe   :  { %3550 = vmatprep.subr.bf16.mxu1 %v3829_v28 }
  0x10   :  { %267 = vmatpush1.bf16.msra.mxu0 %v3828_v27 }
  0x11   :  { %3551 = vmatpush3.bf16.msra.mxu1 %v3829_v28  ;;  %268 = vmatprep.subr.bf16.mxu0 %v3830_v29 }
  0x12   :  { %3552 = vmatprep.subr.bf16.mxu1 %v3833_v30 }
  0x14   :  { %269 = vmatpush1.bf16.msra.mxu0 %v3832_v31 }
  0x15   :  { %3553 = vmatpush3.bf16.msra.mxu1 %v3833_v30  ;;  %270 = vmatprep.subr.bf16.mxu0 %v3834_v32 }
  0x16   :  { %3554 = vmatprep.subr.bf16.mxu1 %v3837_v33 }
  0x18   :  { %271 = vmatpush1.bf16.msra.mxu0 %v3836_v35 }
  0x19   :  { %3555 = vmatpush3.bf16.msra.mxu1 %v3837_v33  ;;  %272 = vmatprep.subr.bf16.mxu0 %v3838_v36 }
  0x1a   :  { %3556 = vmatprep.subr.bf16.mxu1 %v3841_v37 }
  0x1c   :  { %273 = vmatpush1.bf16.msra.mxu0 %v3840_v38 }
  0x1d   :  { %3557 = vmatpush3.bf16.msra.mxu1 %v3841_v37  ;;  %274 = vmatprep.subr.bf16.mxu0 %v3842_v39 }
  0x1e   :  { %3558 = vmatprep.subr.bf16.mxu1 %v3845_v40 }
  0x20   :  { %275 = vmatpush1.bf16.msra.mxu0 %v3844_v41 }
  0x21   :  { %3559 = vmatpush3.bf16.msra.mxu1 %v3845_v40 }
  0x8b   :  { %v44_v7 = vpop.xlane.xlu0 %43 }
  0x8c   :  { %v52_v8 = vmul.f32 0.0078125, %v44_v7  ;;  %v50_v9 = vpop.xlane.xlu1 %49 }
  0x8d   :  { %v54_v10 = vmul.f32 0.0078125, %v50_v9 }
  0x8e   :  { %v4126_v11 = vsub.f32 %v38_v0, %v52_v8 }
  0x8f   :  { %v4128_v12 = vsub.f32 %v40_v1, %v54_v10  ;;  %v46_v13 = vpop.xlane.xlu0 %45 }
  0x90   :  { %v53_v14 = vmul.f32 0.0078125, %v46_v13  ;;  %v58_v15 = vmul.f32 %v4126_v11, %v4126_v11 }
  0x91   :  { %v60_v16 = vmul.f32 %v4128_v12, %v4128_v12 }
  0x92   :  { %61 = vadd.xlane.f32.xlu1 %v58_v15  ;;  %v4134_v17 = vsub.f32 %v39_v3, %v53_v14  ;;  %v4038_v3 = vmov 0.0  }
  0x93   :  { %v65_v18 = vsel %vm47_vm0, %v60_v16, 0.0  ;;  %3564 = vmatprep.subr.mxu1 %v4038_v3  ;;  %3579 = vmatprep.subr.mxu0 %v4038_v3 }
  0x94   :  { %v59_v19 = vmul.f32 %v4134_v17, %v4134_v17 }
  0x96   :  { %66 = vadd.xlane.f32.xlu1 %v65_v18  ;;  %63 = vadd.xlane.f32.xlu0 %v59_v19 }
 0x11b   :  { %v62_v42 = vpop.xlane.xlu1 %61 }
 0x11c   :  { %v68_v43 = vmul.f32 0.0078125, %v62_v42 }
 0x11e   :  { %v71_v44 = vadd.f32 1e-05, %v68_v43 }
 0x11f   :  { %v67_v45 = vpop.xlane.xlu1 %66  ;;  %v64_v46 = vpop.xlane.xlu0 %63 }
 0x120   :  { %3926 = vrsqrt.f32 %v71_v44  ;;  %v70_v47 = vmul.f32 0.0078125, %v67_v45  ;;  %v69_v48 = vmul.f32 0.0078125, %v64_v46 }
 0x122   :  { %v73_v49 = vadd.f32 1e-05, %v70_v47  ;;  %v72_v50 = vadd.f32 1e-05, %v69_v48 }
 0x124   :  { %3928 = vrsqrt.f32 %v73_v49 }
 0x125   :  { %3930 = vrsqrt.f32 %v72_v50 }
 0x12d   :  { %v3927_v51 = vpop.eup %3926 }
 0x12e   :  { %v77_v52 = vmul.f32 %v3927_v51, %v4126_v11 }
 0x130   :  { %v86_v58 = vmul.f32 %v3209_v53, %v77_v52 }
 0x131   :  { %v3929_v54 = vpop.eup %3928 }
 0x132   :  { %v3931_v55 = vpop.eup %3930  ;;  %v79_v56 = vmul.f32 %v3929_v54, %v4128_v12  ;;  %v95_v63 = vadd.f32 %v3210_v59, %v86_v58 }
 0x133   :  { %v78_v57 = vmul.f32 %v3931_v55, %v4134_v17 }
 0x134   :  { %v88_v60 = vmul.f32 %v3209_v53, %v79_v56 }
 0x135   :  { %v87_v61 = vmul.f32 %v3209_v53, %v78_v57 }
 0x136   :  { %v97_v62 = vadd.f32 %v3210_v59, %v88_v60 }
 0x137   :  { %v96_v0 = vadd.f32 %v3210_v59, %v87_v61  ;;  %v359_v59 = vlaneseq }
 0x138   :  { %v99_v1 = vpack.c.bf16 %v97_v62, %v97_v62 }
 0x139   :  { %v98_v2 = vpack.c.bf16 %v96_v0, %v95_v63  ;;  %v4443_v62 = vshrl.u32 %v359_v59, 7  ;;  %v364_v63 = vand.u32 127, %v359_v59 }
 0x13b   :  { %293 = vmatmul.mubr.bf16.vlgmr.msra.gmra.mxu0 %v98_v2  ;;  %3560 = vmatprep.mubr.bf16.mxu1 %v98_v2  ;;  %vm4451_vm3 = vcmp.lt.s32.totalorder %v4443_v62, %v364_v63  ;;  %v361_v2 = vadd.s32 8, %v4443_v62 }
 0x13c   :  { %3561 = vmatmul.mubr.bf16.vlgmr.msra.gmra.mxu1 %v99_v1  ;;  %302 = vmatprep.mubr.bf16.mxu0 %v4037_v34 }
 0x13d   :  { %3570 = vmatprep.mubr.msk.f32.mxu1 %vm4039_vm1, %v4038_v3  ;;  %vm4467_vm5 = vcmp.lt.s32.totalorder %v361_v2, %v364_v63 }
 0x143   :  { %303 = vmatmul.mubr.bf16.gmra.mxu0 %v99_v1 }
 0x144   :  { %3585 = vmatprep.mubr.msk.f32.mxu0 %vm4039_vm1, %v4038_v3 }
 0x1fb   :  { %v294_v4 = vpop.f32.mrf.mxu0 }
 0x1fc   :  { %v4219_v5 = vpop.f32.mrf.mxu1  ;;  %v375_v14 = vmul.f32 0.25, %v294_v4 }
 0x1fd   :  { %v4221_v6 = vpop.f32.mrf.mxu0 }
 0x1fe   :  { %v4223_v7 = vpop.f32.mrf.mxu1 }
 0x1ff   :  { %v298_v8 = vpop.f32.mrf.mxu0 }
 0x200   :  { %v3563_v9 = vpop.f32.mrf.mxu1  ;;  %v376_v16 = vmul.f32 0.25, %v298_v8 }
 0x201   :  { %v4225_v10 = vpop.f32.mrf.mxu0 }
 0x202   :  { %629 = vrot.lane.b32.xlu1 %v4225_v10, %s4040_s1  ;;  %v4278_v18 = vpop.f32.mrf.mxu1 }
 0x203   :  { %v304_v11 = vpop.f32.mrf.mxu0 }
 0x204   :  { %v377_v17 = vmul.f32 0.25, %v304_v11 }
 0x205   :  { %v4229_v12 = vpop.f32.mrf.mxu0 }
 0x206   :  { %627 = vrot.lane.b32.xlu1 %v4221_v6, %s4040_s1  ;;  %631 = vrot.lane.b32.xlu0 %v4229_v12, %s4040_s1 }
 0x207   :  { %3565 = vmatpush3.xpose.msk.msra.mxu1 %vm378_vm2, %v4229_v12  ;;  %v308_v13 = vpop.f32.mrf.mxu0 }
 0x208   :  { %3566 = vmatprep.subr.mxu1 %v4038_v3  ;;  %v362_v13 = vadd.s32 16, %v4443_v62 }
 0x209   :  { %v309_v15 = vpop.f32.mrf.mxu0 }
 0x20a   :  { %621 = vrot.lane.b32.xlu1 %v375_v14, %s4041_s2  ;;  %890 = vrot.lane.b32.xlu0 %v4229_v12, %s4042_s17  ;;  %vm4481_vm6 = vcmp.lt.s32.totalorder %v362_v13, %v364_v63 }
 0x20b   :  { %3567 = vmatpush3.xpose.msk.msra.mxu1 %vm378_vm2, %v4225_v10 }
 0x20c   :  { %3568 = vmatprep.subr.mxu1 %v4038_v3 }
 0x20e   :  { %623 = vrot.lane.b32.xlu1 %v376_v16, %s4041_s2  ;;  %888 = vrot.lane.b32.xlu0 %v4225_v10, %s4042_s17 }
 0x20f   :  { %3569 = vmatpush3.xpose.msk.msra.mxu1 %vm378_vm2, %v4221_v6 }
 0x210   :  { %3594 = vmatprep.subr.mxu1 %v4038_v3 }
 0x212   :  { %3571 = vmatmul.mubr.msk.f32.vlgmr.msra.gmra.mxu1 %vm378_vm2, %v375_v14  ;;  %625 = vrot.lane.b32.xlu1 %v377_v17, %s4041_s2 }
 0x213   :  { %886 = vrot.lane.b32.xlu0 %v4221_v6, %s4042_s17  ;;  %3573 = vmatprep.mubr.msk.f32.mxu1 %vm4039_vm1, %v4038_v3 }
 0x216   :  { %3574 = vmatmul.mubr.msk.f32.gmra.mxu1 %vm378_vm2, %v376_v16  ;;  %880 = vrot.lane.b32.xlu1 %v375_v14, %s4040_s1 }
 0x217   :  { %1149 = vrot.lane.b32.xlu0 %v4229_v12, %s4043_s18  ;;  %3576 = vmatprep.mubr.msk.f32.mxu1 %vm4039_vm1, %v4038_v3 }
 0x21a   :  { %3577 = vmatmul.mubr.msk.f32.gmra.mxu1 %vm378_vm2, %v377_v17  ;;  %882 = vrot.lane.b32.xlu1 %v376_v16, %s4040_s1 }
 0x21b   :  { %1147 = vrot.lane.b32.xlu0 %v4225_v10, %s4043_s18  ;;  %3600 = vmatprep.mubr.msk.f32.mxu1 %vm4039_vm1, %v4038_v3 }
 0x21e   :  { %884 = vrot.lane.b32.xlu1 %v377_v17, %s4040_s1 }
 0x21f   :  { %1145 = vrot.lane.b32.xlu0 %v4221_v6, %s4043_s18 }
 0x222   :  { %1139 = vrot.lane.b32.xlu1 %v375_v14, %s4044_s19 }
 0x223   :  { %1141 = vrot.lane.b32.xlu0 %v376_v16, %s4044_s19 }
 0x226   :  { %1143 = vrot.lane.b32.xlu1 %v377_v17, %s4044_s19 }
 0x227   :  { %1398 = vrot.lane.b32.xlu0 %v375_v14, %s4042_s17 }
 0x22a   :  { %1664 = vrot.lane.b32.xlu1 %v4219_v5, %s4040_s1 }
 0x22b   :  { %1400 = vrot.lane.b32.xlu0 %v376_v16, %s4042_s17 }
 0x22e   :  { %1662 = vrot.lane.b32.xlu1 %v4278_v18, %s4040_s1 }
 0x22f   :  { %1402 = vrot.lane.b32.xlu0 %v377_v17, %s4042_s17 }
 0x232   :  { %1660 = vrot.lane.b32.xlu1 %v4223_v7, %s4040_s1 }
 0x233   :  { %1654 = vrot.lane.b32.xlu0 %v375_v14, %s4045_s20 }
 0x236   :  { %1923 = vrot.lane.b32.xlu1 %v4219_v5, %s4042_s17 }
 0x237   :  { %1656 = vrot.lane.b32.xlu0 %v376_v16, %s4045_s20 }
 0x23a   :  { %1921 = vrot.lane.b32.xlu1 %v4278_v18, %s4042_s17 }
 0x23b   :  { %1658 = vrot.lane.b32.xlu0 %v377_v17, %s4045_s20 }
 0x23e   :  { %1919 = vrot.lane.b32.xlu1 %v4223_v7, %s4042_s17 }
 0x23f   :  { %1913 = vrot.lane.b32.xlu0 %v375_v14, %s4043_s18 }
 0x242   :  { %2182 = vrot.lane.b32.xlu1 %v4219_v5, %s4043_s18 }
 0x243   :  { %1915 = vrot.lane.b32.xlu0 %v376_v16, %s4043_s18 }
 0x246   :  { %2180 = vrot.lane.b32.xlu1 %v4278_v18, %s4043_s18 }
 0x247   :  { %1917 = vrot.lane.b32.xlu0 %v377_v17, %s4043_s18 }
 0x24a   :  { %2178 = vrot.lane.b32.xlu1 %v4223_v7, %s4043_s18 }
 0x24b   :  { %2172 = vrot.lane.b32.xlu0 %v375_v14, %s4046_s21 }
 0x24e   :  { %2174 = vrot.lane.b32.xlu1 %v376_v16, %s4046_s21 }
 0x24f   :  { %2176 = vrot.lane.b32.xlu0 %v377_v17, %s4046_s21 }
 0x252   :  { %518 = vrot.lane.b32.xlu1 %v4221_v6, %s4041_s2 }
 0x253   :  { %520 = vrot.lane.b32.xlu0 %v4225_v10, %s4041_s2 }
 0x256   :  { %764 = vrot.lane.b32.xlu1 %v4221_v6, %s4044_s19 }
 0x257   :  { %766 = vrot.lane.b32.xlu0 %v4225_v10, %s4044_s19 }
 0x25a   :  { %1023 = vrot.lane.b32.xlu1 %v4221_v6, %s4045_s20 }
 0x25b   :  { %1025 = vrot.lane.b32.xlu0 %v4225_v10, %s4045_s20 }
 0x25e   :  { %1282 = vrot.lane.b32.xlu1 %v4221_v6, %s4046_s21 }
 0x25f   :  { %1284 = vrot.lane.b32.xlu0 %v4225_v10, %s4046_s21 }
 0x262   :  { %1542 = vrot.lane.b32.xlu1 %v4219_v5, %s4041_s2 }
 0x263   :  { %1540 = vrot.lane.b32.xlu0 %v4278_v18, %s4041_s2 }
 0x266   :  { %1538 = vrot.lane.b32.xlu1 %v4223_v7, %s4041_s2 }
 0x267   :  { %1799 = vrot.lane.b32.xlu0 %v4278_v18, %s4044_s19 }
 0x26a   :  { %1801 = vrot.lane.b32.xlu1 %v4219_v5, %s4044_s19 }
 0x26e   :  { %522 = vrot.lane.b32.xlu1 %v4229_v12, %s4041_s2 }
 0x272   :  { %768 = vrot.lane.b32.xlu1 %v4229_v12, %s4044_s19 }
 0x274   :  { %v630_v19 = vpop.permute.xlu1 %629 }
 0x276   :  { %1027 = vrot.lane.b32.xlu1 %v4229_v12, %s4045_s20 }
 0x278   :  { %v628_v20 = vpop.permute.xlu1 %627  ;;  %v632_v21 = vpop.permute.xlu0 %631 }
 0x279   :  { %3595 = vmatpush3.xpose.msk.msra.mxu1 %vm378_vm2, %v632_v21 }
 0x27a   :  { %1286 = vrot.lane.b32.xlu1 %v4229_v12, %s4046_s21  ;;  %3596 = vmatprep.subr.mxu1 %v4038_v3 }
 0x27c   :  { %v622_v22 = vpop.permute.xlu1 %621  ;;  %v891_v23 = vpop.permute.xlu0 %890 }
 0x27d   :  { %3597 = vmatpush3.xpose.msk.msra.mxu1 %vm378_vm2, %v630_v19 }
 0x27e   :  { %3598 = vmatprep.subr.mxu1 %v4038_v3 }
 0x280   :  { %v624_v24 = vpop.permute.xlu1 %623  ;;  %v889_v25 = vpop.permute.xlu0 %888 }
 0x281   :  { %3599 = vmatpush3.xpose.msk.msra.mxu1 %vm378_vm2, %v628_v20 }
 0x282   :  { %3624 = vmatprep.subr.mxu1 %v4038_v3 }
 0x284   :  { %v626_v26 = vpop.permute.xlu1 %625  ;;  %3601 = vmatmul.mubr.msk.f32.vlgmr.msra.gmra.mxu1 %vm378_vm2, %v622_v22 }
 0x285   :  { %v887_v27 = vpop.permute.xlu0 %886  ;;  %3625 = vmatpush3.xpose.msk.msra.mxu1 %vm378_vm2, %v891_v23  ;;  %3603 = vmatprep.mubr.msk.f32.mxu1 %vm4039_vm1, %v4038_v3 }
 0x286   :  { %3626 = vmatprep.subr.mxu1 %v4038_v3 }
 0x288   :  { %v881_v28 = vpop.permute.xlu1 %880  ;;  %3604 = vmatmul.mubr.msk.f32.gmra.mxu1 %vm378_vm2, %v624_v24 }
 0x289   :  { %v1150_v29 = vpop.permute.xlu0 %1149  ;;  %3627 = vmatpush3.xpose.msk.msra.mxu1 %vm378_vm2, %v889_v25  ;;  %3606 = vmatprep.mubr.msk.f32.mxu1 %vm4039_vm1, %v4038_v3 }
 0x28a   :  { %3628 = vmatprep.subr.mxu1 %v4038_v3 }
 0x28c   :  { %v883_v30 = vpop.permute.xlu1 %882  ;;  %3607 = vmatmul.mubr.msk.f32.gmra.mxu1 %vm378_vm2, %v626_v26 }
 0x28d   :  { %v1148_v31 = vpop.permute.xlu0 %1147  ;;  %3629 = vmatpush3.xpose.msk.msra.mxu1 %vm378_vm2, %v887_v27  ;;  %3630 = vmatprep.mubr.msk.f32.mxu1 %vm4039_vm1, %v4038_v3 }
 0x28e   :  { %3654 = vmatprep.subr.mxu1 %v4038_v3 }
 0x290   :  { %v885_v32 = vpop.permute.xlu1 %884  ;;  %3631 = vmatmul.mubr.msk.f32.vlgmr.msra.gmra.mxu1 %vm378_vm2, %v881_v28 }
 0x291   :  { %v1146_v33 = vpop.permute.xlu0 %1145  ;;  %3655 = vmatpush3.xpose.msk.msra.mxu1 %vm378_vm2, %v1150_v29  ;;  %3633 = vmatprep.mubr.msk.f32.mxu1 %vm4039_vm1, %v4038_v3 }
 0x292   :  { %3656 = vmatprep.subr.mxu1 %v4038_v3 }
 0x294   :  { %v1140_v35 = vpop.permute.xlu1 %1139  ;;  %3634 = vmatmul.mubr.msk.f32.gmra.mxu1 %vm378_vm2, %v883_v30 }
 0x295   :  { %v1142_v36 = vpop.permute.xlu0 %1141  ;;  %3657 = vmatpush3.xpose.msk.msra.mxu1 %vm378_vm2, %v1148_v31  ;;  %3636 = vmatprep.mubr.msk.f32.mxu1 %vm4039_vm1, %v4038_v3 }
 0x296   :  { %3658 = vmatprep.subr.mxu1 %v4038_v3 }
 0x298   :  { %v1144_v37 = vpop.permute.xlu1 %1143  ;;  %3637 = vmatmul.mubr.msk.f32.gmra.mxu1 %vm378_vm2, %v885_v32 }
 0x299   :  { %v1399_v38 = vpop.permute.xlu0 %1398  ;;  %3659 = vmatpush3.xpose.msk.msra.mxu1 %vm378_vm2, %v1146_v33  ;;  %3660 = vmatprep.mubr.msk.f32.mxu1 %vm4039_vm1, %v4038_v3 }
 0x29a   :  { %3684 = vmatprep.subr.mxu1 %v4038_v3 }
 0x29c   :  { %v1665_v39 = vpop.permute.xlu1 %1664  ;;  %3661 = vmatmul.mubr.msk.f32.vlgmr.msra.gmra.mxu1 %vm378_vm2, %v1140_v35 }
 0x29d   :  { %v1401_v40 = vpop.permute.xlu0 %1400  ;;  %3685 = vmatpush3.xpose.msk.msra.mxu1 %vm378_vm2, %v4219_v5  ;;  %3663 = vmatprep.mubr.msk.f32.mxu1 %vm4039_vm1, %v4038_v3 }
 0x29e   :  { %3686 = vmatprep.subr.mxu1 %v4038_v3 }
 0x2a0   :  { %v1663_v41 = vpop.permute.xlu1 %1662  ;;  %3664 = vmatmul.mubr.msk.f32.gmra.mxu1 %vm378_vm2, %v1142_v36 }
 0x2a1   :  { %v1403_v42 = vpop.permute.xlu0 %1402  ;;  %3687 = vmatpush3.xpose.msk.msra.mxu1 %vm378_vm2, %v4278_v18  ;;  %3666 = vmatprep.mubr.msk.f32.mxu1 %vm4039_vm1, %v4038_v3 }
 0x2a2   :  { %3688 = vmatprep.subr.mxu1 %v4038_v3 }
 0x2a4   :  { %v1661_v43 = vpop.permute.xlu1 %1660  ;;  %3667 = vmatmul.mubr.msk.f32.gmra.mxu1 %vm378_vm2, %v1144_v37 }
 0x2a5   :  { %3689 = vmatpush3.xpose.msk.msra.mxu1 %vm378_vm2, %v4223_v7  ;;  %3690 = vmatprep.mubr.msk.f32.mxu1 %vm4039_vm1, %v4038_v3  ;;  %v1655_v44 = vpop.permute.xlu0 %1654 }
 0x2a6   :  { %3714 = vmatprep.subr.mxu1 %v4038_v3 }
 0x2a8   :  { %v1924_v45 = vpop.permute.xlu1 %1923  ;;  %3691 = vmatmul.mubr.msk.f32.vlgmr.msra.gmra.mxu1 %vm378_vm2, %v1399_v38 }
 0x2a9   :  { %3715 = vmatpush3.xpose.msk.msra.mxu1 %vm378_vm2, %v1665_v39  ;;  %3693 = vmatprep.mubr.msk.f32.mxu1 %vm4039_vm1, %v4038_v3  ;;  %v1657_v47 = vpop.permute.xlu0 %1656 }
 0x2aa   :  { %3716 = vmatprep.subr.mxu1 %v4038_v3 }
 0x2ac   :  { %v1922_v46 = vpop.permute.xlu1 %1921  ;;  %3694 = vmatmul.mubr.msk.f32.gmra.mxu1 %vm378_vm2, %v1401_v40 }
 0x2ad   :  { %3717 = vmatpush3.xpose.msk.msra.mxu1 %vm378_vm2, %v1663_v41  ;;  %3696 = vmatprep.mubr.msk.f32.mxu1 %vm4039_vm1, %v4038_v3  ;;  %v1659_v49 = vpop.permute.xlu0 %1658 }
 0x2ae   :  { %3718 = vmatprep.subr.mxu1 %v4038_v3 }
 0x2b0   :  { %v1920_v48 = vpop.permute.xlu1 %1919  ;;  %3697 = vmatmul.mubr.msk.f32.gmra.mxu1 %vm378_vm2, %v1403_v42 }
 0x2b1   :  { %3719 = vmatpush3.xpose.msk.msra.mxu1 %vm378_vm2, %v1661_v43  ;;  %3720 = vmatprep.mubr.msk.f32.mxu1 %vm4039_vm1, %v4038_v3  ;;  %v1914_v52 = vpop.permute.xlu0 %1913 }
 0x2b2   :  { %3744 = vmatprep.subr.mxu1 %v4038_v3 }
 0x2b4   :  { %v2183_v50 = vpop.permute.xlu1 %2182  ;;  %3721 = vmatmul.mubr.msk.f32.vlgmr.msra.gmra.mxu1 %vm378_vm2, %v1655_v44 }
 0x2b5   :  { %3745 = vmatpush3.xpose.msk.msra.mxu1 %vm378_vm2, %v1924_v45  ;;  %3723 = vmatprep.mubr.msk.f32.mxu1 %vm4039_vm1, %v4038_v3  ;;  %v1916_v54 = vpop.permute.xlu0 %1915 }
 0x2b6   :  { %3746 = vmatprep.subr.mxu1 %v4038_v3 }
 0x2b8   :  { %v2181_v51 = vpop.permute.xlu1 %2180  ;;  %3724 = vmatmul.mubr.msk.f32.gmra.mxu1 %vm378_vm2, %v1657_v47 }
 0x2b9   :  { %3747 = vmatpush3.xpose.msk.msra.mxu1 %vm378_vm2, %v1922_v46  ;;  %3726 = vmatprep.mubr.msk.f32.mxu1 %vm4039_vm1, %v4038_v3  ;;  %v1918_v57 = vpop.permute.xlu0 %1917 }
 0x2ba   :  { %3748 = vmatprep.subr.mxu1 %v4038_v3 }
 0x2bc   :  { %v2179_v53 = vpop.permute.xlu1 %2178  ;;  %3727 = vmatmul.mubr.msk.f32.gmra.mxu1 %vm378_vm2, %v1659_v49 }
 0x2bd   :  { %3749 = vmatpush3.xpose.msk.msra.mxu1 %vm378_vm2, %v1920_v48  ;;  %3750 = vmatprep.mubr.msk.f32.mxu1 %vm4039_vm1, %v4038_v3  ;;  %v2173_v60 = vpop.permute.xlu0 %2172 }
 0x2be   :  { %3774 = vmatprep.subr.mxu1 %v4038_v3 }
 0x2c0   :  { %v2175_v55 = vpop.permute.xlu1 %2174  ;;  %3751 = vmatmul.mubr.msk.f32.vlgmr.msra.gmra.mxu1 %vm378_vm2, %v1914_v52 }
 0x2c1   :  { %3775 = vmatpush3.xpose.msk.msra.mxu1 %vm378_vm2, %v2183_v50  ;;  %3753 = vmatprep.mubr.msk.f32.mxu1 %vm4039_vm1, %v4038_v3  ;;  %v2177_v6 = vpop.permute.xlu0 %2176 }
 0x2c2   :  { %3776 = vmatprep.subr.mxu1 %v4038_v3 }
 0x2c4   :  { %v519_v56 = vpop.permute.xlu1 %518  ;;  %3754 = vmatmul.mubr.msk.f32.gmra.mxu1 %vm378_vm2, %v1916_v54 }
 0x2c5   :  { %3777 = vmatpush3.xpose.msk.msra.mxu1 %vm378_vm2, %v2181_v51  ;;  %3756 = vmatprep.mubr.msk.f32.mxu1 %vm4039_vm1, %v4038_v3  ;;  %v521_v27 = vpop.permute.xlu0 %520 }
 0x2c6   :  { %3778 = vmatprep.subr.mxu1 %v4038_v3 }
 0x2c8   :  { %v4434_v58 = vpop.permute.xlu1 %764  ;;  %3757 = vmatmul.mubr.msk.f32.gmra.mxu1 %vm378_vm2, %v1918_v57 }
 0x2c9   :  { %3779 = vmatpush3.xpose.msk.msra.mxu1 %vm378_vm2, %v2179_v53  ;;  %3780 = vmatprep.mubr.msk.f32.mxu1 %vm4039_vm1, %v4038_v3  ;;  %v4497_v29 = vpop.permute.xlu0 %766 }
 0x2cc   :  { %v4440_v61 = vpop.permute.xlu1 %1023  ;;  %3781 = vmatmul.mubr.msk.f32.vlgmr.msra.gmra.mxu1 %vm378_vm2, %v2173_v60 }
 0x2cd   :  { %3783 = vmatprep.mubr.msk.f32.mxu1 %vm4039_vm1, %v4038_v3  ;;  %v4511_v38 = vpop.permute.xlu0 %1025 }
 0x2d0   :  { %v4447_v0 = vpop.permute.xlu1 %1282  ;;  %3784 = vmatmul.mubr.msk.f32.gmra.mxu1 %vm378_vm2, %v2175_v55 }
 0x2d1   :  { %3786 = vmatprep.mubr.msk.f32.mxu1 %vm4039_vm1, %v4038_v3  ;;  %v4521_v45 = vpop.permute.xlu0 %1284 }
 0x2d2   :  { %v463_v4 = vpop.f32.mrf.mxu1 }
 0x2d3   :  { %v4460_v8 = vsel %vm4451_vm3, -1e+30, %v463_v4 }
 0x2d4   :  { %v3572_v9 = vpop.f32.mrf.mxu1  ;;  %v4462_v10 = vpop.permute.xlu1 %1542  ;;  %3787 = vmatmul.mubr.msk.f32.gmra.mxu1 %vm378_vm2, %v2177_v6  ;;  %v481_v11 = vsel %vm480_vm4, %v4460_v8, -inf }
 0x2d5   :  { %482 = vmax.xlane.f32.xlu1 %v481_v11  ;;  %2746 = vmatprep.mubr.bf16.mxu1 %v4037_v34  ;;  %v4537_v54 = vpop.permute.xlu0 %1540 }
 0x2d6   :  { %v468_v14 = vpop.f32.mrf.mxu1 }
 0x2d7   :  { %v4475_v15 = vsel %vm4467_vm5, -1e+30, %v468_v14 }
 0x2d8   :  { %v3575_v16 = vpop.f32.mrf.mxu1  ;;  %v4477_v17 = vpop.permute.xlu1 %1538  ;;  %v484_v19 = vsel %vm480_vm4, %v4475_v15, -inf }
 0x2d9   :  { %485 = vmax.xlane.f32.xlu0 %v484_v19  ;;  %v4547_v2 = vpop.permute.xlu0 %1799 }
 0x2da   :  { %v473_v21 = vpop.f32.mrf.mxu1 }
 0x2db   :  { %v4487_v22 = vsel %vm4481_vm6, -1e+30, %v473_v21 }
 0x2dc   :  { %v3578_v23 = vpop.f32.mrf.mxu1  ;;  %v4489_v24 = vpop.permute.xlu1 %1801  ;;  %v488_v25 = vsel %vm487_vm7, %v4487_v22, -inf }
 0x2dd   :  { %489 = vmax.xlane.f32.xlu0 %v488_v25 }
 0x2e0   :  { %v523_v26 = vpop.permute.xlu1 %522 }
 0x2e1   :  { %3580 = vmatpush3.msk.msra.mxu0 %vm47_vm0, %v523_v26 }
 0x2e2   :  { %3581 = vmatprep.subr.mxu0 %v4038_v3 }
 0x2e3   :  { %3582 = vmatpush3.msra.mxu0 %v521_v27 }
 0x2e4   :  { %3583 = vmatprep.subr.mxu0 %v4038_v3  ;;  %v4517_v41 = vpop.permute.xlu1 %768 }
 0x2e5   :  { %3584 = vmatpush3.msra.mxu0 %v519_v56 }
 0x2e6   :  { %3609 = vmatprep.subr.mxu0 %v4038_v3 }
 0x2e8   :  { %v4529_v49 = vpop.permute.xlu1 %1027 }
 0x2ec   :  { %v4543_v57 = vpop.permute.xlu1 %1286 }
 0x344   :  { %v711_v28 = vpop.f32.mrf.mxu1 }
 0x345   :  { %v4501_v30 = vsel %vm4451_vm3, -1e+30, %v711_v28 }
 0x346   :  { %v3602_v31 = vpop.f32.mrf.mxu1  ;;  %v728_v32 = vsel %vm480_vm4, %v4501_v30, -inf }
 0x347   :  { %729 = vmax.xlane.f32.xlu0 %v728_v32 }
 0x348   :  { %v716_v33 = vpop.f32.mrf.mxu1 }
 0x349   :  { %v4507_v35 = vsel %vm4467_vm5, -1e+30, %v716_v33 }
 0x34a   :  { %v3605_v36 = vpop.f32.mrf.mxu1  ;;  %v731_v37 = vsel %vm480_vm4, %v4507_v35, -inf }
 0x34b   :  { %732 = vmax.xlane.f32.xlu1 %v731_v37 }
 0x34c   :  { %v721_v39 = vpop.f32.mrf.mxu1 }
 0x34d   :  { %v4515_v40 = vsel %vm4481_vm6, -1e+30, %v721_v39 }
 0x34e   :  { %v3608_v42 = vpop.f32.mrf.mxu1  ;;  %v734_v43 = vsel %vm487_vm7, %v4515_v40, -inf }
 0x34f   :  { %735 = vmax.xlane.f32.xlu0 %v734_v43 }
 0x350   :  { %v970_v44 = vpop.f32.mrf.mxu1 }
 0x351   :  { %v4525_v46 = vsel %vm4451_vm3, -1e+30, %v970_v44 }
 0x352   :  { %v3632_v47 = vpop.f32.mrf.mxu1  ;;  %v987_v48 = vsel %vm480_vm4, %v4525_v46, -inf }
 0x353   :  { %988 = vmax.xlane.f32.xlu1 %v987_v48 }
 0x354   :  { %v975_v50 = vpop.f32.mrf.mxu1 }
 0x355   :  { %v4533_v51 = vsel %vm4467_vm5, -1e+30, %v975_v50 }
 0x356   :  { %v3635_v52 = vpop.f32.mrf.mxu1  ;;  %v990_v53 = vsel %vm480_vm4, %v4533_v51, -inf }
 0x357   :  { %991 = vmax.xlane.f32.xlu0 %v990_v53 }
 0x358   :  { %v980_v55 = vpop.f32.mrf.mxu1 }
 0x359   :  { %v4541_v56 = vsel %vm4481_vm6, -1e+30, %v980_v55 }
 0x35a   :  { %v3638_v59 = vpop.f32.mrf.mxu1  ;;  %v993_v60 = vsel %vm487_vm7, %v4541_v56, -inf }
 0x35b   :  { %994 = vmax.xlane.f32.xlu1 %v993_v60 }
 0x35c   :  { %v1229_v63 = vpop.f32.mrf.mxu1 }
 0x35d   :  { %v4551_v4 = vsel %vm4451_vm3, -1e+30, %v1229_v63 }
 0x35e   :  { %v483_v6 = vpop.xlane.xlu1 %482  ;;  %v3662_v9 = vpop.f32.mrf.mxu1  ;;  %v1246_v11 = vsel %vm480_vm4, %v4551_v4, -inf }
 0x35f   :  { %v491_v13 = vsub.f32 %v4460_v8, %v483_v6  ;;  %1247 = vmax.xlane.f32.xlu0 %v1246_v11 }
 0x360   :  { %v1234_v14 = vpop.f32.mrf.mxu1 }
 0x361   :  { %v494_v16 = vmul.f32 1.442695, %v491_v13  ;;  %v4558_v19 = vsel %vm4467_vm5, -1e+30, %v1234_v14 }
 0x362   :  { %v486_v21 = vpop.xlane.xlu0 %485  ;;  %v3665_v23 = vpop.f32.mrf.mxu1  ;;  %v1249_v25 = vsel %vm480_vm4, %v4558_v19, -inf }
 0x363   :  { %3932 = vpow2.f32 %v494_v16  ;;  %v492_v26 = vsub.f32 %v4475_v15, %v486_v21  ;;  %1250 = vmax.xlane.f32.xlu1 %v1249_v25 }
 0x364   :  { %v1239_v27 = vpop.f32.mrf.mxu1 }
 0x365   :  { %v496_v28 = vmul.f32 1.442695, %v492_v26  ;;  %v4565_v8 = vsel %vm4481_vm6, -1e+30, %v1239_v27 }
 0x366   :  { %v490_v31 = vpop.xlane.xlu0 %489  ;;  %v3668_v32 = vpop.f32.mrf.mxu1  ;;  %v1252_v33 = vsel %vm487_vm7, %v4565_v8, -inf }
 0x367   :  { %3934 = vpow2.f32 %v496_v28  ;;  %v493_v36 = vsub.f32 %v4487_v22, %v490_v31  ;;  %1253 = vmax.xlane.f32.xlu0 %v1252_v33 }
 0x368   :  { %v1485_v37 = vpop.f32.mrf.mxu1 }
 0x369   :  { %v498_v39 = vmul.f32 1.442695, %v493_v36  ;;  %v4572_v15 = vsel %vm4451_vm3, -1e+30, %v1485_v37 }
 0x36a   :  { %v3692_v42 = vpop.f32.mrf.mxu1  ;;  %v1502_v43 = vsel %vm480_vm4, %v4572_v15, -inf }
 0x36b   :  { %3936 = vpow2.f32 %v498_v39  ;;  %1503 = vmax.xlane.f32.xlu1 %v1502_v43 }
 0x36c   :  { %v1490_v44 = vpop.f32.mrf.mxu1 }
 0x36d   :  { %v4578_v47 = vsel %vm4467_vm5, -1e+30, %v1490_v44 }
 0x36e   :  { %v3695_v48 = vpop.f32.mrf.mxu1  ;;  %v1505_v22 = vsel %vm480_vm4, %v4578_v47, -inf }
 0x36f   :  { %1506 = vmax.xlane.f32.xlu0 %v1505_v22 }
 0x370   :  { %v4582_v50 = vpop.eup %3932  ;;  %v1495_v52 = vpop.f32.mrf.mxu1 }
 0x371   :  { %v4586_v53 = vsel %vm4481_vm6, -1e+30, %v1495_v52  ;;  %v500_v59 = vsel %vm480_vm4, %v4582_v50, 0.0 }
 0x372   :  { %v3698_v55 = vpop.f32.mrf.mxu1  ;;  %v1508_v60 = vsel %vm487_vm7, %v4586_v53, -inf }
 0x373   :  { %501 = vadd.xlane.f32.xlu0 %v500_v59  ;;  %1509 = vmax.xlane.f32.xlu1 %v1508_v60 }
 0x374   :  { %v4592_v63 = vpop.eup %3934  ;;  %v1744_v6 = vpop.f32.mrf.mxu1 }
 0x375   :  { %v4596_v9 = vsel %vm4451_vm3, -1e+30, %v1744_v6  ;;  %v503_v13 = vsel %vm480_vm4, %v4592_v63, 0.0 }
 0x376   :  { %v3722_v11 = vpop.f32.mrf.mxu1  ;;  %v1761_v14 = vsel %vm480_vm4, %v4596_v9, -inf }
 0x377   :  { %504 = vadd.xlane.f32.xlu1 %v503_v13  ;;  %1762 = vmax.xlane.f32.xlu0 %v1761_v14 }
 0x378   :  { %v4602_v16 = vpop.eup %3936  ;;  %v1749_v21 = vpop.f32.mrf.mxu1 }
 0x379   :  { %v4606_v23 = vsel %vm4467_vm5, -1e+30, %v1749_v21  ;;  %v506_v26 = vsel %vm487_vm7, %v4602_v16, 0.0 }
 0x37a   :  { %v3725_v25 = vpop.f32.mrf.mxu1  ;;  %v1764_v27 = vsel %vm480_vm4, %v4606_v23, -inf }
 0x37b   :  { %507 = vadd.xlane.f32.xlu0 %v506_v26  ;;  %1765 = vmax.xlane.f32.xlu1 %v1764_v27 }
 0x37c   :  { %v1754_v28 = vpop.f32.mrf.mxu1 }
 0x37d   :  { %v4618_v59 = vsel %vm4481_vm6, -1e+30, %v1754_v28 }
 0x37e   :  { %v3728_v31 = vpop.f32.mrf.mxu1  ;;  %v1767_v6 = vsel %vm487_vm7, %v4618_v59, -inf }
 0x380   :  { %v2003_v32 = vpop.f32.mrf.mxu1 }
 0x381   :  { %v4622_v60 = vsel %vm4451_vm3, -1e+30, %v2003_v32 }
 0x382   :  { %v3752_v33 = vpop.f32.mrf.mxu1  ;;  %v2020_v11 = vsel %vm480_vm4, %v4622_v60, -inf }
 0x384   :  { %v2008_v36 = vpop.f32.mrf.mxu1 }
 0x385   :  { %v4630_v13 = vsel %vm4467_vm5, -1e+30, %v2008_v36 }
 0x386   :  { %v3755_v37 = vpop.f32.mrf.mxu1  ;;  %v2023_v21 = vsel %vm480_vm4, %v4630_v13, -inf }
 0x388   :  { %v2013_v39 = vpop.f32.mrf.mxu1 }
 0x389   :  { %v4634_v14 = vsel %vm4481_vm6, -1e+30, %v2013_v39 }
 0x38a   :  { %v3758_v42 = vpop.f32.mrf.mxu1  ;;  %v2026_v25 = vsel %vm487_vm7, %v4634_v14, -inf }
 0x38c   :  { %1797 = vrot.lane.b32.xlu1 %v4223_v7, %s4044_s19  ;;  %v2262_v43 = vpop.f32.mrf.mxu1 }
 0x38d   :  { %v4642_v26 = vsel %vm4451_vm3, -1e+30, %v2262_v43  ;;  %vm1396_vm3 = vcmask 517504  }
 0x38e   :  { %v3782_v44 = vpop.f32.mrf.mxu1  ;;  %v2279_v28 = vsel %vm480_vm4, %v4642_v26, -inf }
 0x390   :  { %v2267_v48 = vpop.f32.mrf.mxu1 }
 0x391   :  { %2060 = vrot.lane.b32.xlu0 %v4219_v5, %s4045_s20  ;;  %v4646_v27 = vsel %vm4467_vm5, -1e+30, %v2267_v48  ;;  %vm1911_vm5 = vcmask 779904  }
 0x392   :  { %v3785_v22 = vpop.f32.mrf.mxu1  ;;  %v2282_v31 = vsel %vm480_vm4, %v4646_v27, -inf }
 0x394   :  { %v2272_v52 = vpop.f32.mrf.mxu1 }
 0x395   :  { %v4654_v32 = vsel %vm4481_vm6, -1e+30, %v2272_v52  ;;  %vm2170_vm6 = vcmask 911104  }
 0x396   :  { %v3788_v55 = vpop.f32.mrf.mxu1  ;;  %v2285_v1 = vsel %vm487_vm7, %v4654_v32, -inf }
 0x3b0   :  { %1768 = vmax.xlane.f32.xlu0 %v1767_v6  ;;  %2021 = vmax.xlane.f32.xlu1 %v2020_v11 }
 0x3b4   :  { %2024 = vmax.xlane.f32.xlu0 %v2023_v21  ;;  %2027 = vmax.xlane.f32.xlu1 %v2026_v25 }
 0x3b8   :  { %2280 = vmax.xlane.f32.xlu0 %v2279_v28  ;;  %2283 = vmax.xlane.f32.xlu1 %v2282_v31 }
 0x3bc   :  { %2286 = vmax.xlane.f32.xlu1 %v2285_v1 }
 0x3d0   :  { %v730_v12 = vpop.xlane.xlu0 %729 }
 0x3d1   :  { %v737_v33 = vsub.f32 %v4501_v30, %v730_v12 }
 0x3d3   :  { %v740_v36 = vmul.f32 1.442695, %v737_v33 }
 0x3d4   :  { %v733_v37 = vpop.xlane.xlu1 %732 }
 0x3d5   :  { %3938 = vpow2.f32 %v740_v36  ;;  %v738_v39 = vsub.f32 %v4507_v35, %v733_v37 }
 0x3d7   :  { %v742_v42 = vmul.f32 1.442695, %v738_v39 }
 0x3d8   :  { %v736_v43 = vpop.xlane.xlu0 %735 }
 0x3d9   :  { %3940 = vpow2.f32 %v742_v42  ;;  %v739_v20 = vsub.f32 %v4515_v40, %v736_v43 }
 0x3db   :  { %v744_v44 = vmul.f32 1.442695, %v739_v20 }
 0x3dc   :  { %v989_v48 = vpop.xlane.xlu1 %988 }
 0x3dd   :  { %3942 = vpow2.f32 %v744_v44  ;;  %v996_v22 = vsub.f32 %v4525_v46, %v989_v48 }
 0x3df   :  { %v999_v52 = vmul.f32 1.442695, %v996_v22 }
 0x3e0   :  { %v992_v55 = vpop.xlane.xlu0 %991 }
 0x3e1   :  { %3944 = vpow2.f32 %v999_v52  ;;  %v997_v30 = vsub.f32 %v4533_v51, %v992_v55 }
 0x3e2   :  { %v4663_v6 = vpop.eup %3938 }
 0x3e3   :  { %v1001_v11 = vmul.f32 1.442695, %v997_v30  ;;  %v746_v35 = vsel %vm480_vm4, %v4663_v6, 0.0 }
 0x3e4   :  { %v995_v21 = vpop.xlane.xlu1 %994  ;;  %747 = vadd.xlane.f32.xlu0 %v746_v35 }
 0x3e5   :  { %3946 = vpow2.f32 %v1001_v11  ;;  %v998_v40 = vsub.f32 %v4541_v56, %v995_v21 }
 0x3e6   :  { %v4668_v25 = vpop.eup %3940 }
 0x3e7   :  { %v1003_v28 = vmul.f32 1.442695, %v998_v40  ;;  %v749_v46 = vsel %vm480_vm4, %v4668_v25, 0.0 }
 0x3e8   :  { %v1248_v31 = vpop.xlane.xlu0 %1247  ;;  %750 = vadd.xlane.f32.xlu1 %v749_v46 }
 0x3e9   :  { %3948 = vpow2.f32 %v1003_v28  ;;  %v1255_v51 = vsub.f32 %v4551_v4, %v1248_v31 }
 0x3ea   :  { %v4673_v1 = vpop.eup %3942 }
 0x3eb   :  { %v1258_v12 = vmul.f32 1.442695, %v1255_v51  ;;  %v752_v33 = vsel %vm487_vm7, %v4673_v1, 0.0 }
 0x3ec   :  { %v1251_v36 = vpop.xlane.xlu1 %1250  ;;  %753 = vadd.xlane.f32.xlu0 %v752_v33 }
 0x3ed   :  { %3950 = vpow2.f32 %v1258_v12  ;;  %v1256_v56 = vsub.f32 %v4558_v19, %v1251_v36 }
 0x3ee   :  { %v4678_v37 = vpop.eup %3944 }
 0x3ef   :  { %v1260_v39 = vmul.f32 1.442695, %v1256_v56  ;;  %v1005_v42 = vsel %vm480_vm4, %v4678_v37, 0.0 }
 0x3f0   :  { %1006 = vadd.xlane.f32.xlu0 %v1005_v42  ;;  %v1254_v20 = vpop.xlane.xlu0 %1253 }
 0x3f1   :  { %3952 = vpow2.f32 %v1260_v39 }
 0x3f2   :  { %v4682_v4 = vpop.eup %3946 }
 0x3f3   :  { %v1008_v43 = vsel %vm480_vm4, %v4682_v4, 0.0 }
 0x3f4   :  { %1009 = vadd.xlane.f32.xlu1 %v1008_v43  ;;  %v1504_v48 = vpop.xlane.xlu1 %1503 }
 0x3f6   :  { %v4686_v44 = vpop.eup %3948 }
 0x3f7   :  { %v1011_v19 = vsel %vm487_vm7, %v4686_v44, 0.0 }
 0x3f8   :  { %v1507_v22 = vpop.xlane.xlu0 %1506  ;;  %1012 = vadd.xlane.f32.xlu0 %v1011_v19 }
 0x3f9   :  { %v1512_v52 = vsub.f32 %v4578_v47, %v1507_v22 }
 0x3fa   :  { %v4691_v55 = vpop.eup %3950 }
 0x3fb   :  { %v1516_v30 = vmul.f32 1.442695, %v1512_v52  ;;  %v1264_v11 = vsel %vm480_vm4, %v4691_v55, 0.0 }
 0x3fc   :  { %v502_v35 = vpop.xlane.xlu0 %501  ;;  %v1510_v21 = vpop.xlane.xlu1 %1509  ;;  %1265 = vadd.xlane.f32.xlu0 %v1264_v11 }
 0x3fd   :  { %3954 = vpow2.f32 %v1516_v30 }
 0x3fe   :  { %v4695_v40 = vpop.eup %3952  ;;  %3956 = vrcp.f32 %v502_v35 }
 0x3ff   :  { %v1267_v28 = vsel %vm480_vm4, %v4695_v40, 0.0 }
 0x400   :  { %v505_v46 = vpop.xlane.xlu1 %504  ;;  %v1763_v31 = vpop.xlane.xlu0 %1762  ;;  %1268 = vadd.xlane.f32.xlu1 %v1267_v28 }
 0x401   :  { %3958 = vrcp.f32 %v505_v46  ;;  %v1770_v19 = vsub.f32 %v4596_v9, %v1763_v31 }
 0x403   :  { %v1773_v30 = vmul.f32 1.442695, %v1770_v19 }
 0x404   :  { %v508_v47 = vpop.xlane.xlu0 %507  ;;  %v1766_v22 = vpop.xlane.xlu1 %1765 }
 0x405   :  { %3960 = vrcp.f32 %v508_v47  ;;  %v1771_v52 = vsub.f32 %v4606_v23, %v1766_v22 }
 0x408   :  { %v4748_v11 = vpop.permute.xlu1 %1797 }
 0x40a   :  { %v4699_v51 = vpop.eup %3954 }
 0x40b   :  { %v3957_v12 = vpop.eup %3956  ;;  %v1523_v33 = vsel %vm480_vm4, %v4699_v51, 0.0 }
 0x40c   :  { %v4704_v36 = vmul.f32 %v3957_v12, %v4582_v50  ;;  %1524 = vadd.xlane.f32.xlu1 %v1523_v33 }
 0x40e   :  { %3586 = vmatmul.mubr.msk.f32.vlgmr.msra.gmra.mxu0 %vm480_vm4, %v4704_v36  ;;  %v3959_v56 = vpop.eup %3958 }
 0x40f   :  { %3610 = vmatpush3.msk.msra.mxu0 %vm47_vm0, %v4517_v41  ;;  %3588 = vmatprep.mubr.msk.f32.mxu0 %vm4039_vm1, %v4038_v3  ;;  %v4714_v39 = vmul.f32 %v3959_v56, %v4592_v63  ;;  %v1511_v63 = vsub.f32 %v4572_v15, %v1504_v48 }
 0x410   :  { %3611 = vmatprep.subr.mxu0 %v4038_v3 }
 0x411   :  { %3612 = vmatpush3.msra.mxu0 %v4497_v29  ;;  %v1257_v29 = vsub.f32 %v4565_v8, %v1254_v20  ;;  %v1514_v42 = vmul.f32 1.442695, %v1511_v63  ;;  %v1775_v8 = vmul.f32 1.442695, %v1771_v52 }
 0x412   :  { %3613 = vmatprep.subr.mxu0 %v4038_v3  ;;  %3589 = vmatmul.mubr.msk.f32.gmra.mxu0 %vm480_vm4, %v4714_v39  ;;  %v3961_v50 = vpop.eup %3960 }
 0x413   :  { %3614 = vmatpush3.msra.mxu0 %v4434_v58  ;;  %2058 = vrot.lane.b32.xlu0 %v4278_v18, %s4045_s20  ;;  %v4726_v41 = vmul.f32 %v3961_v50, %v4602_v16  ;;  %v1262_v58 = vmul.f32 1.442695, %v1257_v29  ;;  %v1513_v16 = vsub.f32 %v4586_v53, %v1510_v21  ;;  %v4746_v53 = vpop.permute.xlu0 %2060 }
 0x414   :  { %3591 = vmatprep.mubr.msk.f32.mxu0 %vm4039_vm1, %v4038_v3  ;;  %3639 = vmatprep.subr.mxu0 %v4038_v3 }
 0x415   :  { %3962 = vpow2.f32 %v1262_v58  ;;  %v1518_v43 = vmul.f32 1.442695, %v1513_v16 }
 0x416   :  { %3592 = vmatmul.mubr.msk.f32.gmra.mxu0 %vm480_vm4, %v4726_v41  ;;  %3964 = vpow2.f32 %v1514_v42 }
 0x417   :  { %3615 = vmatprep.mubr.msk.f32.mxu0 %vm4039_vm1, %v4038_v3  ;;  %3966 = vpow2.f32 %v1518_v43 }
 0x418   :  { %3968 = vpow2.f32 %v1773_v30 }
 0x419   :  { %3970 = vpow2.f32 %v1775_v8 }
 0x41d   :  { %2056 = vrot.lane.b32.xlu1 %v4223_v7, %s4045_s20 }
 0x422   :  { %v4740_v20 = vpop.eup %3962 }
 0x423   :  { %v1270_v15 = vsel %vm487_vm7, %v4740_v20, 0.0  ;;  %v4744_v48 = vpop.eup %3964 }
 0x424   :  { %v1520_v9 = vsel %vm480_vm4, %v4744_v48, 0.0  ;;  %v4752_v23 = vpop.eup %3966 }
 0x425   :  { %v1526_v28 = vsel %vm487_vm7, %v4752_v23, 0.0  ;;  %v4756_v46 = vpop.eup %3968 }
 0x426   :  { %v4760_v56 = vpop.eup %3970  ;;  %v1779_v58 = vsel %vm480_vm4, %v4756_v46, 0.0 }
 0x432   :  { %1271 = vadd.xlane.f32.xlu0 %v1270_v15 }
 0x436   :  { %1521 = vadd.xlane.f32.xlu0 %v1520_v9 }
 0x439   :  { %v1769_v35 = vpop.xlane.xlu0 %1768  ;;  %v2022_v21 = vpop.xlane.xlu1 %2021 }
 0x43a   :  { %v1772_v31 = vsub.f32 %v4618_v59, %v1769_v35  ;;  %v2029_v47 = vsub.f32 %v4622_v60, %v2022_v21  ;;  %1527 = vadd.xlane.f32.xlu0 %v1526_v28  ;;  %v1782_v60 = vsel %vm480_vm4, %v4760_v56, 0.0 }
 0x43c   :  { %v1777_v12 = vmul.f32 1.442695, %v1772_v31  ;;  %v2032_v33 = vmul.f32 1.442695, %v2029_v47 }
 0x43d   :  { %v2025_v50 = vpop.xlane.xlu0 %2024  ;;  %v2028_v29 = vpop.xlane.xlu1 %2027 }
 0x43e   :  { %3972 = vpow2.f32 %v1777_v12  ;;  %v2030_v63 = vsub.f32 %v4630_v13, %v2025_v50  ;;  %v2031_v42 = vsub.f32 %v4634_v14, %v2028_v29  ;;  %1780 = vadd.xlane.f32.xlu0 %v1779_v58 }
 0x43f   :  { %3974 = vpow2.f32 %v2032_v33 }
 0x440   :  { %v2034_v59 = vmul.f32 1.442695, %v2030_v63  ;;  %v2036_v16 = vmul.f32 1.442695, %v2031_v42 }
 0x441   :  { %v2281_v43 = vpop.xlane.xlu0 %2280  ;;  %v2284_v19 = vpop.xlane.xlu1 %2283  ;;  %1783 = vadd.xlane.f32.xlu1 %v1782_v60 }
 0x442   :  { %3976 = vpow2.f32 %v2034_v59  ;;  %v2288_v22 = vsub.f32 %v4642_v26, %v2281_v43  ;;  %v2289_v52 = vsub.f32 %v4646_v27, %v2284_v19 }
 0x443   :  { %3978 = vpow2.f32 %v2036_v16 }
 0x444   :  { %v2291_v30 = vmul.f32 1.442695, %v2288_v22  ;;  %v2293_v13 = vmul.f32 1.442695, %v2289_v52 }
 0x445   :  { %v2287_v8 = vpop.xlane.xlu1 %2286 }
 0x446   :  { %v2290_v14 = vsub.f32 %v4654_v32, %v2287_v8  ;;  %3980 = vpow2.f32 %v2293_v13 }
 0x447   :  { %3982 = vpow2.f32 %v2291_v30 }
 0x448   :  { %v2295_v15 = vmul.f32 1.442695, %v2290_v14 }
 0x44a   :  { %3984 = vpow2.f32 %v2295_v15 }
 0x44b   :  { %v4771_v9 = vpop.eup %3972 }
 0x44c   :  { %v1785_v35 = vsel %vm487_vm7, %v4771_v9, 0.0  ;;  %v4775_v21 = vpop.eup %3974 }
 0x44d   :  { %1786 = vadd.xlane.f32.xlu0 %v1785_v35  ;;  %v2038_v27 = vsel %vm480_vm4, %v4775_v21, 0.0 }
 0x44f   :  { %v4777_v26 = vpop.eup %3976 }
 0x450   :  { %v2041_v32 = vsel %vm480_vm4, %v4777_v26, 0.0  ;;  %v4783_v28 = vpop.eup %3978 }
 0x451   :  { %2039 = vadd.xlane.f32.xlu0 %v2038_v27  ;;  %2042 = vadd.xlane.f32.xlu1 %v2041_v32  ;;  %v2044_v47 = vsel %vm487_vm7, %v4783_v28, 0.0 }
 0x453   :  { %v4785_v31 = vpop.eup %3980 }
 0x454   :  { %v4789_v12 = vpop.eup %3982  ;;  %v2300_v33 = vsel %vm480_vm4, %v4785_v31, 0.0 }
 0x455   :  { %2045 = vadd.xlane.f32.xlu0 %v2044_v47  ;;  %2301 = vadd.xlane.f32.xlu1 %v2300_v33  ;;  %v2297_v50 = vsel %vm480_vm4, %v4789_v12, 0.0 }
 0x457   :  { %v4795_v29 = vpop.eup %3984 }
 0x458   :  { %v2303_v58 = vsel %vm487_vm7, %v4795_v29, 0.0 }
 0x459   :  { %2298 = vadd.xlane.f32.xlu0 %v2297_v50 }
 0x45d   :  { %2304 = vadd.xlane.f32.xlu0 %v2303_v58 }
 0x466   :  { %2317 = vrot.lane.b32.xlu1 %v4278_v18, %s4046_s21 }
 0x46a   :  { %2315 = vrot.lane.b32.xlu1 %v4223_v7, %s4046_s21 }
 0x46d   :  { %v748_v63 = vpop.xlane.xlu0 %747 }
 0x46e   :  { %3986 = vrcp.f32 %v748_v63 }
 0x471   :  { %v751_v42 = vpop.xlane.xlu1 %750 }
 0x472   :  { %3988 = vrcp.f32 %v751_v42 }
 0x473   :  { %2319 = vrot.lane.b32.xlu0 %v4219_v5, %s4046_s21 }
 0x475   :  { %v754_v59 = vpop.xlane.xlu0 %753 }
 0x476   :  { %3990 = vrcp.f32 %v754_v59 }
 0x479   :  { %v1007_v16 = vpop.xlane.xlu0 %1006 }
 0x47a   :  { %3992 = vrcp.f32 %v1007_v16 }
 0x47b   :  { %v3987_v60 = vpop.eup %3986 }
 0x47c   :  { %v756_v43 = vmul.f32 %v3987_v60, %v4663_v6 }
 0x47d   :  { %v1010_v19 = vpop.xlane.xlu1 %1009 }
 0x47e   :  { %3994 = vrcp.f32 %v1010_v19  ;;  %3616 = vmatmul.mubr.msk.f32.vlgmr.msra.gmra.mxu0 %vm480_vm4, %v756_v43 }
 0x47f   :  { %v3989_v18 = vpop.eup %3988  ;;  %3640 = vmatpush3.msk.msra.mxu0 %vm47_vm0, %v4529_v49  ;;  %3618 = vmatprep.mubr.msk.f32.mxu0 %vm4039_vm1, %v4038_v3 }
 0x480   :  { %3641 = vmatprep.subr.mxu0 %v4038_v3  ;;  %v758_v5 = vmul.f32 %v3989_v18, %v4668_v25  ;;  %v761_v25 = vadd.f32 %v756_v43, %v4704_v36 }
 0x481   :  { %3642 = vmatpush3.msra.mxu0 %v4511_v38  ;;  %v1013_v7 = vpop.xlane.xlu0 %1012 }
 0x482   :  { %3643 = vmatprep.subr.mxu0 %v4038_v3  ;;  %3996 = vrcp.f32 %v1013_v7  ;;  %3619 = vmatmul.mubr.msk.f32.gmra.mxu0 %vm480_vm4, %v758_v5  ;;  %v762_v13 = vadd.f32 %v758_v5, %v4714_v39 }
 0x483   :  { %v3991_v6 = vpop.eup %3990  ;;  %3644 = vmatpush3.msra.mxu0 %v4440_v61  ;;  %3621 = vmatprep.mubr.msk.f32.mxu0 %vm4039_vm1, %v4038_v3 }
 0x484   :  { %v760_v49 = vmul.f32 %v3991_v6, %v4673_v1  ;;  %3669 = vmatprep.subr.mxu0 %v4038_v3 }
 0x485   :  { %v1266_v22 = vpop.xlane.xlu0 %1265 }
 0x486   :  { %3998 = vrcp.f32 %v1266_v22  ;;  %3622 = vmatmul.mubr.msk.f32.gmra.mxu0 %vm480_vm4, %v760_v49 }
 0x487   :  { %v3993_v38 = vpop.eup %3992  ;;  %3645 = vmatprep.mubr.msk.f32.mxu0 %vm4039_vm1, %v4038_v3 }
 0x488   :  { %v1015_v52 = vmul.f32 %v3993_v38, %v4678_v37 }
 0x489   :  { %v1269_v61 = vpop.xlane.xlu1 %1268 }
 0x48a   :  { %v1020_v30 = vadd.f32 %v1015_v52, %v761_v25  ;;  %4000 = vrcp.f32 %v1269_v61  ;;  %3646 = vmatmul.mubr.msk.f32.vlgmr.msra.gmra.mxu0 %vm480_vm4, %v1015_v52 }
 0x48b   :  { %v3995_v1 = vpop.eup %3994  ;;  %3670 = vmatpush3.msk.msra.mxu0 %vm47_vm0, %v4543_v57  ;;  %3648 = vmatprep.mubr.msk.f32.mxu0 %vm4039_vm1, %v4038_v3  ;;  %v763_v57 = vadd.f32 %v760_v49, %v4726_v41 }
 0x48c   :  { %3671 = vmatprep.subr.mxu0 %v4038_v3  ;;  %v1017_v36 = vmul.f32 %v3995_v1, %v4682_v4 }
 0x48d   :  { %3672 = vmatpush3.msra.mxu0 %v4521_v45 }
 0x48e   :  { %3673 = vmatprep.subr.mxu0 %v4038_v3  ;;  %v1021_v37 = vadd.f32 %v1017_v36, %v762_v13  ;;  %3649 = vmatmul.mubr.msk.f32.gmra.mxu0 %vm480_vm4, %v1017_v36 }
 0x48f   :  { %v3997_v8 = vpop.eup %3996  ;;  %3674 = vmatpush3.msra.mxu0 %v4447_v0  ;;  %3651 = vmatprep.mubr.msk.f32.mxu0 %vm4039_vm1, %v4038_v3 }
 0x490   :  { %v1019_v39 = vmul.f32 %v3997_v8, %v4686_v44  ;;  %3699 = vmatprep.subr.mxu0 %v4038_v3 }
 0x492   :  { %v4843_v4 = vadd.f32 %v1019_v39, %v763_v57  ;;  %3652 = vmatmul.mubr.msk.f32.gmra.mxu0 %vm480_vm4, %v1019_v39 }
 0x493   :  { %v3999_v45 = vpop.eup %3998  ;;  %3675 = vmatprep.mubr.msk.f32.mxu0 %vm4039_vm1, %v4038_v3 }
 0x494   :  { %v1274_v14 = vmul.f32 %v3999_v45, %v4691_v55 }
 0x495   :  { %v1525_v35 = vpop.xlane.xlu1 %1524 }
 0x496   :  { %v4849_v0 = vadd.f32 %v1274_v14, %v1020_v30  ;;  %3676 = vmatmul.mubr.msk.f32.vlgmr.msra.gmra.mxu0 %vm480_vm4, %v1274_v14 }
 0x497   :  { %v4001_v15 = vpop.eup %4000  ;;  %3700 = vmatpush3.msk.msra.mxu0 %vm47_vm0, %v4462_v10  ;;  %3678 = vmatprep.mubr.msk.f32.mxu0 %vm4039_vm1, %v4038_v3  ;;  %v2059_v10 = vpop.permute.xlu0 %2058 }
 0x498   :  { %3701 = vmatprep.subr.mxu0 %v4038_v3  ;;  %v1276_v44 = vmul.f32 %v4001_v15, %v4695_v40 }
 0x499   :  { %3702 = vmatpush3.msra.mxu0 %v4537_v54  ;;  %v2057_v27 = vpop.permute.xlu1 %2056 }
 0x49a   :  { %3703 = vmatprep.subr.mxu0 %v4038_v3  ;;  %v4860_v55 = vadd.f32 %v1276_v44, %v1021_v37  ;;  %3679 = vmatmul.mubr.msk.f32.gmra.mxu0 %vm480_vm4, %v1276_v44 }
 0x49b   :  { %3704 = vmatpush3.msra.mxu0 %v4477_v17  ;;  %3681 = vmatprep.mubr.msk.f32.mxu0 %vm4039_vm1, %v4038_v3 }
 0x49c   :  { %3729 = vmatprep.subr.mxu0 %v4038_v3 }
 0x4bb   :  { %v1272_v41 = vpop.xlane.xlu0 %1271 }
 0x4bc   :  { %4002 = vrcp.f32 %v1272_v41 }
 0x4bf   :  { %v1522_v40 = vpop.xlane.xlu0 %1521 }
 0x4c0   :  { %4004 = vrcp.f32 %v1522_v40 }
 0x4c1   :  { %4006 = vrcp.f32 %v1525_v35 }
 0x4c3   :  { %v1528_v54 = vpop.xlane.xlu0 %1527 }
 0x4c4   :  { %4008 = vrcp.f32 %v1528_v54 }
 0x4c7   :  { %v1781_v32 = vpop.xlane.xlu0 %1780 }
 0x4c8   :  { %4010 = vrcp.f32 %v1781_v32 }
 0x4c9   :  { %v4003_v47 = vpop.eup %4002 }
 0x4ca   :  { %v4868_v17 = vmul.f32 %v4003_v47, %v4740_v20  ;;  %v1784_v33 = vpop.xlane.xlu1 %1783 }
 0x4cb   :  { %4012 = vrcp.f32 %v1784_v33 }
 0x4cc   :  { %3682 = vmatmul.mubr.msk.f32.gmra.mxu0 %vm480_vm4, %v4868_v17  ;;  %v1281_v39 = vadd.f32 %v4868_v17, %v4843_v4 }
 0x4cd   :  { %v4005_v50 = vpop.eup %4004  ;;  %3705 = vmatprep.mubr.msk.f32.mxu0 %vm4039_vm1, %v4038_v3 }
 0x4ce   :  { %v4875_v58 = vmul.f32 %v4005_v50, %v4744_v48  ;;  %v603_v63 = vpop.f32.mrf.mxu0  ;;  %v4007_v42 = vpop.eup %4006 }
 0x4cf   :  { %617 = vst.msk [vmem:[#allocation2] sm:$0xff] %vm378_vm2, %v603_v63  ;;  %v1532_v48 = vmul.f32 %v4007_v42, %v4699_v51 }
 0x4d0   :  { %v3587_v59 = vpop.f32.mrf.mxu0  ;;  %3706 = vmatmul.mubr.msk.f32.vlgmr.msra.gmra.mxu0 %vm480_vm4, %v4875_v58  ;;  %v1535_v37 = vadd.f32 %v4875_v58, %v4849_v0 }
 0x4d1   :  { %3730 = vmatpush3.msk.msra.mxu0 %vm47_vm0, %v4489_v24  ;;  %3708 = vmatprep.mubr.msk.f32.mxu0 %vm4039_vm1, %v4038_v3  ;;  %v4009_v16 = vpop.eup %4008  ;;  %v1536_v30 = vadd.f32 %v1532_v48, %v4860_v55 }
 0x4d2   :  { %3731 = vmatprep.subr.mxu0 %v4038_v3  ;;  %v608_v20 = vpop.f32.mrf.mxu0  ;;  %v4894_v51 = vmul.f32 %v4009_v16, %v4752_v23 }
 0x4d3   :  { %618 = vst.msk [vmem:[#allocation2 + $0x8] sm:$0xff] %vm378_vm2, %v608_v20  ;;  %3732 = vmatpush3.msra.mxu0 %v4547_v2  ;;  %vm1137_vm2 = vcmask 386304  }
 0x4d4   :  { %3733 = vmatprep.subr.mxu0 %v4038_v3  ;;  %v3590_v60 = vpop.f32.mrf.mxu0  ;;  %3709 = vmatmul.mubr.msk.f32.gmra.mxu0 %vm480_vm4, %v1532_v48  ;;  %v1537_v15 = vadd.f32 %v4894_v51, %v1281_v39 }
 0x4d5   :  { %3734 = vmatpush3.msra.mxu0 %v4748_v11  ;;  %3711 = vmatprep.mubr.msk.f32.mxu0 %vm4039_vm1, %v4038_v3  ;;  %v4011_v19 = vpop.eup %4010 }
 0x4d6   :  { %v613_v24 = vpop.f32.mrf.mxu0  ;;  %v1787_v43 = vpop.xlane.xlu0 %1786  ;;  %3759 = vmatprep.subr.mxu0 %v4038_v3  ;;  %v1789_v11 = vmul.f32 %v4011_v19, %v4756_v46 }
 0x4d7   :  { %620 = vst.msk [vmem:[#allocation2 + $0x10] sm:$0x3] %vm619_vm8, %v613_v24  ;;  %4014 = vrcp.f32 %v1787_v43 }
 0x4d8   :  { %v3593_v2 = vpop.f32.mrf.mxu0  ;;  %3712 = vmatmul.mubr.msk.f32.gmra.mxu0 %vm480_vm4, %v4894_v51  ;;  %v4013_v7 = vpop.eup %4012 }
 0x4d9   :  { %3735 = vmatprep.mubr.msk.f32.mxu0 %vm4039_vm1, %v4038_v3  ;;  %v1791_v6 = vmul.f32 %v4013_v7, %v4760_v56 }
 0x4da   :  { %v2040_v18 = vpop.xlane.xlu0 %2039  ;;  %v2043_v5 = vpop.xlane.xlu1 %2042 }
 0x4db   :  { %4016 = vrcp.f32 %v2040_v18 }
 0x4dc   :  { %4018 = vrcp.f32 %v2043_v5  ;;  %3736 = vmatmul.mubr.msk.f32.vlgmr.msra.gmra.mxu0 %vm480_vm4, %v1789_v11 }
 0x4dd   :  { %3760 = vmatpush3.msk.msra.mxu0 %vm47_vm0, %v4746_v53  ;;  %3738 = vmatprep.mubr.msk.f32.mxu0 %vm4039_vm1, %v4038_v3 }
 0x4de   :  { %3761 = vmatprep.subr.mxu0 %v4038_v3  ;;  %v2046_v23 = vpop.xlane.xlu0 %2045  ;;  %v2302_v46 = vpop.xlane.xlu1 %2301 }
 0x4df   :  { %3762 = vmatpush3.msra.mxu0 %v2059_v10  ;;  %4020 = vrcp.f32 %v2302_v46 }
 0x4e0   :  { %3763 = vmatprep.subr.mxu0 %v4038_v3  ;;  %3739 = vmatmul.mubr.msk.f32.gmra.mxu0 %vm480_vm4, %v1791_v6  ;;  %4022 = vrcp.f32 %v2046_v23 }
 0x4e1   :  { %3764 = vmatpush3.msra.mxu0 %v2057_v27  ;;  %3741 = vmatprep.mubr.msk.f32.mxu0 %vm4039_vm1, %v4038_v3 }
 0x4e2   :  { %v2299_v53 = vpop.xlane.xlu0 %2298  ;;  %3789 = vmatprep.subr.mxu0 %v4038_v3  ;;  %v2318_v61 = vpop.permute.xlu1 %2317 }
 0x4e3   :  { %4024 = vrcp.f32 %v2299_v53 }
 0x4e4   :  { %v4015_v49 = vpop.eup %4014 }
 0x4e5   :  { %v1793_v22 = vmul.f32 %v4015_v49, %v4771_v9  ;;  %v1795_v9 = vadd.f32 %v1791_v6, %v1536_v30 }
 0x4e6   :  { %v2305_v56 = vpop.xlane.xlu0 %2304  ;;  %v2316_v45 = vpop.permute.xlu1 %2315 }
 0x4e7   :  { %4026 = vrcp.f32 %v2305_v56  ;;  %3742 = vmatmul.mubr.msk.f32.gmra.mxu0 %vm480_vm4, %v1793_v22  ;;  %v1796_v41 = vadd.f32 %v1793_v22, %v1537_v15 }
 0x4e8   :  { %v4017_v38 = vpop.eup %4016  ;;  %3765 = vmatprep.mubr.msk.f32.mxu0 %vm4039_vm1, %v4038_v3 }
 0x4e9   :  { %v4019_v25 = vpop.eup %4018  ;;  %v2048_v52 = vmul.f32 %v4017_v38, %v4775_v21 }
 0x4ea   :  { %v2320_v1 = vpop.permute.xlu0 %2319  ;;  %v2050_v13 = vmul.f32 %v4019_v25, %v4777_v26  ;;  %v1794_v26 = vadd.f32 %v1789_v11, %v1535_v37 }
 0x4eb   :  { %3766 = vmatmul.mubr.msk.f32.vlgmr.msra.gmra.mxu0 %vm480_vm4, %v2048_v52 }
 0x4ec   :  { %3790 = vmatpush3.msk.msra.mxu0 %vm47_vm0, %v2320_v1  ;;  %3768 = vmatprep.mubr.msk.f32.mxu0 %vm4039_vm1, %v4038_v3  ;;  %v4021_v36 = vpop.eup %4020  ;;  %v2054_v8 = vadd.f32 %v2050_v13, %v1795_v9  ;;  %v2053_v44 = vadd.f32 %v2048_v52, %v1794_v26 }
 0x4ed   :  { %3791 = vmatprep.subr.mxu0 %v4038_v3  ;;  %v4023_v21 = vpop.eup %4022  ;;  %v2309_v57 = vmul.f32 %v4021_v36, %v4785_v31 }
 0x4ee   :  { %3792 = vmatpush3.msra.mxu0 %v2318_v61  ;;  %v2052_v55 = vmul.f32 %v4023_v21, %v4783_v28 }
 0x4ef   :  { %3793 = vmatprep.subr.mxu0 %v4038_v3  ;;  %3769 = vmatmul.mubr.msk.f32.gmra.mxu0 %vm480_vm4, %v2050_v13  ;;  %v2313_v0 = vadd.f32 %v2309_v57, %v2054_v8 }
 0x4f0   :  { %v4025_v14 = vpop.eup %4024  ;;  %3794 = vmatpush3.msra.mxu0 %v2316_v45  ;;  %3771 = vmatprep.mubr.msk.f32.mxu0 %vm4039_vm1, %v4038_v3  ;;  %v2055_v54 = vadd.f32 %v2052_v55, %v1796_v41 }
 0x4f1   :  { %v2307_v31 = vmul.f32 %v4025_v14, %v4789_v12  ;;  %v2432_v10 = vmul.f32 0.125, %v2313_v0 }
 0x4f3   :  { %v2312_v4 = vadd.f32 %v2307_v31, %v2053_v44  ;;  %3772 = vmatmul.mubr.msk.f32.gmra.mxu0 %vm480_vm4, %v2052_v55  ;;  %2435 = vst.msk [vmem:[%s5247_s11 + $0x8] sm:$0xff] %vm480_vm4, %v2432_v10 }
 0x4f4   :  { %v4027_v35 = vpop.eup %4026  ;;  %3795 = vmatprep.mubr.msk.f32.mxu0 %vm4039_vm1, %v4038_v3 }
 0x4f5   :  { %v2431_v40 = vmul.f32 0.125, %v2312_v4  ;;  %v2311_v12 = vmul.f32 %v4027_v35, %v4795_v29 }
 0x4f7   :  { %3796 = vmatmul.mubr.msk.f32.vlgmr.msra.gmra.mxu0 %vm480_vm4, %v2307_v31  ;;  %2434 = vst.msk [vmem:[%s5247_s11] sm:$0xff] %vm480_vm4, %v2431_v40  ;;  %v2314_v28 = vadd.f32 %v2311_v12, %v2055_v54 }
 0x4f8   :  { %3798 = vmatprep.mubr.msk.f32.mxu0 %vm4039_vm1, %v4038_v3 }
 0x4f9   :  { %v2433_v27 = vmul.f32 0.125, %v2314_v28  ;;  %v4034_v28 = vld [vmem:[%s5243_s0] sm:$0xff] }
 0x4fb   :  { %3799 = vmatmul.mubr.msk.f32.gmra.mxu0 %vm480_vm4, %v2309_v57  ;;  %2436 = vst.msk [vmem:[%s5247_s11 + $0x10] sm:$0x3] %vm487_vm7, %v2433_v27  ;;  %vm2429_vm7 = vcmask 1042304  }
 0x4fc   :  { %3801 = vmatprep.mubr.msk.f32.mxu0 %vm4039_vm1, %v4038_v3  ;;  %vm2426_vm1 = vcmask 1048448  }
 0x4ff   :  { %3802 = vmatmul.mubr.msk.f32.gmra.mxu0 %vm480_vm4, %v2311_v12  ;;  %vm1652_vm4 = vcmask 648704  }
 0x500   :  { %2797 = vmatprep.mubr.bf16.mxu0 %v4037_v34 }
 0x53e   :  { %v849_v29 = vpop.f32.mrf.mxu0 }
 0x53f   :  { %866 = vrot.lane.b32.xlu1 %v849_v29, %s4046_s21 }
 0x540   :  { %v3617_v32 = vpop.f32.mrf.mxu0 }
 0x542   :  { %v854_v47 = vpop.f32.mrf.mxu0 }
 0x543   :  { %868 = vrot.lane.b32.xlu1 %v854_v47, %s4046_s21 }
 0x544   :  { %v3620_v17 = vpop.f32.mrf.mxu0 }
 0x545   :  { %v4035_v17 = vld [vmem:[%s5243_s0 + $0x8] sm:$0xff] }
 0x546   :  { %v859_v33 = vpop.f32.mrf.mxu0 }
 0x547   :  { %870 = vrot.lane.b32.xlu1 %v859_v33, %s4046_s21 }
 0x548   :  { %v3623_v50 = vpop.f32.mrf.mxu0 }
 0x54a   :  { %v1108_v58 = vpop.f32.mrf.mxu0 }
 0x54b   :  { %1125 = vrot.lane.b32.xlu1 %v1108_v58, %s4043_s18 }
 0x54c   :  { %v3647_v3 = vpop.f32.mrf.mxu0 }
 0x54e   :  { %v1113_v63 = vpop.f32.mrf.mxu0 }
 0x54f   :  { %1127 = vrot.lane.b32.xlu0 %v1113_v63, %s4043_s18  ;;  %v4036_v63 = vld [vmem:[%s5243_s0 + $0x10] sm:$0x3] }
 0x550   :  { %v3650_v42 = vpop.f32.mrf.mxu0 }
 0x552   :  { %v1118_v59 = vpop.f32.mrf.mxu0 }
 0x554   :  { %v3653_v20 = vpop.f32.mrf.mxu0 }
 0x555   :  { %v3846_v20 = vld [vmem:[%s5248_s6 + $0xe0] ss:$16 sps:$4 sm:$0xff]  }
 0x556   :  { %v1367_v48 = vpop.f32.mrf.mxu0 }
 0x557   :  { %1384 = vrot.lane.b32.xlu1 %v1367_v48, %s4045_s20  ;;  %v3848_v48 = vld [vmem:[%s5248_s6 + $0xe4] ss:$16 sps:$4 sm:$0xff]  }
 0x558   :  { %v3677_v16 = vpop.f32.mrf.mxu0  ;;  %2714 = vmatprep.subr.bf16.mxu1 %v3848_v48 }
 0x559   :  { %v3849_v16 = vld [vmem:[%s5248_s6 + $0xe8] ss:$16 sps:$4 sm:$0xff]   ;;  %2715 = vmatpush1.bf16.msra.mxu1 %v3846_v20 }
 0x55a   :  { %v1372_v60 = vpop.f32.mrf.mxu0 }
 0x55b   :  { %1386 = vrot.lane.b32.xlu0 %v1372_v60, %s4045_s20  ;;  %v3851_v60 = vld [vmem:[%s5248_s6 + $0xec] ss:$16 sps:$4 sm:$0xff]  }
 0x55c   :  { %v3680_v24 = vpop.f32.mrf.mxu0  ;;  %2765 = vmatprep.subr.bf16.mxu0 %v3851_v60  ;;  %v3316_v60 = vld [vmem:[%s5251_s5] ss:$0 sm:$0xff] }
 0x55d   :  { %2766 = vmatpush1.bf16.msra.mxu0 %v3849_v16 }
 0x58c   :  { %v1377_v43 = vpop.f32.mrf.mxu0 }
 0x58e   :  { %v3683_v51 = vpop.f32.mrf.mxu0 }
 0x590   :  { %v1623_v19 = vpop.f32.mrf.mxu0 }
 0x591   :  { %1640 = vrot.lane.b32.xlu1 %v1623_v19, %s4042_s17 }
 0x592   :  { %v3707_v2 = vpop.f32.mrf.mxu0 }
 0x594   :  { %v1628_v11 = vpop.f32.mrf.mxu0 }
 0x595   :  { %1642 = vrot.lane.b32.xlu0 %v1628_v11, %s4042_s17 }
 0x596   :  { %v3710_v18 = vpop.f32.mrf.mxu0 }
 0x598   :  { %v1633_v5 = vpop.f32.mrf.mxu0 }
 0x59a   :  { %v3713_v7 = vpop.f32.mrf.mxu0 }
 0x59c   :  { %v1882_v23 = vpop.f32.mrf.mxu0 }
 0x59d   :  { %1899 = vrot.lane.b32.xlu1 %v1882_v23, %s4044_s19 }
 0x59e   :  { %v3737_v6 = vpop.f32.mrf.mxu0 }
 0x59f   :  { %v3854_v6 = vld [vmem:[%s5248_s6 + $0xc4] ss:$16 sps:$4 sm:$0xff]  }
 0x5a0   :  { %v1887_v46 = vpop.f32.mrf.mxu0  ;;  %2716 = vmatprep.subr.bf16.mxu1 %v3854_v6  ;;  %v3902_v6 = vld [vmem:[%s5249_s8 + $0x68] sm:$0xff]  }
 0x5a1   :  { %1901 = vrot.lane.b32.xlu0 %v1887_v46, %s4044_s19  ;;  %v3857_v46 = vld [vmem:[%s5248_s6 + $0xcc] ss:$16 sps:$4 sm:$0xff]  }
 0x5a2   :  { %v3740_v53 = vpop.f32.mrf.mxu0  ;;  %2767 = vmatprep.subr.bf16.mxu0 %v3857_v46 }
 0x5a3   :  { %v3852_v53 = vld [vmem:[%s5248_s6 + $0xc0] ss:$16 sps:$4 sm:$0xff]  }
 0x5a4   :  { %2717 = vmatpush1.bf16.msra.mxu1 %v3852_v53  ;;  %v3904_v53 = vld [vmem:[%s5249_s8 + $0x28] sm:$0xff]  }
 0x5a7   :  { %v1892_v49 = vpop.f32.mrf.mxu0 }
 0x5a9   :  { %v3743_v22 = vpop.f32.mrf.mxu0 }
 0x5ab   :  { %v2141_v56 = vpop.f32.mrf.mxu0 }
 0x5ac   :  { %2158 = vrot.lane.b32.xlu1 %v2141_v56, %s4040_s1 }
 0x5ad   :  { %v3767_v38 = vpop.f32.mrf.mxu0 }
 0x5ae   :  { %v3860_v38 = vld [vmem:[%s5248_s6 + $0xa4] ss:$16 sps:$4 sm:$0xff]  }
 0x5af   :  { %v2146_v25 = vpop.f32.mrf.mxu0  ;;  %2718 = vmatprep.subr.bf16.mxu1 %v3860_v38  ;;  %v3906_v38 = vld [vmem:[%s5249_s8 + $0x60] sm:$0xff]  }
 0x5b0   :  { %2160 = vrot.lane.b32.xlu0 %v2146_v25, %s4040_s1  ;;  %v3863_v25 = vld [vmem:[%s5248_s6 + $0xac] ss:$16 sps:$4 sm:$0xff]  }
 0x5b1   :  { %v867_v52 = vpop.permute.xlu1 %866  ;;  %v3770_v61 = vpop.f32.mrf.mxu0 }
 0x5b2   :  { %876 = vst.msk [vmem:[#allocation2] sm:$0xff] %vm875_vm9, %v867_v52  ;;  %v3858_v52 = vld [vmem:[%s5248_s6 + $0xa0] ss:$16 sps:$4 sm:$0xff]   ;;  %v3861_v61 = vld [vmem:[%s5248_s6 + $0xa8] ss:$16 sps:$4 sm:$0xff]  }
 0x5b3   :  { %v2151_v30 = vpop.f32.mrf.mxu0  ;;  %2719 = vmatpush1.bf16.msra.mxu1 %v3858_v52 }
 0x5b5   :  { %v869_v1 = vpop.permute.xlu1 %868  ;;  %v3773_v13 = vpop.f32.mrf.mxu0 }
 0x5b6   :  { %877 = vst.msk [vmem:[#allocation2 + $0x8] sm:$0xff] %vm875_vm9, %v869_v1  ;;  %v3866_v1 = vld [vmem:[%s5248_s6 + $0x84] ss:$16 sps:$4 sm:$0xff]   ;;  %v3869_v13 = vld [vmem:[%s5248_s6 + $0x8c] ss:$16 sps:$4 sm:$0xff]  }
 0x5b7   :  { %v2400_v9 = vpop.f32.mrf.mxu0  ;;  %2720 = vmatprep.subr.bf16.mxu1 %v3866_v1  ;;  %v3910_v1 = vld [vmem:[%s5249_s8 + $0x58] sm:$0xff]  }
 0x5b8   :  { %2417 = vrot.lane.b32.xlu1 %v2400_v9, %s4041_s2  ;;  %v3864_v9 = vld [vmem:[%s5248_s6 + $0x80] ss:$16 sps:$4 sm:$0xff]  }
 0x5b9   :  { %v871_v36 = vpop.permute.xlu1 %870  ;;  %v3797_v37 = vpop.f32.mrf.mxu0  ;;  %2721 = vmatpush1.bf16.msra.mxu1 %v3864_v9 }
 0x5ba   :  { %879 = vst.msk [vmem:[#allocation2 + $0x10] sm:$0x3] %vm878_vm10, %v871_v36  ;;  %v3867_v36 = vld [vmem:[%s5248_s6 + $0x88] ss:$16 sps:$4 sm:$0xff]   ;;  %v3872_v37 = vld [vmem:[%s5248_s6 + $0x64] ss:$16 sps:$4 sm:$0xff]  }
 0x5bb   :  { %v2405_v21 = vpop.f32.mrf.mxu0  ;;  %2722 = vmatprep.subr.bf16.mxu1 %v3872_v37  ;;  %v3913_v37 = vld [vmem:[%s5249_s8 + $0x98] sm:$0xff]  }
 0x5bc   :  { %1388 = vrot.lane.b32.xlu1 %v1377_v43, %s4045_s20  ;;  %2419 = vrot.lane.b32.xlu0 %v2405_v21, %s4041_s2  ;;  %v3875_v21 = vld [vmem:[%s5248_s6 + $0x6c] ss:$16 sps:$4 sm:$0xff]  }
 0x5bd   :  { %v1126_v8 = vpop.permute.xlu1 %1125  ;;  %v3800_v57 = vpop.f32.mrf.mxu0 }
 0x5be   :  { %1135 = vst.msk [vmem:[#allocation2] sm:$0xff] %vm1134_vm11, %v1126_v8  ;;  %v3870_v8 = vld [vmem:[%s5248_s6 + $0x60] ss:$16 sps:$4 sm:$0xff]   ;;  %v3873_v57 = vld [vmem:[%s5248_s6 + $0x68] ss:$16 sps:$4 sm:$0xff]  }
 0x5bf   :  { %v2410_v26 = vpop.f32.mrf.mxu0  ;;  %2723 = vmatpush1.bf16.msra.mxu1 %v3870_v8  ;;  %v3915_v8 = vld [vmem:[%s5249_s8 + $0xd0] sm:$0xff]  }
 0x5c0   :  { %1903 = vrot.lane.b32.xlu1 %v1892_v49, %s4044_s19  ;;  %1129 = vrot.lane.b32.xlu0 %v1118_v59, %s4043_s18  ;;  %v3855_v49 = vld [vmem:[%s5248_s6 + $0xc8] ss:$16 sps:$4 sm:$0xff]  }
 0x5c1   :  { %v1128_v39 = vpop.permute.xlu0 %1127  ;;  %v3803_v45 = vpop.f32.mrf.mxu0  ;;  %2768 = vmatpush1.bf16.msra.mxu0 %v3855_v49  ;;  %v3905_v49 = vld [vmem:[%s5249_s8 + $0xa8] sm:$0xff]  }
 0x5c2   :  { %1136 = vst.msk [vmem:[#allocation2 + $0x8] sm:$0xff] %vm1134_vm11, %v1128_v39  ;;  %2769 = vmatprep.subr.bf16.mxu0 %v3863_v25  ;;  %v3881_v39 = vld [vmem:[%s5248_s6 + $0x4c] ss:$16 sps:$4 sm:$0xff]   ;;  %v3876_v45 = vld [vmem:[%s5248_s6 + $0x40] ss:$16 sps:$4 sm:$0xff]  }
 0x5c3   :  { %v3907_v25 = vld [vmem:[%s5249_s8 + $0xe0] sm:$0xff]  }
 0x5c4   :  { %1644 = vrot.lane.b32.xlu0 %v1633_v5, %s4042_s17  ;;  %2421 = vrot.lane.b32.xlu1 %v2410_v26, %s4041_s2  ;;  %v3878_v26 = vld [vmem:[%s5248_s6 + $0x44] ss:$16 sps:$4 sm:$0xff]  }
 0x5c5   :  { %2770 = vmatpush1.bf16.msra.mxu0 %v3861_v61  ;;  %2724 = vmatprep.subr.bf16.mxu1 %v3878_v26  ;;  %v3908_v61 = vld [vmem:[%s5249_s8 + $0x20] sm:$0xff]   ;;  %v3917_v26 = vld [vmem:[%s5249_s8 + $0x90] sm:$0xff]  }
 0x5c6   :  { %2771 = vmatprep.subr.bf16.mxu0 %v3869_v13  ;;  %2725 = vmatpush1.bf16.msra.mxu1 %v3876_v45  ;;  %v3911_v13 = vld [vmem:[%s5249_s8 + $0xd8] sm:$0xff]   ;;  %v3919_v45 = vld [vmem:[%s5249_s8 + $0xc8] sm:$0xff]  }
 0x5c8   :  { %2162 = vrot.lane.b32.xlu0 %v2151_v30, %s4040_s1 }
 0x5c9   :  { %v1385_v14 = vpop.permute.xlu1 %1384  ;;  %2772 = vmatpush1.bf16.msra.mxu0 %v3867_v36  ;;  %v3912_v36 = vld [vmem:[%s5249_s8 + $0x18] sm:$0xff]  }
 0x5ca   :  { %1394 = vst.msk [vmem:[#allocation2] sm:$0xff] %vm1393_vm12, %v1385_v14  ;;  %2773 = vmatprep.subr.bf16.mxu0 %v3875_v21  ;;  %v3879_v14 = vld [vmem:[%s5248_s6 + $0x48] ss:$16 sps:$4 sm:$0xff]   ;;  %v3914_v21 = vld [vmem:[%s5249_s8 + $0x50] sm:$0xff]  }
 0x5cd   :  { %v1387_v0 = vpop.permute.xlu0 %1386  ;;  %2774 = vmatpush1.bf16.msra.mxu0 %v3873_v57  ;;  %v3916_v57 = vld [vmem:[%s5249_s8 + $0x10] sm:$0xff]  }
 0x5ce   :  { %1395 = vst.msk [vmem:[#allocation2 + $0x8] sm:$0xff] %vm1393_vm12, %v1387_v0  ;;  %2775 = vmatprep.subr.bf16.mxu0 %v3881_v39  ;;  %v3884_v0 = vld [vmem:[%s5248_s6 + $0x24] ss:$16 sps:$4 sm:$0xff]   ;;  %v3918_v39 = vld [vmem:[%s5249_s8 + $0x48] sm:$0xff]  }
 0x5cf   :  { %2726 = vmatprep.subr.bf16.mxu1 %v3884_v0  ;;  %v3921_v0 = vld [vmem:[%s5249_s8 + $0x88] sm:$0xff]  }
 0x5d1   :  { %2776 = vmatpush1.bf16.msra.mxu0 %v3879_v14  ;;  %v3920_v14 = vld [vmem:[%s5249_s8 + $0x8] sm:$0xff]  }
 0x603   :  { %v1641_v15 = vpop.permute.xlu1 %1640 }
 0x604   :  { %1650 = vst.msk [vmem:[#allocation2] sm:$0xff] %vm1649_vm13, %v1641_v15  ;;  %v3887_v15 = vld [vmem:[%s5248_s6 + $0x2c] ss:$16 sps:$4 sm:$0xff]  }
 0x605   :  { %2777 = vmatprep.subr.bf16.mxu0 %v3887_v15  ;;  %v3922_v15 = vld [vmem:[%s5249_s8 + $0x40] sm:$0xff]  }
 0x607   :  { %v1643_v44 = vpop.permute.xlu0 %1642 }
 0x608   :  { %1651 = vst.msk [vmem:[#allocation2 + $0x8] sm:$0xff] %vm1649_vm13, %v1643_v44  ;;  %v3882_v44 = vld [vmem:[%s5248_s6 + $0x20] ss:$16 sps:$4 sm:$0xff]  }
 0x609   :  { %2727 = vmatpush1.bf16.msra.mxu1 %v3882_v44  ;;  %v3923_v44 = vld [vmem:[%s5249_s8 + $0xc0] sm:$0xff]  }
 0x60f   :  { %v1900_v31 = vpop.permute.xlu1 %1899 }
 0x610   :  { %1909 = vst.msk [vmem:[#allocation2] sm:$0xff] %vm1908_vm14, %v1900_v31  ;;  %v3885_v31 = vld [vmem:[%s5248_s6 + $0x28] ss:$16 sps:$4 sm:$0xff]  }
 0x611   :  { %2778 = vmatpush1.bf16.msra.mxu0 %v3885_v31  ;;  %v3924_v31 = vld [vmem:[%s5249_s8] sm:$0xff]  }
 0x613   :  { %v1902_v55 = vpop.permute.xlu0 %1901 }
 0x614   :  { %1910 = vst.msk [vmem:[#allocation2 + $0x8] sm:$0xff] %vm1908_vm14, %v1902_v55  ;;  %v3890_v55 = vld [vmem:[%s5248_s6 + $0x4] ss:$16 sps:$4 sm:$0xff]  }
 0x615   :  { %2728 = vmatprep.subr.bf16.mxu1 %v3890_v55  ;;  %v3925_v55 = vld [vmem:[%s5249_s8 + $0x80] sm:$0xff]  }
 0x61e   :  { %v2159_v10 = vpop.permute.xlu1 %2158 }
 0x61f   :  { %2168 = vst.msk [vmem:[#allocation2] sm:$0xff] %vm2167_vm15, %v2159_v10  ;;  %v3893_v10 = vld [vmem:[%s5248_s6 + $0xc] ss:$16 sps:$4 sm:$0xff]  }
 0x620   :  { %2779 = vmatprep.subr.bf16.mxu0 %v3893_v10  ;;  %v2540_v10 = vsub.s32 1, %v4443_v62 }
 0x622   :  { %v2161_v4 = vpop.permute.xlu0 %2160 }
 0x623   :  { %2169 = vst.msk [vmem:[#allocation2 + $0x8] sm:$0xff] %vm2167_vm15, %v2161_v4  ;;  %v3888_v4 = vld [vmem:[%s5248_s6] ss:$16 sps:$4 sm:$0xff]  }
 0x624   :  { %2729 = vmatpush1.bf16.msra.mxu1 %v3888_v4  ;;  %v2548_v4 = vsub.s32 3, %v4443_v62 }
 0x62a   :  { %v2418_v41 = vpop.permute.xlu1 %2417 }
 0x62b   :  { %2427 = vst.msk [vmem:[#allocation2] sm:$0xff] %vm2426_vm1, %v2418_v41  ;;  %v3891_v41 = vld [vmem:[%s5248_s6 + $0x8] ss:$16 sps:$4 sm:$0xff]  }
 0x62c   :  { %2780 = vmatpush1.bf16.msra.mxu0 %v3891_v41  ;;  %v2536_v41 = vsub.s32 0, %v4443_v62 }
 0x62e   :  { %v2420_v35 = vpop.permute.xlu0 %2419  ;;  %v1389_v40 = vpop.permute.xlu1 %1388 }
 0x62f   :  { %2428 = vst.msk [vmem:[#allocation2 + $0x8] sm:$0xff] %vm2426_vm1, %v2420_v35  ;;  %v3894_v35 = vld [vmem:[%s5249_s8 + $0x78] sm:$0xff]  }
 0x630   :  { %3488 = vmatprep.subr.bf16.mxu1 %v3894_v35  ;;  %v2544_v35 = vsub.s32 2, %v4443_v62 }
 0x632   :  { %v1130_v54 = vpop.permute.xlu0 %1129  ;;  %v2437_v12 = vld [vmem:[#allocation2] sm:$0xff]  ;;  %v1904_v29 = vpop.permute.xlu1 %1903 }
 0x633   :  { %1138 = vst.msk [vmem:[#allocation2 + $0x10] sm:$0x3] %vm1137_vm2, %v1130_v54  ;;  %v4986_v27 = vadd.f32 %v4034_v28, %v2437_v12 }
 0x634   :  { %1397 = vst.msk [vmem:[#allocation2 + $0x10] sm:$0x3] %vm1396_vm3, %v1389_v40  ;;  %v3895_v40 = vld [vmem:[%s5249_s8 + $0xf8] sm:$0xff]  }
 0x635   :  { %2445 = vadd.xlane.f32.xlu0 %v4986_v27  ;;  %3516 = vmatprep.subr.bf16.mxu0 %v3895_v40  ;;  %v2532_v40 = vld [vmem:[%s5252_s7] sm:$0xf] }
 0x636   :  { %v1645_v32 = vpop.permute.xlu0 %1644  ;;  %v2438_v47 = vld [vmem:[#allocation2 + $0x8] sm:$0xff]  ;;  %v2422_v58 = vpop.permute.xlu1 %2421 }
 0x637   :  { %1653 = vst.msk [vmem:[#allocation2 + $0x10] sm:$0x3] %vm1652_vm4, %v1645_v32  ;;  %v4992_v33 = vadd.f32 %v4035_v17, %v2438_v47 }
 0x638   :  { %1912 = vst.msk [vmem:[#allocation2 + $0x10] sm:$0x3] %vm1911_vm5, %v1904_v29 }
 0x639   :  { %2447 = vadd.xlane.f32.xlu1 %v4992_v33 }
 0x63a   :  { %v2163_v50 = vpop.permute.xlu0 %2162 }
 0x63b   :  { %2171 = vst.msk [vmem:[#allocation2 + $0x10] sm:$0x3] %vm2170_vm6, %v2163_v50 }
 0x63c   :  { %2430 = vst.msk [vmem:[#allocation2 + $0x10] sm:$0x3] %vm2429_vm7, %v2422_v58 }
 0x643   :  { %v2439_v3 = vld [vmem:[#allocation2 + $0x10] sm:$0x3] }
 0x644   :  { %v4998_v42 = vadd.f32 %v4036_v63, %v2439_v3  ;;  %v3315_v63 = vld [vmem:[%s5250_s4] ss:$0 sm:$0xff] }
 0x646   :  { %v2449_v59 = vsel %vm47_vm0, %v4998_v42, 0.0 }
 0x647   :  { %2450 = vadd.xlane.f32.xlu0 %v2449_v59 }
 0x6be   :  { %v2446_v24 = vpop.xlane.xlu0 %2445 }
 0x6bf   :  { %v2452_v43 = vmul.f32 0.0078125, %v2446_v24 }
 0x6c1   :  { %v5015_v51 = vsub.f32 %v4986_v27, %v2452_v43 }
 0x6c2   :  { %v2448_v19 = vpop.xlane.xlu1 %2447 }
 0x6c3   :  { %v2453_v2 = vmul.f32 0.0078125, %v2448_v19  ;;  %v2458_v11 = vmul.f32 %v5015_v51, %v5015_v51 }
 0x6c5   :  { %v5020_v18 = vsub.f32 %v4992_v33, %v2453_v2  ;;  %2461 = vadd.xlane.f32.xlu0 %v2458_v11  ;;  %v3896_v2 = vld [vmem:[%s5249_s8 + $0x38] sm:$0xff]  }
 0x6c6   :  { %v3897_v11 = vld [vmem:[%s5249_s8 + $0xb8] sm:$0xff]  }
 0x6c7   :  { %v2459_v5 = vmul.f32 %v5020_v18, %v5020_v18 }
 0x6c9   :  { %2463 = vadd.xlane.f32.xlu0 %v2459_v5  ;;  %v3899_v5 = vld [vmem:[%s5249_s8 + $0xf0] sm:$0xff]  }
 0x6d0   :  { %v2451_v7 = vpop.xlane.xlu0 %2450 }
 0x6d1   :  { %v2454_v23 = vmul.f32 0.0078125, %v2451_v7  ;;  %v3900_v7 = vld [vmem:[%s5249_s8 + $0x30] sm:$0xff]  }
 0x6d3   :  { %v5037_v22 = vsub.f32 %v4998_v42, %v2454_v23  ;;  %v3901_v23 = vld [vmem:[%s5249_s8 + $0xb0] sm:$0xff]  }
 0x6d5   :  { %v2460_v56 = vmul.f32 %v5037_v22, %v5037_v22 }
 0x6d7   :  { %v2465_v30 = vsel %vm47_vm0, %v2460_v56, 0.0 }
 0x6d8   :  { %2466 = vadd.xlane.f32.xlu1 %v2465_v30 }
 0x74e   :  { %v2462_v54 = vpop.xlane.xlu0 %2461 }
 0x74f   :  { %v2468_v12 = vmul.f32 0.0078125, %v2462_v54 }
 0x751   :  { %v2471_v28 = vadd.f32 1e-05, %v2468_v12 }
 0x752   :  { %v2464_v29 = vpop.xlane.xlu0 %2463 }
 0x753   :  { %4028 = vrsqrt.f32 %v2471_v28  ;;  %v2469_v32 = vmul.f32 0.0078125, %v2464_v29  ;;  %v2541_v28 = vrot.slane %v2532_v40, %v2540_v10  ;;  %v2549_v29 = vrot.slane %v2532_v40, %v2548_v4 }
 0x755   :  { %v2472_v47 = vadd.f32 1e-05, %v2469_v32  ;;  %v2537_v32 = vrot.slane %v2532_v40, %v2536_v41 }
 0x757   :  { %4030 = vrsqrt.f32 %v2472_v47  ;;  %v2545_v47 = vrot.slane %v2532_v40, %v2544_v35 }
 0x760   :  { %v4029_v17 = vpop.eup %4028 }
 0x761   :  { %v2477_v50 = vmul.f32 %v4029_v17, %v5015_v51  ;;  %v2467_v58 = vpop.xlane.xlu1 %2466 }
 0x762   :  { %v2470_v3 = vmul.f32 0.0078125, %v2467_v58 }
 0x763   :  { %v2486_v16 = vmul.f32 %v3315_v63, %v2477_v50 }
 0x764   :  { %v4031_v59 = vpop.eup %4030  ;;  %v2473_v20 = vadd.f32 1e-05, %v2470_v3 }
 0x765   :  { %v2478_v48 = vmul.f32 %v4031_v59, %v5020_v18  ;;  %v2495_v43 = vadd.f32 %v3316_v60, %v2486_v16  ;;  %v3898_v18 = vld [vmem:[%s5249_s8 + $0x70] sm:$0xff]  }
 0x766   :  { %4032 = vrsqrt.f32 %v2473_v20 }
 0x767   :  { %v2487_v24 = vmul.f32 %v3315_v63, %v2478_v48 }
 0x769   :  { %v2496_v19 = vadd.f32 %v3316_v60, %v2487_v24 }
 0x76b   :  { %v2498_v51 = vpack.c.bf16 %v2496_v19, %v2495_v43 }
 0x76d   :  { %2747 = vmatmul.mubr.bf16.vlgmr.msra.gmra.mxu1 %v2498_v51  ;;  %2798 = vmatmul.mubr.bf16.vlgmr.msra.gmra.mxu0 %v2498_v51 }
 0x76e   :  { %2756 = vmatprep.mubr.bf16.mxu1 %v4037_v34  ;;  %2807 = vmatprep.mubr.bf16.mxu0 %v4037_v34  ;;  %v3903_v34 = vld [vmem:[%s5249_s8 + $0xe8] sm:$0xff]  }
 0x76f   :  { %3489 = vmatpush3.bf16.msra.mxu1 %v3896_v2  ;;  %3517 = vmatpush3.bf16.msra.mxu0 %v3897_v11 }
 0x770   :  { %3490 = vmatprep.subr.bf16.mxu1 %v3898_v18  ;;  %3518 = vmatprep.subr.bf16.mxu0 %v3899_v5 }
 0x773   :  { %v4033_v46 = vpop.eup %4032  ;;  %3491 = vmatpush3.bf16.msra.mxu1 %v3900_v7  ;;  %3519 = vmatpush3.bf16.msra.mxu0 %v3901_v23 }
 0x774   :  { %v2479_v56 = vmul.f32 %v4033_v46, %v5037_v22  ;;  %3492 = vmatprep.subr.bf16.mxu1 %v3902_v6  ;;  %3520 = vmatprep.subr.bf16.mxu0 %v3903_v34  ;;  %v3909_v22 = vld [vmem:[%s5249_s8 + $0xa0] sm:$0xff]  }
 0x776   :  { %v2488_v52 = vmul.f32 %v3315_v63, %v2479_v56 }
 0x777   :  { %3493 = vmatpush3.bf16.msra.mxu1 %v3904_v53  ;;  %3521 = vmatpush3.bf16.msra.mxu0 %v3905_v49 }
 0x778   :  { %v2497_v30 = vadd.f32 %v3316_v60, %v2488_v52  ;;  %3494 = vmatprep.subr.bf16.mxu1 %v3906_v38  ;;  %3522 = vmatprep.subr.bf16.mxu0 %v3907_v25 }
 0x77a   :  { %v2499_v9 = vpack.c.bf16 %v2497_v30, %v2497_v30 }
 0x77b   :  { %3495 = vmatpush3.bf16.msra.mxu1 %v3908_v61  ;;  %3523 = vmatpush3.bf16.msra.mxu0 %v3909_v22 }
 0x77c   :  { %2757 = vmatmul.mubr.bf16.gmra.mxu1 %v2499_v9  ;;  %2808 = vmatmul.mubr.bf16.gmra.mxu0 %v2499_v9 }
 0x77d   :  { %3496 = vmatprep.subr.bf16.mxu1 %v3910_v1  ;;  %3524 = vmatprep.subr.bf16.mxu0 %v3911_v13 }
 0x77f   :  { %3497 = vmatpush3.bf16.msra.mxu1 %v3912_v36  ;;  %3525 = vmatpush3.bf16.msra.mxu0 %v3913_v37 }
 0x780   :  { %3498 = vmatprep.subr.bf16.mxu1 %v3914_v21  ;;  %3526 = vmatprep.subr.bf16.mxu0 %v3915_v8 }
 0x783   :  { %3499 = vmatpush3.bf16.msra.mxu1 %v3916_v57  ;;  %3527 = vmatpush3.bf16.msra.mxu0 %v3917_v26 }
 0x784   :  { %3500 = vmatprep.subr.bf16.mxu1 %v3918_v39  ;;  %3528 = vmatprep.subr.bf16.mxu0 %v3919_v45 }
 0x787   :  { %3501 = vmatpush3.bf16.msra.mxu1 %v3920_v14  ;;  %3529 = vmatpush3.bf16.msra.mxu0 %v3921_v0 }
 0x788   :  { %3502 = vmatprep.subr.bf16.mxu1 %v3922_v15  ;;  %3530 = vmatprep.subr.bf16.mxu0 %v3923_v44 }
 0x78b   :  { %3503 = vmatpush3.bf16.msra.mxu1 %v3924_v31  ;;  %3531 = vmatpush3.bf16.msra.mxu0 %v3925_v55  ;;  %v3349_v31 = vld [vmem:[%s5253_s9] ss:$0 sm:$0xff] }
 0x82d   :  { %v2748_v54 = vpop.f32.mrf.mxu1  ;;  %v2799_v12 = vpop.f32.mrf.mxu0 }
 0x82e   :  { %v2749_v16 = vadd.f32 %v2748_v54, %v2537_v32  ;;  %v2800_v62 = vadd.f32 %v2799_v12, %v2545_v47 }
 0x82f   :  { %v2750_v17 = vpop.f32.mrf.mxu1  ;;  %v2801_v50 = vpop.f32.mrf.mxu0 }
 0x830   :  { %v2751_v63 = vadd.f32 %v2750_v17, %v2541_v28  ;;  %v2802_v59 = vadd.f32 %v2801_v50, %v2549_v29  ;;  %v2816_v23 = vmax.f32 %v2749_v16, 0.0  ;;  %v2818_v6 = vmax.f32 %v2800_v62, 0.0 }
 0x831   :  { %v2752_v58 = vpop.f32.mrf.mxu1  ;;  %v2803_v3 = vpop.f32.mrf.mxu0 }
 0x832   :  { %v2753_v20 = vadd.f32 %v2752_v58, %v2537_v32  ;;  %v2804_v48 = vadd.f32 %v2803_v3, %v2545_v47  ;;  %v2817_v11 = vmax.f32 %v2751_v63, 0.0  ;;  %v2819_v18 = vmax.f32 %v2802_v59, 0.0 }
 0x833   :  { %v2754_v60 = vpop.f32.mrf.mxu1  ;;  %v2805_v24 = vpop.f32.mrf.mxu0 }
 0x834   :  { %v2755_v43 = vadd.f32 %v2754_v60, %v2541_v28  ;;  %v2806_v19 = vadd.f32 %v2805_v24, %v2549_v29  ;;  %v2820_v51 = vmax.f32 %v2753_v20, 0.0  ;;  %v2822_v2 = vmax.f32 %v2804_v48, 0.0 }
 0x836   :  { %v2821_v5 = vmax.f32 %v2755_v43, 0.0  ;;  %v2823_v7 = vmax.f32 %v2806_v19, 0.0  ;;  %v2828_v53 = vpack.c.bf16 %v2820_v51, %v2816_v23  ;;  %v2830_v49 = vpack.c.bf16 %v2822_v2, %v2818_v6 }
 0x838   :  { %v2829_v34 = vpack.c.bf16 %v2821_v5, %v2817_v11  ;;  %v2831_v46 = vpack.c.bf16 %v2823_v7, %v2819_v18 }
 0x83a   :  { %3131 = vmatprep.mubr.bf16.mxu1 %v2829_v34  ;;  %3179 = vmatprep.mubr.bf16.mxu0 %v2831_v46 }
 0x83b   :  { %3132 = vmatmul.mubr.bf16.vlgmr.msra.gmra.mxu1 %v2828_v53  ;;  %3180 = vmatmul.mubr.bf16.vlgmr.msra.gmra.mxu0 %v2830_v49 }
 0x83c   :  { %v2758_v56 = vpop.f32.mrf.mxu1  ;;  %v2809_v38 = vpop.f32.mrf.mxu0 }
 0x83d   :  { %v2759_v25 = vadd.f32 %v2758_v56, %v2537_v32  ;;  %v2810_v52 = vadd.f32 %v2809_v38, %v2545_v47 }
 0x83e   :  { %v2760_v61 = vpop.f32.mrf.mxu1  ;;  %v2811_v22 = vpop.f32.mrf.mxu0 }
 0x83f   :  { %v2761_v30 = vadd.f32 %v2760_v61, %v2541_v28  ;;  %v2812_v1 = vadd.f32 %v2811_v22, %v2549_v29  ;;  %v2824_v13 = vmax.f32 %v2759_v25, 0.0  ;;  %v2826_v9 = vmax.f32 %v2810_v52, 0.0 }
 0x840   :  { %v2762_v36 = vpop.f32.mrf.mxu1  ;;  %v2813_v37 = vpop.f32.mrf.mxu0 }
 0x841   :  { %v2825_v21 = vmax.f32 %v2761_v30, 0.0  ;;  %v2827_v8 = vmax.f32 %v2812_v1, 0.0  ;;  %v2832_v14 = vpack.c.bf16 %v2824_v13, %v2824_v13  ;;  %v2834_v0 = vpack.c.bf16 %v2826_v9, %v2826_v9 }
 0x842   :  { %v2763_v57 = vpop.f32.mrf.mxu1  ;;  %v2814_v26 = vpop.f32.mrf.mxu0 }
 0x843   :  { %v2833_v39 = vpack.c.bf16 %v2825_v21, %v2825_v21  ;;  %v2835_v45 = vpack.c.bf16 %v2827_v8, %v2827_v8 }
 0x845   :  { %3139 = vmatprep.mubr.bf16.mxu1 %v2833_v39  ;;  %3187 = vmatprep.mubr.bf16.mxu0 %v2835_v45 }
 0x846   :  { %3140 = vmatmul.mubr.bf16.gmra.mxu1 %v2832_v14  ;;  %3188 = vmatmul.mubr.bf16.gmra.mxu0 %v2834_v0 }
 0x8fb   :  { %v3504_v15 = vpop.f32.mrf.mxu1  ;;  %v3532_v44 = vpop.f32.mrf.mxu0 }
 0x8fd   :  { %v3505_v55 = vpop.f32.mrf.mxu1  ;;  %v3533_v10 = vpop.f32.mrf.mxu0 }
 0x8fe   :  { %v3506_v4 = vadd.f32 %v3505_v55, %v3504_v15  ;;  %v3534_v54 = vadd.f32 %v3533_v10, %v3532_v44 }
 0x8ff   :  { %v3507_v41 = vpop.f32.mrf.mxu1  ;;  %v3535_v35 = vpop.f32.mrf.mxu0 }
 0x900   :  { %v3134_v40 = vadd.f32 %v3506_v4, %v3349_v31 }
 0x901   :  { %v3508_v12 = vpop.f32.mrf.mxu1  ;;  %v3536_v28 = vpop.f32.mrf.mxu0 }
 0x902   :  { %v3182_v29 = vadd.f32 %v3534_v54, %v3134_v40  ;;  %v3509_v32 = vadd.f32 %v3508_v12, %v3507_v41  ;;  %v3537_v50 = vadd.f32 %v3536_v28, %v3535_v35 }
 0x904   :  { %v3195_v47 = vadd.f32 %v3182_v29, %v4986_v27  ;;  %v3137_v17 = vadd.f32 %v3509_v32, %v3349_v31 }
 0x906   :  { %3198 = vst [vmem:[%s5254_s10] sm:$0xff] %v3195_v47  ;;  %v3185_v58 = vadd.f32 %v3537_v50, %v3137_v17  ;;  %v3510_v3 = vpop.f32.mrf.mxu1  ;;  %v3538_v63 = vpop.f32.mrf.mxu0 }
 0x908   :  { %v3196_v59 = vadd.f32 %v3185_v58, %v4992_v33  ;;  %v3511_v20 = vpop.f32.mrf.mxu1  ;;  %v3539_v48 = vpop.f32.mrf.mxu0 }
 0x909   :  { %v3512_v16 = vadd.f32 %v3511_v20, %v3510_v3  ;;  %v3540_v24 = vadd.f32 %v3539_v48, %v3538_v63 }
 0x90a   :  { %3199 = vst [vmem:[%s5254_s10 + $0x8] sm:$0xff] %v3196_v59  ;;  %v3513_v62 = vpop.f32.mrf.mxu1  ;;  %v3541_v27 = vpop.f32.mrf.mxu0 }
 0x90b   :  { %v3142_v60 = vadd.f32 %v3512_v16, %v3349_v31 }
 0x90c   :  { %v3514_v43 = vpop.f32.mrf.mxu1  ;;  %v3542_v19 = vpop.f32.mrf.mxu0 }
 0x90d   :  { %v3190_v51 = vadd.f32 %v3540_v24, %v3142_v60 }
 0x90f   :  { %v3197_v2 = vadd.f32 %v3190_v51, %v4998_v42 }
 0x911   :  { %3200 = vst [vmem:[%s5254_s10 + $0x10] sm:$0x3] %v3197_v2 }

</bundles_post_ra>
